<compile_context>
chip_gen: v7x
topology: tpu7x:2x2x1
jax: 0.10.0
libtpu: 0.0.40
codegen_flags: <defaults>
</compile_context>

<pallas_src>
import functools

import jax
import jax.numpy as jnp
from jax import lax
from jax.experimental import pallas as pl
from jax.experimental.pallas import tpu as pltpu

BN_EPS = 1e-5
COMPUTE_DTYPE = jnp.bfloat16          # inter-layer activations / GEMM operands
VMEM_LIMIT = 4 * 1024 * 1024          # actual per-call need is < 1 MiB

_COMPILER_PARAMS = pltpu.CompilerParams(vmem_limit_bytes=VMEM_LIMIT)


# ----------------------------------------------------------------------------
# In-kernel helpers
# ----------------------------------------------------------------------------
def _apply_act(y, act):
    if act == "none":
        return y
    if act == "leaky_relu":
        return jnp.where(y > 0, y, 0.2 * y)
    if act == "relu":
        return jnp.maximum(y, 0.0)
    if act == "tanh":
        return jnp.tanh(y)
    raise ValueError(f"unknown act {act}")


# ----------------------------------------------------------------------------
# Pallas kernels
# ----------------------------------------------------------------------------
def _gemm_act_kernel(w_ref, a_ref, o_ref, *, act):
    # Lane-dense (Cout, M) output; f32 accumulation.
    y = jnp.dot(w_ref[...], a_ref[...], preferred_element_type=jnp.float32)
    o_ref[...] = _apply_act(y, act).astype(o_ref.dtype)


def _gemm_bn_act_kernel(w_ref, a_ref, g_ref, b_ref, o_ref, *, act):
    # GEMM -> per-channel batch stats -> affine -> activation -> single store.
    y = jnp.dot(w_ref[...], a_ref[...], preferred_element_type=jnp.float32)
    mean = jnp.mean(y, axis=1, keepdims=True)
    c = y - mean
    var = jnp.mean(c * c, axis=1, keepdims=True)      # biased, as PyTorch BN
    scale = g_ref[...] * lax.rsqrt(var + BN_EPS)
    o_ref[...] = _apply_act(c * scale + b_ref[...], act).astype(o_ref.dtype)


def _make_convt_kernel(n_phase, has_bn, act):
    """All sub-pixel phases of one ConvTranspose3d in a single kernel body.

    BN statistics (when present) are accumulated across all phase GEMM outputs
    (they partition the layer output), then affine + activation are applied
    per phase before the stores.
    """
    def kernel(*refs):
        ws = refs[:n_phase]
        ats = refs[n_phase:2 * n_phase]
        pos = 2 * n_phase
        if has_bn:
            g_ref, b_ref = refs[pos], refs[pos + 1]
            pos += 2
        outs = refs[pos:pos + n_phase]

        ys = [jnp.dot(w[...], a[...], preferred_element_type=jnp.float32)
              for w, a in zip(ws, ats)]
        if has_bn:
            count = float(sum(y.shape[1] for y in ys))
            tot = sum(jnp.sum(y, axis=1, keepdims=True) for y in ys)
            tot_sq = sum(jnp.sum(y * y, axis=1, keepdims=True) for y in ys)
            mean = tot / count
            var = tot_sq / count - mean * mean
            scale = g_ref[...] * lax.rsqrt(var + BN_EPS)
            shift = b_ref[...] - mean * scale
            ys = [y * scale + shift for y in ys]
        for o_ref, y in zip(outs, ys):
            o_ref[...] = _apply_act(y, act).astype(o_ref.dtype)
    return kernel


def _latent_fused_kernel(w3_ref, a3_ref, wd1t_ref, sel_ref, selt_ref,
                         g_ref, b_ref, lat_ref, y_ref):
    """Encoder-final Conv3d (latent) + decoder-initial ConvTranspose3d
    (k=[1,4,4], s=1, p=0) + BatchNorm + ReLU, fused.  The latent stays in
    VMEM; two outputs: latent (F, M) f32 and decoder activation
    ((Cout*kh*kw), M) bf16.
    """
    lat = jnp.dot(w3_ref[...], a3_ref[...], preferred_element_type=jnp.float32)
    lat_ref[...] = lat.astype(lat_ref.dtype)

    # Decoder initial ConvT on a 1x1 (H,W) input is a single GEMM whose rows
    # are (cout, kh, kw) and whose columns are (n, d).
    y = jnp.dot(wd1t_ref[...], lat.astype(wd1t_ref.dtype),
                preferred_element_type=jnp.float32)

    # BatchNorm per output channel via constant selector matmuls (rows of y
    # are grouped by channel); all ops are dots + elementwise (Mosaic-safe).
    m = y.shape[1]
    rows_per_ch = sel_ref.shape[1] // sel_ref.shape[0]
    count = float(rows_per_ch * m)
    row_sum = jnp.sum(y, axis=1, keepdims=True)
    row_sqsum = jnp.sum(y * y, axis=1, keepdims=True)
    ch_sum = jnp.dot(sel_ref[...], row_sum, preferred_element_type=jnp.float32)
    ch_sqsum = jnp.dot(sel_ref[...], row_sqsum,
                       preferred_element_type=jnp.float32)
    mean = ch_sum / count
    var = ch_sqsum / count - mean * mean
    scale = g_ref[...] * lax.rsqrt(var + BN_EPS)
    shift = b_ref[...] - mean * scale
    row_scale = jnp.dot(selt_ref[...], scale, preferred_element_type=jnp.float32)
    row_shift = jnp.dot(selt_ref[...], shift, preferred_element_type=jnp.float32)
    y_ref[...] = jnp.maximum(y * row_scale + row_shift, 0.0).astype(y_ref.dtype)


# ----------------------------------------------------------------------------
# Pallas wrappers (grid-less, full-array VMEM blocks)
# ----------------------------------------------------------------------------
def conv_gemm(w_mat, a_t, bn, act, out_dtype):
    cout = w_mat.shape[0]
    m = a_t.shape[1]
    out_shape = jax.ShapeDtypeStruct((cout, m), out_dtype)
    if bn is None:
        kern = functools.partial(_gemm_act_kernel, act=act)
        args = (w_mat.astype(COMPUTE_DTYPE), a_t.astype(COMPUTE_DTYPE))
    else:
        gamma, beta = bn
        kern = functools.partial(_gemm_bn_act_kernel, act=act)
        args = (w_mat.astype(COMPUTE_DTYPE), a_t.astype(COMPUTE_DTYPE),
                gamma.reshape(cout, 1).astype(jnp.float32),
                beta.reshape(cout, 1).astype(jnp.float32))
    return pl.pallas_call(kern, out_shape=out_shape,
                          compiler_params=_COMPILER_PARAMS)(*args)


def convt_phases_gemm(w_list, a_list, bn, act, out_dtype):
    n_phase = len(w_list)
    kern = _make_convt_kernel(n_phase, bn is not None, act)
    out_shape = tuple(jax.ShapeDtypeStruct((w.shape[0], a.shape[1]), out_dtype)
                      for w, a in zip(w_list, a_list))
    args = ([w.astype(COMPUTE_DTYPE) for w in w_list]
            + [a.astype(COMPUTE_DTYPE) for a in a_list])
    if bn is not None:
        gamma, beta = bn
        cout = w_list[0].shape[0]
        args += [gamma.reshape(cout, 1).astype(jnp.float32),
                 beta.reshape(cout, 1).astype(jnp.float32)]
    outs = pl.pallas_call(kern, out_shape=out_shape,
                          compiler_params=_COMPILER_PARAMS)(*args)
    return list(outs)


# ----------------------------------------------------------------------------
# im2col (channel-major; XLA glue on tiny tensors)
# ----------------------------------------------------------------------------
def _norm_pad(padding):
    return [(p, p) if isinstance(p, int) else (int(p[0]), int(p[1]))
            for p in padding]


def _im2col_T(x_cm, ksize, stride, padding):
    """x_cm: (C, N, D, H, W).  Returns A^T (C*kd*kh*kw, N*Do*Ho*Wo), (Do,Ho,Wo).

    Row order (c, kd, kh, kw) matches weight.reshape(Cout, -1); column order
    is (n, do, ho, wo).
    """
    c, n, d, h, w = x_cm.shape
    kd, kh, kw = ksize
    sd, sh, sw = stride
    (pd0, pd1), (ph0, ph1), (pw0, pw1) = _norm_pad(padding)
    xp = jnp.pad(x_cm, ((0, 0), (0, 0), (pd0, pd1), (ph0, ph1), (pw0, pw1)))
    do = (d + pd0 + pd1 - kd) // sd + 1
    ho = (h + ph0 + ph1 - kh) // sh + 1
    wo = (w + pw0 + pw1 - kw) // sw + 1
    cols = []
    for dz in range(kd):
        for dy in range(kh):
            for dx in range(kw):
                cols.append(xp[:, :,
                               dz:dz + sd * (do - 1) + 1:sd,
                               dy:dy + sh * (ho - 1) + 1:sh,
                               dx:dx + sw * (wo - 1) + 1:sw])
    a = jnp.stack(cols, axis=1)                  # (C, KK, N, Do, Ho, Wo)
    return a.reshape(c * kd * kh * kw, n * do * ho * wo), (do, ho, wo)


def conv3d_cm(x_cm, weight, stride, padding, bn, act, out_dtype):
    """Conv3d on a channel-major (Cin, N, D, H, W) tensor; weight is the
    PyTorch (Cout, Cin, kd, kh, kw) layout.  Returns (Cout, N, Do, Ho, Wo)."""
    cout = weight.shape[0]
    n = x_cm.shape[1]
    a_t, (do, ho, wo) = _im2col_T(x_cm, weight.shape[2:], stride, padding)
    y = conv_gemm(weight.reshape(cout, -1), a_t, bn, act, out_dtype)
    return y.reshape(cout, n, do, ho, wo)


# ----------------------------------------------------------------------------
# ConvTranspose3d via sub-pixel (phase) decomposition
# ----------------------------------------------------------------------------
def _phase_geometry(k, s, p, din):
    dout = (din - 1) * s - 2 * p + k
    phases = []
    for phi in range(s):
        o0 = (phi - p) % s
        if o0 >= dout:
            continue
        taps = (k - 1 - phi) // s + 1
        nout = (dout - 1 - o0) // s + 1
        u0 = (o0 + p - phi) // s
        pad_lo = taps - 1 - u0
        pad_hi = nout + taps - 1 - din - pad_lo
        assert pad_lo >= 0 and pad_hi >= 0, "unsupported ConvTranspose3d geometry"
        phases.append(dict(phi=phi, taps=taps, o0=o0, nout=nout,
                           pad=(pad_lo, pad_hi)))
    return dout, phases


def _interleave_axis(parts, offsets, stride, total, axis):
    """Merge per-phase arrays along one spatial axis (phase i covers indices
    offsets[i] + stride*k).  Uniform phases -> one stack+reshape; otherwise a
    single concat of per-index slices (no strided scatters)."""
    order = sorted(range(len(parts)), key=lambda i: offsets[i])
    sizes = [parts[i].shape[axis] for i in order]
    offs = [offsets[i] for i in order]
    if (len(order) == stride and offs == list(range(stride))
            and len(set(sizes)) == 1 and sizes[0] * stride == total):
        stacked = jnp.stack([parts[i] for i in order], axis=axis + 1)
        shp = list(parts[order[0]].shape)
        shp[axis] = total
        return stacked.reshape(shp)
    pieces = []
    for t in range(total):
        src = None
        for i in order:
            o0 = offsets[i]
            if t < o0 or (t - o0) % stride != 0:
                continue
            j = (t - o0) // stride
            if j < parts[i].shape[axis]:
                src = (i, j)
                break
        assert src is not None, "phase assembly gap"
        i, j = src
        pieces.append(lax.slice_in_dim(parts[i], j, j + 1, axis=axis))
    return jnp.concatenate(pieces, axis=axis)


def conv_transpose3d_cm(x_cm, weight, stride, padding, bn, act, out_dtype):
    """ConvTranspose3d on channel-major input; weight is the PyTorch
    (Cin, Cout, kd, kh, kw) layout.  One pallas_call for ALL phases (GEMMs +
    cross-phase BatchNorm + activation fused)."""
    cout = weight.shape[1]
    kd, kh, kw = weight.shape[2:]
    sd, sh, sw = stride
    pd, ph, pw = padding
    n = x_cm.shape[1]
    din, hin, win = x_cm.shape[2:]

    dout, phs_d = _phase_geometry(kd, sd, pd, din)
    hout, phs_h = _phase_geometry(kh, sh, ph, hin)
    wout, phs_w = _phase_geometry(kw, sw, pw, win)
    phase_tuples = [(fd, fh, fw) for fd in phs_d for fh in phs_h for fw in phs_w]

    w_list, a_list = [], []
    for fd, fh, fw in phase_tuples:
        # Strided kernel slice for this phase, flipped + Cin/Cout swapped so a
        # stride-1 conv reproduces the transposed-conv contribution.
        w_sub = weight[:, :, fd["phi"]::sd, fh["phi"]::sh, fw["phi"]::sw]
        w_conv = jnp.flip(w_sub, axis=(2, 3, 4)).transpose(1, 0, 2, 3, 4)
        a_t, dims = _im2col_T(x_cm, w_conv.shape[2:], (1, 1, 1),
                              (fd["pad"], fh["pad"], fw["pad"]))
        assert dims == (fd["nout"], fh["nout"], fw["nout"])
        w_list.append(w_conv.reshape(cout, -1))
        a_list.append(a_t)

    ys = convt_phases_gemm(w_list, a_list, bn, act, out_dtype)

    parts = {}
    for (fd, fh, fw), y in zip(phase_tuples, ys):
        parts[(fd["phi"], fh["phi"], fw["phi"])] = y.reshape(
            cout, n, fd["nout"], fh["nout"], fw["nout"])

    # Interleave W, then H, then D (stack+reshape; concat fallback for the one
    # axis whose phases have unequal extents).
    hw_parts = {}
    for fd in phs_d:
        for fh in phs_h:
            plist = [parts[(fd["phi"], fh["phi"], fw["phi"])] for fw in phs_w]
            offs = [fw["o0"] for fw in phs_w]
            hw_parts[(fd["phi"], fh["phi"])] = _interleave_axis(
                plist, offs, sw, wout, 4)
    d_parts = {}
    for fd in phs_d:
        plist = [hw_parts[(fd["phi"], fh["phi"])] for fh in phs_h]
        offs = [fh["o0"] for fh in phs_h]
        d_parts[fd["phi"]] = _interleave_axis(plist, offs, sh, hout, 3)
    plist = [d_parts[fd["phi"]] for fd in phs_d]
    offs = [fd["o0"] for fd in phs_d]
    return _interleave_axis(plist, offs, sd, dout, 2)


# ----------------------------------------------------------------------------
# Fused latent pair: encoder-final conv + decoder-initial ConvT + BN + ReLU
# ----------------------------------------------------------------------------
def latent_and_decoder_init(h_cm, enc_final, dec_initial):
    w3 = enc_final["w"]                       # (F, Cndf, 1, 4, 4)
    wd1 = dec_initial["w"]                    # (F, Cngf, 1, 4, 4)
    gamma, beta = dec_initial["bn"]
    assert enc_final["bn"] is None and enc_final["act"] == "none"
    assert wd1.shape[2] == 1 and dec_initial["stride"] == (1, 1, 1)
    f = w3.shape[0]
    cngf = wd1.shape[1]
    kh_, kw_ = wd1.shape[3], wd1.shape[4]
    khw = kh_ * kw_
    n = h_cm.shape[1]

    a3, (dl, ho, wo) = _im2col_T(h_cm, w3.shape[2:], enc_final["stride"],
                                 enc_final["pad"])
    assert (ho, wo) == (1, 1)
    m = n * dl

    w3_mat = w3.reshape(f, -1).astype(COMPUTE_DTYPE)
    # out[(cout,kh,kw), (n,d)] = sum_ci wd1[ci, cout, 0, kh, kw] * latent[ci,(n,d)]
    wd1t = wd1[:, :, 0, :, :].transpose(1, 2, 3, 0).reshape(
        cngf * khw, f).astype(COMPUTE_DTYPE)

    # Per-channel selector matrices for BN stats on the (cout*khw, m) layout.
    sel = (jnp.arange(cngf)[:, None]
           == (jnp.arange(cngf * khw)[None, :] // khw)).astype(jnp.float32)
    selt = sel.T

    lat, y = pl.pallas_call(
        _latent_fused_kernel,
        out_shape=(jax.ShapeDtypeStruct((f, m), jnp.float32),
                   jax.ShapeDtypeStruct((cngf * khw, m), COMPUTE_DTYPE)),
        compiler_params=_COMPILER_PARAMS,
    )(w3_mat, a3.astype(COMPUTE_DTYPE), wd1t, sel, selt,
      gamma.reshape(cngf, 1).astype(jnp.float32),
      beta.reshape(cngf, 1).astype(jnp.float32))

    latent_cm = lat.reshape(f, n, dl, 1, 1)
    dec_init_cm = y.reshape(cngf, kh_, kw_, n, dl).transpose(0, 3, 4, 1, 2)
    return latent_cm, dec_init_cm


# ----------------------------------------------------------------------------
# NetG parameter construction (mirrors the PyTorch module graph) + forward
# ----------------------------------------------------------------------------
def _conv_w(key, shape):
    return 0.05 * jax.random.normal(key, shape, jnp.float32)


def _bn_params(key, c):
    k1, k2 = jax.random.split(key)
    gamma = 1.0 + 0.1 * jax.random.normal(k1, (c,), jnp.float32)
    beta = 0.1 * jax.random.normal(k2, (c,), jnp.float32)
    return gamma, beta


def init_encoder(key, size, finnal_channel, org_channel, conv_channel):
    assert size % 16 == 0
    keys = iter(jax.random.split(key, 64))
    layers = [dict(kind="conv",
                   w=_conv_w(next(keys), (conv_channel, org_channel, 3, 4, 4)),
                   stride=(2, 2, 2), pad=(1, 1, 1), bn=None, act="leaky_relu")]
    csize, cndf = size // 2, conv_channel
    while csize > 4:
        in_f, out_f = cndf, cndf * 2
        layers.append(dict(kind="conv",
                           w=_conv_w(next(keys), (out_f, in_f, 3, 4, 4)),
                           stride=(2, 2, 2), pad=(1, 1, 1),
                           bn=_bn_params(next(keys), out_f),
                           act="leaky_relu"))
        cndf, csize = out_f, csize // 2
    layers.append(dict(kind="conv",
                       w=_conv_w(next(keys), (finnal_channel, cndf, 1, 4, 4)),
                       stride=(1, 1, 1), pad=(0, 0, 0), bn=None, act="none"))
    return layers


def init_decoder(key, size, finnal_channel, org_channel, conv_channel):
    assert size % 16 == 0
    keys = iter(jax.random.split(key, 64))
    cngf, tisize = conv_channel // 2, 4
    while tisize != size:
        cngf, tisize = cngf * 2, tisize * 2
    layers = [dict(kind="convt",
                   w=_conv_w(next(keys), (finnal_channel, cngf, 1, 4, 4)),
                   stride=(1, 1, 1), pad=(0, 0, 0),
                   bn=_bn_params(next(keys), cngf), act="relu")]
    csize = 4
    while csize < size // 2:
        layers.append(dict(kind="convt",
                           w=_conv_w(next(keys), (cngf, cngf // 2, 3, 4, 4)),
                           stride=(2, 2, 2), pad=(1, 1, 1),
                           bn=_bn_params(next(keys), cngf // 2), act="relu"))
        cngf, csize = cngf // 2, csize * 2
    layers.append(dict(kind="convt",
                       w=_conv_w(next(keys), (cngf, org_channel, 6, 4, 4)),
                       stride=(2, 2, 2), pad=(1, 1, 1), bn=None, act="tanh"))
    return layers


def init_netg(key, size, finnal_channel, org_channel, conv_channel):
    k1, k2, k3 = jax.random.split(key, 3)
    return dict(
        encoder1=init_encoder(k1, size, finnal_channel, org_channel, conv_channel),
        decoder=init_decoder(k2, size, finnal_channel, org_channel, conv_channel),
        encoder2=init_encoder(k3, size, finnal_channel, org_channel, conv_channel),
    )


def netg_forward(params, x):
    enc1, dec, enc2 = params["encoder1"], params["decoder"], params["encoder2"]

    # Channel-major + bf16 only at the network boundary.
    h = jnp.transpose(x, (1, 0, 2, 3, 4)).astype(COMPUTE_DTYPE)
    for layer in enc1[:-1]:
        h = conv3d_cm(h, layer["w"], layer["stride"], layer["pad"],
                      layer["bn"], layer["act"], COMPUTE_DTYPE)

    # Fused: encoder1 final conv (latent) + decoder initial ConvT + BN + ReLU.
    latent_cm, g = latent_and_decoder_init(h, enc1[-1], dec[0])

    for layer in dec[1:-1]:
        g = conv_transpose3d_cm(g, layer["w"], layer["stride"], layer["pad"],
                                layer["bn"], layer["act"], COMPUTE_DTYPE)
    last = dec[-1]
    gen_cm = conv_transpose3d_cm(g, last["w"], last["stride"], last["pad"],
                                 last["bn"], last["act"], jnp.float32)

    h2 = gen_cm.astype(COMPUTE_DTYPE)
    for layer in enc2[:-1]:
        h2 = conv3d_cm(h2, layer["w"], layer["stride"], layer["pad"],
                       layer["bn"], layer["act"], COMPUTE_DTYPE)
    last2 = enc2[-1]
    lat2_cm = conv3d_cm(h2, last2["w"], last2["stride"], last2["pad"],
                        last2["bn"], last2["act"], jnp.float32)

    # Back to NCDHW only for the returned tensors.
    latent_i = jnp.transpose(latent_cm, (1, 0, 2, 3, 4))
    gen_images = jnp.transpose(gen_cm, (1, 0, 2, 3, 4))
    latent_o = jnp.transpose(lat2_cm, (1, 0, 2, 3, 4))
    return latent_i, gen_images, latent_o


if __name__ == "__main__":
    # args: size=16, finnal_channel=8, org_channel=1, conv_channel=4, ngpu=1
    SIZE, FINNAL_C, ORG_C, CONV_C = 16, 8, 1, 4
    key = jax.random.PRNGKey(0)
    k_param, k_x = jax.random.split(key)
    params = init_netg(k_param, SIZE, FINNAL_C, ORG_C, CONV_C)

    # x: (N, C, D, H, W) = (2, 1, 8, 16, 16); depth 8 -> latent depth 2 ->
    # decoder reproduces depth 8, so gen_images matches x's shape.
    x = jax.random.normal(k_x, (2, ORG_C, 8, SIZE, SIZE), jnp.float32)

    fwd = jax.jit(lambda inp: netg_forward(params, inp))
    latent_i, gen_images, latent_o = fwd(x)
    jax.block_until_ready((latent_i, gen_images, latent_o))

    assert latent_i.shape == (2, FINNAL_C, 2, 1, 1), latent_i.shape
    assert gen_images.shape == x.shape, gen_images.shape
    assert latent_o.shape == (2, FINNAL_C, 2, 1, 1), latent_o.shape
    assert bool(jnp.all(jnp.isfinite(gen_images)))
    assert bool(jnp.all(jnp.isfinite(latent_i)))
    assert bool(jnp.all(jnp.isfinite(latent_o)))

    print("KERNEL_OK")
</pallas_src>

<mosaic_0001>
module attributes {stable_mosaic.version = 11 : i64} {
  func.func @_gemm_act_kernel(%arg0: memref<4x48xbf16, #tpu.memory_space<vmem>>, %arg1: memref<48x512xbf16, #tpu.memory_space<vmem>>, %arg2: memref<4x512xbf16, #tpu.memory_space<vmem>>) attributes {dimension_semantics = [], scalar_prefetch = 0 : i64, scratch_operands = 0 : i64, tpu.core_type = #tpu.core_type<tc>} {
    %c0 = arith.constant 0 : index
    %c0_0 = arith.constant 0 : index
    %0 = vector.load %arg0[%c0, %c0_0] : memref<4x48xbf16, #tpu.memory_space<vmem>>, vector<4x48xbf16>
    %c0_1 = arith.constant 0 : index
    %c0_2 = arith.constant 0 : index
    %1 = vector.load %arg1[%c0_1, %c0_2] : memref<48x512xbf16, #tpu.memory_space<vmem>>, vector<48x512xbf16>
    %cst = arith.constant dense<0.000000e+00> : vector<4x512xf32>
    %2 = tpu.matmul %0, %1, %cst {dimension_numbers = #tpu.dot_dimension_numbers<[1], [0], [0], [1], [0, 0, 1, 1], [], []>} : vector<4x48xbf16>, vector<48x512xbf16>, vector<4x512xf32> -> vector<4x512xf32>
    %cst_3 = arith.constant 0.000000e+00 : f32
    %3 = vector.broadcast %cst_3 : f32 to vector<4x512xf32>
    %4 = arith.cmpf ogt, %2, %3 : vector<4x512xf32>
    %cst_4 = arith.constant 2.000000e-01 : f32
    %5 = vector.broadcast %cst_4 : f32 to vector<4x512xf32>
    %6 = arith.mulf %5, %2 : vector<4x512xf32>
    %7 = arith.select %4, %2, %6 : vector<4x512xi1>, vector<4x512xf32>
    %8 = arith.truncf %7 : vector<4x512xf32> to vector<4x512xbf16>
    %c0_5 = arith.constant 0 : index
    %c0_6 = arith.constant 0 : index
    %9 = vector.load %arg2[%c0_5, %c0_6] : memref<4x512xbf16, #tpu.memory_space<vmem>>, vector<4x512xbf16>
    tpu.vector_store %arg2[%c0_5, %c0_6], %8 {strides = array<i32>} : memref<4x512xbf16, #tpu.memory_space<vmem>>, vector<4x512xbf16>,
    return
  }
}

module attributes {stable_mosaic.version = 11 : i64} {
  func.func @_gemm_bn_act_kernel(%arg0: memref<8x192xbf16, #tpu.memory_space<vmem>>, %arg1: memref<192x64xbf16, #tpu.memory_space<vmem>>, %arg2: memref<8x1xf32, #tpu.memory_space<vmem>>, %arg3: memref<8x1xf32, #tpu.memory_space<vmem>>, %arg4: memref<8x64xbf16, #tpu.memory_space<vmem>>) attributes {dimension_semantics = [], scalar_prefetch = 0 : i64, scratch_operands = 0 : i64, tpu.core_type = #tpu.core_type<tc>} {
    %c0 = arith.constant 0 : index
    %c0_0 = arith.constant 0 : index
    %0 = vector.load %arg0[%c0, %c0_0] : memref<8x192xbf16, #tpu.memory_space<vmem>>, vector<8x192xbf16>
    %c0_1 = arith.constant 0 : index
    %c0_2 = arith.constant 0 : index
    %1 = vector.load %arg1[%c0_1, %c0_2] : memref<192x64xbf16, #tpu.memory_space<vmem>>, vector<192x64xbf16>
    %cst = arith.constant dense<0.000000e+00> : vector<8x64xf32>
    %2 = tpu.matmul %0, %1, %cst {dimension_numbers = #tpu.dot_dimension_numbers<[1], [0], [0], [1], [0, 0, 1, 1], [], []>} : vector<8x192xbf16>, vector<192x64xbf16>, vector<8x64xf32> -> vector<8x64xf32>
    %cst_3 = arith.constant dense<0.000000e+00> : vector<8xf32>
    %3 = vector.multi_reduction <add>, %2, %cst_3 [1] : vector<8x64xf32> to vector<8xf32>
    %4 = vector.shape_cast %3 : vector<8xf32> to vector<8x1xf32>
    %cst_4 = arith.constant 6.400000e+01 : f32
    %5 = vector.broadcast %cst_4 : f32 to vector<8x1xf32>
    %6 = arith.divf %4, %5 : vector<8x1xf32>
    %7 = vector.broadcast %6 : vector<8x1xf32> to vector<8x64xf32>
    %8 = arith.subf %2, %7 : vector<8x64xf32>
    %9 = arith.mulf %8, %8 : vector<8x64xf32>
    %cst_5 = arith.constant dense<0.000000e+00> : vector<8xf32>
    %10 = vector.multi_reduction <add>, %9, %cst_5 [1] : vector<8x64xf32> to vector<8xf32>
    %11 = vector.shape_cast %10 : vector<8xf32> to vector<8x1xf32>
    %cst_6 = arith.constant 6.400000e+01 : f32
    %12 = vector.broadcast %cst_6 : f32 to vector<8x1xf32>
    %13 = arith.divf %11, %12 : vector<8x1xf32>
    %c0_7 = arith.constant 0 : index
    %c0_8 = arith.constant 0 : index
    %14 = vector.load %arg2[%c0_7, %c0_8] : memref<8x1xf32, #tpu.memory_space<vmem>>, vector<8x1xf32>
    %cst_9 = arith.constant 9.99999974E-6 : f32
    %15 = vector.broadcast %cst_9 : f32 to vector<8x1xf32>
    %16 = arith.addf %13, %15 : vector<8x1xf32>
    %17 = math.rsqrt %16 : vector<8x1xf32>
    %18 = arith.mulf %14, %17 : vector<8x1xf32>
    %19 = vector.broadcast %18 : vector<8x1xf32> to vector<8x64xf32>
    %20 = arith.mulf %8, %19 : vector<8x64xf32>
    %c0_10 = arith.constant 0 : index
    %c0_11 = arith.constant 0 : index
    %21 = vector.load %arg3[%c0_10, %c0_11] : memref<8x1xf32, #tpu.memory_space<vmem>>, vector<8x1xf32>
    %22 = vector.broadcast %21 : vector<8x1xf32> to vector<8x64xf32>
    %23 = arith.addf %20, %22 : vector<8x64xf32>
    %cst_12 = arith.constant 0.000000e+00 : f32
    %24 = vector.broadcast %cst_12 : f32 to vector<8x64xf32>
    %25 = arith.cmpf ogt, %23, %24 : vector<8x64xf32>
    %cst_13 = arith.constant 2.000000e-01 : f32
    %26 = vector.broadcast %cst_13 : f32 to vector<8x64xf32>
    %27 = arith.mulf %26, %23 : vector<8x64xf32>
    %28 = arith.select %25, %23, %27 : vector<8x64xi1>, vector<8x64xf32>
    %29 = arith.truncf %28 : vector<8x64xf32> to vector<8x64xbf16>
    %c0_14 = arith.constant 0 : index
    %c0_15 = arith.constant 0 : index
    %30 = vector.load %arg4[%c0_14, %c0_15] : memref<8x64xbf16, #tpu.memory_space<vmem>>, vector<8x64xbf16>
    tpu.vector_store %arg4[%c0_14, %c0_15], %29 {strides = array<i32>} : memref<8x64xbf16, #tpu.memory_space<vmem>>, vector<8x64xbf16>,
    return
  }
}

module attributes {stable_mosaic.version = 11 : i64} {
  func.func @_latent_fused_kernel(%arg0: memref<8x128xbf16, #tpu.memory_space<vmem>>, %arg1: memref<128x4xbf16, #tpu.memory_space<vmem>>, %arg2: memref<128x8xbf16, #tpu.memory_space<vmem>>, %arg3: memref<8x128xf32, #tpu.memory_space<vmem>>, %arg4: memref<128x8xf32, #tpu.memory_space<vmem>>, %arg5: memref<8x1xf32, #tpu.memory_space<vmem>>, %arg6: memref<8x1xf32, #tpu.memory_space<vmem>>, %arg7: memref<8x4xf32, #tpu.memory_space<vmem>>, %arg8: memref<128x4xbf16, #tpu.memory_space<vmem>>) attributes {dimension_semantics = [], scalar_prefetch = 0 : i64, scratch_operands = 0 : i64, tpu.core_type = #tpu.core_type<tc>} {
    %c0 = arith.constant 0 : index
    %c0_0 = arith.constant 0 : index
    %0 = vector.load %arg0[%c0, %c0_0] : memref<8x128xbf16, #tpu.memory_space<vmem>>, vector<8x128xbf16>
    %c0_1 = arith.constant 0 : index
    %c0_2 = arith.constant 0 : index
    %1 = vector.load %arg1[%c0_1, %c0_2] : memref<128x4xbf16, #tpu.memory_space<vmem>>, vector<128x4xbf16>
    %cst = arith.constant dense<0.000000e+00> : vector<8x4xf32>
    %2 = tpu.matmul %0, %1, %cst {dimension_numbers = #tpu.dot_dimension_numbers<[1], [0], [0], [1], [0, 0, 1, 1], [], []>} : vector<8x128xbf16>, vector<128x4xbf16>, vector<8x4xf32> -> vector<8x4xf32>
    %c0_3 = arith.constant 0 : index
    %c0_4 = arith.constant 0 : index
    %3 = vector.load %arg7[%c0_3, %c0_4] : memref<8x4xf32, #tpu.memory_space<vmem>>, vector<8x4xf32>
    tpu.vector_store %arg7[%c0_3, %c0_4], %2 {strides = array<i32>} : memref<8x4xf32, #tpu.memory_space<vmem>>, vector<8x4xf32>,
    %c0_5 = arith.constant 0 : index
    %c0_6 = arith.constant 0 : index
    %4 = vector.load %arg2[%c0_5, %c0_6] : memref<128x8xbf16, #tpu.memory_space<vmem>>, vector<128x8xbf16>
    %5 = arith.truncf %2 : vector<8x4xf32> to vector<8x4xbf16>
    %cst_7 = arith.constant dense<0.000000e+00> : vector<128x4xf32>
    %6 = tpu.matmul %4, %5, %cst_7 {dimension_numbers = #tpu.dot_dimension_numbers<[1], [0], [0], [1], [0, 0, 1, 1], [], []>} : vector<128x8xbf16>, vector<8x4xbf16>, vector<128x4xf32> -> vector<128x4xf32>
    %cst_8 = arith.constant dense<0.000000e+00> : vector<128xf32>
    %7 = vector.multi_reduction <add>, %6, %cst_8 [1] : vector<128x4xf32> to vector<128xf32>
    %8 = vector.shape_cast %7 : vector<128xf32> to vector<128x1xf32>
    %9 = arith.mulf %6, %6 : vector<128x4xf32>
    %cst_9 = arith.constant dense<0.000000e+00> : vector<128xf32>
    %10 = vector.multi_reduction <add>, %9, %cst_9 [1] : vector<128x4xf32> to vector<128xf32>
    %11 = vector.shape_cast %10 : vector<128xf32> to vector<128x1xf32>
    %c0_10 = arith.constant 0 : index
    %c0_11 = arith.constant 0 : index
    %12 = vector.load %arg3[%c0_10, %c0_11] : memref<8x128xf32, #tpu.memory_space<vmem>>, vector<8x128xf32>
    %cst_12 = arith.constant dense<0.000000e+00> : vector<8x1xf32>
    %13 = tpu.matmul %12, %8, %cst_12 {dimension_numbers = #tpu.dot_dimension_numbers<[1], [0], [0], [1], [0, 0, 1, 1], [], []>} : vector<8x128xf32>, vector<128x1xf32>, vector<8x1xf32> -> vector<8x1xf32>
    %c0_13 = arith.constant 0 : index
    %c0_14 = arith.constant 0 : index
    %14 = vector.load %arg3[%c0_13, %c0_14] : memref<8x128xf32, #tpu.memory_space<vmem>>, vector<8x128xf32>
    %cst_15 = arith.constant dense<0.000000e+00> : vector<8x1xf32>
    %15 = tpu.matmul %14, %11, %cst_15 {dimension_numbers = #tpu.dot_dimension_numbers<[1], [0], [0], [1], [0, 0, 1, 1], [], []>} : vector<8x128xf32>, vector<128x1xf32>, vector<8x1xf32> -> vector<8x1xf32>
    %cst_16 = arith.constant 6.400000e+01 : f32
    %16 = vector.broadcast %cst_16 : f32 to vector<8x1xf32>
    %17 = arith.divf %13, %16 : vector<8x1xf32>
    %cst_17 = arith.constant 6.400000e+01 : f32
    %18 = vector.broadcast %cst_17 : f32 to vector<8x1xf32>
    %19 = arith.divf %15, %18 : vector<8x1xf32>
    %20 = arith.mulf %17, %17 : vector<8x1xf32>
    %21 = arith.subf %19, %20 : vector<8x1xf32>
    %c0_18 = arith.constant 0 : index
    %c0_19 = arith.constant 0 : index
    %22 = vector.load %arg5[%c0_18, %c0_19] : memref<8x1xf32, #tpu.memory_space<vmem>>, vector<8x1xf32>
    %cst_20 = arith.constant 9.99999974E-6 : f32
    %23 = vector.broadcast %cst_20 : f32 to vector<8x1xf32>
    %24 = arith.addf %21, %23 : vector<8x1xf32>
    %25 = math.rsqrt %24 : vector<8x1xf32>
    %26 = arith.mulf %22, %25 : vector<8x1xf32>
    %c0_21 = arith.constant 0 : index
    %c0_22 = arith.constant 0 : index
    %27 = vector.load %arg6[%c0_21, %c0_22] : memref<8x1xf32, #tpu.memory_space<vmem>>, vector<8x1xf32>
    %28 = arith.mulf %17, %26 : vector<8x1xf32>
    %29 = arith.subf %27, %28 : vector<8x1xf32>
    %c0_23 = arith.constant 0 : index
    %c0_24 = arith.constant 0 : index
    %30 = vector.load %arg4[%c0_23, %c0_24] : memref<128x8xf32, #tpu.memory_space<vmem>>, vector<128x8xf32>
    %cst_25 = arith.constant dense<0.000000e+00> : vector<128x1xf32>
    %31 = tpu.matmul %30, %26, %cst_25 {dimension_numbers = #tpu.dot_dimension_numbers<[1], [0], [0], [1], [0, 0, 1, 1], [], []>} : vector<128x8xf32>, vector<8x1xf32>, vector<128x1xf32> -> vector<128x1xf32>
    %c0_26 = arith.constant 0 : index
    %c0_27 = arith.constant 0 : index
    %32 = vector.load %arg4[%c0_26, %c0_27] : memref<128x8xf32, #tpu.memory_space<vmem>>, vector<128x8xf32>
    %cst_28 = arith.constant dense<0.000000e+00> : vector<128x1xf32>
    %33 = tpu.matmul %32, %29, %cst_28 {dimension_numbers = #tpu.dot_dimension_numbers<[1], [0], [0], [1], [0, 0, 1, 1], [], []>} : vector<128x8xf32>, vector<8x1xf32>, vector<128x1xf32> -> vector<128x1xf32>
    %34 = vector.broadcast %31 : vector<128x1xf32> to vector<128x4xf32>
    %35 = arith.mulf %6, %34 : vector<128x4xf32>
    %36 = vector.broadcast %33 : vector<128x1xf32> to vector<128x4xf32>
    %37 = arith.addf %35, %36 : vector<128x4xf32>
    %cst_29 = arith.constant 0.000000e+00 : f32
    %38 = vector.broadcast %cst_29 : f32 to vector<128x4xf32>
    %39 = arith.maximumf %37, %38 : vector<128x4xf32>
    %40 = arith.truncf %39 : vector<128x4xf32> to vector<128x4xbf16>
    %c0_30 = arith.constant 0 : index
    %c0_31 = arith.constant 0 : index
    %41 = vector.load %arg8[%c0_30, %c0_31] : memref<128x4xbf16, #tpu.memory_space<vmem>>, vector<128x4xbf16>
    tpu.vector_store %arg8[%c0_30, %c0_31], %40 {strides = array<i32>} : memref<128x4xbf16, #tpu.memory_space<vmem>>, vector<128x4xbf16>,
    return
  }
}

module attributes {stable_mosaic.version = 11 : i64} {
  func.func @kernel(%arg0: memref<4x64xbf16, #tpu.memory_space<vmem>>, %arg1: memref<4x64xbf16, #tpu.memory_space<vmem>>, %arg2: memref<4x64xbf16, #tpu.memory_space<vmem>>, %arg3: memref<4x64xbf16, #tpu.memory_space<vmem>>, %arg4: memref<4x32xbf16, #tpu.memory_space<vmem>>, %arg5: memref<4x32xbf16, #tpu.memory_space<vmem>>, %arg6: memref<4x32xbf16, #tpu.memory_space<vmem>>, %arg7: memref<4x32xbf16, #tpu.memory_space<vmem>>, %arg8: memref<64x32xbf16, #tpu.memory_space<vmem>>, %arg9: memref<64x32xbf16, #tpu.memory_space<vmem>>, %arg10: memref<64x32xbf16, #tpu.memory_space<vmem>>, %arg11: memref<64x32xbf16, #tpu.memory_space<vmem>>, %arg12: memref<32x64xbf16, #tpu.memory_space<vmem>>, %arg13: memref<32x64xbf16, #tpu.memory_space<vmem>>, %arg14: memref<32x64xbf16, #tpu.memory_space<vmem>>, %arg15: memref<32x64xbf16, #tpu.memory_space<vmem>>, %arg16: memref<4x1xf32, #tpu.memory_space<vmem>>, %arg17: memref<4x1xf32, #tpu.memory_space<vmem>>, %arg18: memref<4x32xbf16, #tpu.memory_space<vmem>>, %arg19: memref<4x32xbf16, #tpu.memory_space<vmem>>, %arg20: memref<4x32xbf16, #tpu.memory_space<vmem>>, %arg21: memref<4x32xbf16, #tpu.memory_space<vmem>>, %arg22: memref<4x64xbf16, #tpu.memory_space<vmem>>, %arg23: memref<4x64xbf16, #tpu.memory_space<vmem>>, %arg24: memref<4x64xbf16, #tpu.memory_space<vmem>>, %arg25: memref<4x64xbf16, #tpu.memory_space<vmem>>) attributes {dimension_semantics = [], scalar_prefetch = 0 : i64, scratch_operands = 0 : i64, tpu.core_type = #tpu.core_type<tc>} {
    %c0 = arith.constant 0 : index
    %c0_0 = arith.constant 0 : index
    %0 = vector.load %arg0[%c0, %c0_0] : memref<4x64xbf16, #tpu.memory_space<vmem>>, vector<4x64xbf16>
    %c0_1 = arith.constant 0 : index
    %c0_2 = arith.constant 0 : index
    %1 = vector.load %arg8[%c0_1, %c0_2] : memref<64x32xbf16, #tpu.memory_space<vmem>>, vector<64x32xbf16>
    %cst = arith.constant dense<0.000000e+00> : vector<4x32xf32>
    %2 = tpu.matmul %0, %1, %cst {dimension_numbers = #tpu.dot_dimension_numbers<[1], [0], [0], [1], [0, 0, 1, 1], [], []>} : vector<4x64xbf16>, vector<64x32xbf16>, vector<4x32xf32> -> vector<4x32xf32>
    %c0_3 = arith.constant 0 : index
    %c0_4 = arith.constant 0 : index
    %3 = vector.load %arg1[%c0_3, %c0_4] : memref<4x64xbf16, #tpu.memory_space<vmem>>, vector<4x64xbf16>
    %c0_5 = arith.constant 0 : index
    %c0_6 = arith.constant 0 : index
    %4 = vector.load %arg9[%c0_5, %c0_6] : memref<64x32xbf16, #tpu.memory_space<vmem>>, vector<64x32xbf16>
    %cst_7 = arith.constant dense<0.000000e+00> : vector<4x32xf32>
    %5 = tpu.matmul %3, %4, %cst_7 {dimension_numbers = #tpu.dot_dimension_numbers<[1], [0], [0], [1], [0, 0, 1, 1], [], []>} : vector<4x64xbf16>, vector<64x32xbf16>, vector<4x32xf32> -> vector<4x32xf32>
    %c0_8 = arith.constant 0 : index
    %c0_9 = arith.constant 0 : index
    %6 = vector.load %arg2[%c0_8, %c0_9] : memref<4x64xbf16, #tpu.memory_space<vmem>>, vector<4x64xbf16>
    %c0_10 = arith.constant 0 : index
    %c0_11 = arith.constant 0 : index
    %7 = vector.load %arg10[%c0_10, %c0_11] : memref<64x32xbf16, #tpu.memory_space<vmem>>, vector<64x32xbf16>
    %cst_12 = arith.constant dense<0.000000e+00> : vector<4x32xf32>
    %8 = tpu.matmul %6, %7, %cst_12 {dimension_numbers = #tpu.dot_dimension_numbers<[1], [0], [0], [1], [0, 0, 1, 1], [], []>} : vector<4x64xbf16>, vector<64x32xbf16>, vector<4x32xf32> -> vector<4x32xf32>
    %c0_13 = arith.constant 0 : index
    %c0_14 = arith.constant 0 : index
    %9 = vector.load %arg3[%c0_13, %c0_14] : memref<4x64xbf16, #tpu.memory_space<vmem>>, vector<4x64xbf16>
    %c0_15 = arith.constant 0 : index
    %c0_16 = arith.constant 0 : index
    %10 = vector.load %arg11[%c0_15, %c0_16] : memref<64x32xbf16, #tpu.memory_space<vmem>>, vector<64x32xbf16>
    %cst_17 = arith.constant dense<0.000000e+00> : vector<4x32xf32>
    %11 = tpu.matmul %9, %10, %cst_17 {dimension_numbers = #tpu.dot_dimension_numbers<[1], [0], [0], [1], [0, 0, 1, 1], [], []>} : vector<4x64xbf16>, vector<64x32xbf16>, vector<4x32xf32> -> vector<4x32xf32>
    %c0_18 = arith.constant 0 : index
    %c0_19 = arith.constant 0 : index
    %12 = vector.load %arg4[%c0_18, %c0_19] : memref<4x32xbf16, #tpu.memory_space<vmem>>, vector<4x32xbf16>
    %c0_20 = arith.constant 0 : index
    %c0_21 = arith.constant 0 : index
    %13 = vector.load %arg12[%c0_20, %c0_21] : memref<32x64xbf16, #tpu.memory_space<vmem>>, vector<32x64xbf16>
    %cst_22 = arith.constant dense<0.000000e+00> : vector<4x64xf32>
    %14 = tpu.matmul %12, %13, %cst_22 {dimension_numbers = #tpu.dot_dimension_numbers<[1], [0], [0], [1], [0, 0, 1, 1], [], []>} : vector<4x32xbf16>, vector<32x64xbf16>, vector<4x64xf32> -> vector<4x64xf32>
    %c0_23 = arith.constant 0 : index
    %c0_24 = arith.constant 0 : index
    %15 = vector.load %arg5[%c0_23, %c0_24] : memref<4x32xbf16, #tpu.memory_space<vmem>>, vector<4x32xbf16>
    %c0_25 = arith.constant 0 : index
    %c0_26 = arith.constant 0 : index
    %16 = vector.load %arg13[%c0_25, %c0_26] : memref<32x64xbf16, #tpu.memory_space<vmem>>, vector<32x64xbf16>
    %cst_27 = arith.constant dense<0.000000e+00> : vector<4x64xf32>
    %17 = tpu.matmul %15, %16, %cst_27 {dimension_numbers = #tpu.dot_dimension_numbers<[1], [0], [0], [1], [0, 0, 1, 1], [], []>} : vector<4x32xbf16>, vector<32x64xbf16>, vector<4x64xf32> -> vector<4x64xf32>
    %c0_28 = arith.constant 0 : index
    %c0_29 = arith.constant 0 : index
    %18 = vector.load %arg6[%c0_28, %c0_29] : memref<4x32xbf16, #tpu.memory_space<vmem>>, vector<4x32xbf16>
    %c0_30 = arith.constant 0 : index
    %c0_31 = arith.constant 0 : index
    %19 = vector.load %arg14[%c0_30, %c0_31] : memref<32x64xbf16, #tpu.memory_space<vmem>>, vector<32x64xbf16>
    %cst_32 = arith.constant dense<0.000000e+00> : vector<4x64xf32>
    %20 = tpu.matmul %18, %19, %cst_32 {dimension_numbers = #tpu.dot_dimension_numbers<[1], [0], [0], [1], [0, 0, 1, 1], [], []>} : vector<4x32xbf16>, vector<32x64xbf16>, vector<4x64xf32> -> vector<4x64xf32>
    %c0_33 = arith.constant 0 : index
    %c0_34 = arith.constant 0 : index
    %21 = vector.load %arg7[%c0_33, %c0_34] : memref<4x32xbf16, #tpu.memory_space<vmem>>, vector<4x32xbf16>
    %c0_35 = arith.constant 0 : index
    %c0_36 = arith.constant 0 : index
    %22 = vector.load %arg15[%c0_35, %c0_36] : memref<32x64xbf16, #tpu.memory_space<vmem>>, vector<32x64xbf16>
    %cst_37 = arith.constant dense<0.000000e+00> : vector<4x64xf32>
    %23 = tpu.matmul %21, %22, %cst_37 {dimension_numbers = #tpu.dot_dimension_numbers<[1], [0], [0], [1], [0, 0, 1, 1], [], []>} : vector<4x32xbf16>, vector<32x64xbf16>, vector<4x64xf32> -> vector<4x64xf32>
    %cst_38 = arith.constant dense<0.000000e+00> : vector<4xf32>
    %24 = vector.multi_reduction <add>, %2, %cst_38 [1] : vector<4x32xf32> to vector<4xf32>
    %25 = vector.shape_cast %24 : vector<4xf32> to vector<4x1xf32>
    %cst_39 = arith.constant 0.000000e+00 : f32
    %26 = vector.broadcast %cst_39 : f32 to vector<4x1xf32>
    %27 = arith.addf %26, %25 : vector<4x1xf32>
    %cst_40 = arith.constant dense<0.000000e+00> : vector<4xf32>
    %28 = vector.multi_reduction <add>, %5, %cst_40 [1] : vector<4x32xf32> to vector<4xf32>
    %29 = vector.shape_cast %28 : vector<4xf32> to vector<4x1xf32>
    %30 = arith.addf %27, %29 : vector<4x1xf32>
    %cst_41 = arith.constant dense<0.000000e+00> : vector<4xf32>
    %31 = vector.multi_reduction <add>, %8, %cst_41 [1] : vector<4x32xf32> to vector<4xf32>
    %32 = vector.shape_cast %31 : vector<4xf32> to vector<4x1xf32>
    %33 = arith.addf %30, %32 : vector<4x1xf32>
    %cst_42 = arith.constant dense<0.000000e+00> : vector<4xf32>
    %34 = vector.multi_reduction <add>, %11, %cst_42 [1] : vector<4x32xf32> to vector<4xf32>
    %35 = vector.shape_cast %34 : vector<4xf32> to vector<4x1xf32>
    %36 = arith.addf %33, %35 : vector<4x1xf32>
    %cst_43 = arith.constant dense<0.000000e+00> : vector<4xf32>
    %37 = vector.multi_reduction <add>, %14, %cst_43 [1] : vector<4x64xf32> to vector<4xf32>
    %38 = vector.shape_cast %37 : vector<4xf32> to vector<4x1xf32>
    %39 = arith.addf %36, %38 : vector<4x1xf32>
    %cst_44 = arith.constant dense<0.000000e+00> : vector<4xf32>
    %40 = vector.multi_reduction <add>, %17, %cst_44 [1] : vector<4x64xf32> to vector<4xf32>
    %41 = vector.shape_cast %40 : vector<4xf32> to vector<4x1xf32>
    %42 = arith.addf %39, %41 : vector<4x1xf32>
    %cst_45 = arith.constant dense<0.000000e+00> : vector<4xf32>
    %43 = vector.multi_reduction <add>, %20, %cst_45 [1] : vector<4x64xf32> to vector<4xf32>
    %44 = vector.shape_cast %43 : vector<4xf32> to vector<4x1xf32>
    %45 = arith.addf %42, %44 : vector<4x1xf32>
    %cst_46 = arith.constant dense<0.000000e+00> : vector<4xf32>
    %46 = vector.multi_reduction <add>, %23, %cst_46 [1] : vector<4x64xf32> to vector<4xf32>
    %47 = vector.shape_cast %46 : vector<4xf32> to vector<4x1xf32>
    %48 = arith.addf %45, %47 : vector<4x1xf32>
    %49 = arith.mulf %2, %2 : vector<4x32xf32>
    %cst_47 = arith.constant dense<0.000000e+00> : vector<4xf32>
    %50 = vector.multi_reduction <add>, %49, %cst_47 [1] : vector<4x32xf32> to vector<4xf32>
    %51 = vector.shape_cast %50 : vector<4xf32> to vector<4x1xf32>
    %cst_48 = arith.constant 0.000000e+00 : f32
    %52 = vector.broadcast %cst_48 : f32 to vector<4x1xf32>
    %53 = arith.addf %52, %51 : vector<4x1xf32>
    %54 = arith.mulf %5, %5 : vector<4x32xf32>
    %cst_49 = arith.constant dense<0.000000e+00> : vector<4xf32>
    %55 = vector.multi_reduction <add>, %54, %cst_49 [1] : vector<4x32xf32> to vector<4xf32>
    %56 = vector.shape_cast %55 : vector<4xf32> to vector<4x1xf32>
    %57 = arith.addf %53, %56 : vector<4x1xf32>
    %58 = arith.mulf %8, %8 : vector<4x32xf32>
    %cst_50 = arith.constant dense<0.000000e+00> : vector<4xf32>
    %59 = vector.multi_reduction <add>, %58, %cst_50 [1] : vector<4x32xf32> to vector<4xf32>
    %60 = vector.shape_cast %59 : vector<4xf32> to vector<4x1xf32>
    %61 = arith.addf %57, %60 : vector<4x1xf32>
    %62 = arith.mulf %11, %11 : vector<4x32xf32>
    %cst_51 = arith.constant dense<0.000000e+00> : vector<4xf32>
    %63 = vector.multi_reduction <add>, %62, %cst_51 [1] : vector<4x32xf32> to vector<4xf32>
    %64 = vector.shape_cast %63 : vector<4xf32> to vector<4x1xf32>
    %65 = arith.addf %61, %64 : vector<4x1xf32>
    %66 = arith.mulf %14, %14 : vector<4x64xf32>
    %cst_52 = arith.constant dense<0.000000e+00> : vector<4xf32>
    %67 = vector.multi_reduction <add>, %66, %cst_52 [1] : vector<4x64xf32> to vector<4xf32>
    %68 = vector.shape_cast %67 : vector<4xf32> to vector<4x1xf32>
    %69 = arith.addf %65, %68 : vector<4x1xf32>
    %70 = arith.mulf %17, %17 : vector<4x64xf32>
    %cst_53 = arith.constant dense<0.000000e+00> : vector<4xf32>
    %71 = vector.multi_reduction <add>, %70, %cst_53 [1] : vector<4x64xf32> to vector<4xf32>
    %72 = vector.shape_cast %71 : vector<4xf32> to vector<4x1xf32>
    %73 = arith.addf %69, %72 : vector<4x1xf32>
    %74 = arith.mulf %20, %20 : vector<4x64xf32>
    %cst_54 = arith.constant dense<0.000000e+00> : vector<4xf32>
    %75 = vector.multi_reduction <add>, %74, %cst_54 [1] : vector<4x64xf32> to vector<4xf32>
    %76 = vector.shape_cast %75 : vector<4xf32> to vector<4x1xf32>
    %77 = arith.addf %73, %76 : vector<4x1xf32>
    %78 = arith.mulf %23, %23 : vector<4x64xf32>
    %cst_55 = arith.constant dense<0.000000e+00> : vector<4xf32>
    %79 = vector.multi_reduction <add>, %78, %cst_55 [1] : vector<4x64xf32> to vector<4xf32>
    %80 = vector.shape_cast %79 : vector<4xf32> to vector<4x1xf32>
    %81 = arith.addf %77, %80 : vector<4x1xf32>
    %cst_56 = arith.constant 3.840000e+02 : f32
    %82 = vector.broadcast %cst_56 : f32 to vector<4x1xf32>
    %83 = arith.divf %48, %82 : vector<4x1xf32>
    %cst_57 = arith.constant 3.840000e+02 : f32
    %84 = vector.broadcast %cst_57 : f32 to vector<4x1xf32>
    %85 = arith.divf %81, %84 : vector<4x1xf32>
    %86 = arith.mulf %83, %83 : vector<4x1xf32>
    %87 = arith.subf %85, %86 : vector<4x1xf32>
    %c0_58 = arith.constant 0 : index
    %c0_59 = arith.constant 0 : index
    %88 = vector.load %arg16[%c0_58, %c0_59] : memref<4x1xf32, #tpu.memory_space<vmem>>, vector<4x1xf32>
    %cst_60 = arith.constant 9.99999974E-6 : f32
    %89 = vector.broadcast %cst_60 : f32 to vector<4x1xf32>
    %90 = arith.addf %87, %89 : vector<4x1xf32>
    %91 = math.rsqrt %90 : vector<4x1xf32>
    %92 = arith.mulf %88, %91 : vector<4x1xf32>
    %c0_61 = arith.constant 0 : index
    %c0_62 = arith.constant 0 : index
    %93 = vector.load %arg17[%c0_61, %c0_62] : memref<4x1xf32, #tpu.memory_space<vmem>>, vector<4x1xf32>
    %94 = arith.mulf %83, %92 : vector<4x1xf32>
    %95 = arith.subf %93, %94 : vector<4x1xf32>
    %96 = vector.broadcast %92 : vector<4x1xf32> to vector<4x32xf32>
    %97 = arith.mulf %2, %96 : vector<4x32xf32>
    %98 = vector.broadcast %95 : vector<4x1xf32> to vector<4x32xf32>
    %99 = arith.addf %97, %98 : vector<4x32xf32>
    %100 = vector.broadcast %92 : vector<4x1xf32> to vector<4x32xf32>
    %101 = arith.mulf %5, %100 : vector<4x32xf32>
    %102 = vector.broadcast %95 : vector<4x1xf32> to vector<4x32xf32>
    %103 = arith.addf %101, %102 : vector<4x32xf32>
    %104 = vector.broadcast %92 : vector<4x1xf32> to vector<4x32xf32>
    %105 = arith.mulf %8, %104 : vector<4x32xf32>
    %106 = vector.broadcast %95 : vector<4x1xf32> to vector<4x32xf32>
    %107 = arith.addf %105, %106 : vector<4x32xf32>
    %108 = vector.broadcast %92 : vector<4x1xf32> to vector<4x32xf32>
    %109 = arith.mulf %11, %108 : vector<4x32xf32>
    %110 = vector.broadcast %95 : vector<4x1xf32> to vector<4x32xf32>
    %111 = arith.addf %109, %110 : vector<4x32xf32>
    %112 = vector.broadcast %92 : vector<4x1xf32> to vector<4x64xf32>
    %113 = arith.mulf %14, %112 : vector<4x64xf32>
    %114 = vector.broadcast %95 : vector<4x1xf32> to vector<4x64xf32>
    %115 = arith.addf %113, %114 : vector<4x64xf32>
    %116 = vector.broadcast %92 : vector<4x1xf32> to vector<4x64xf32>
    %117 = arith.mulf %17, %116 : vector<4x64xf32>
    %118 = vector.broadcast %95 : vector<4x1xf32> to vector<4x64xf32>
    %119 = arith.addf %117, %118 : vector<4x64xf32>
    %120 = vector.broadcast %92 : vector<4x1xf32> to vector<4x64xf32>
    %121 = arith.mulf %20, %120 : vector<4x64xf32>
    %122 = vector.broadcast %95 : vector<4x1xf32> to vector<4x64xf32>
    %123 = arith.addf %121, %122 : vector<4x64xf32>
    %124 = vector.broadcast %92 : vector<4x1xf32> to vector<4x64xf32>
    %125 = arith.mulf %23, %124 : vector<4x64xf32>
    %126 = vector.broadcast %95 : vector<4x1xf32> to vector<4x64xf32>
    %127 = arith.addf %125, %126 : vector<4x64xf32>
    %cst_63 = arith.constant 0.000000e+00 : f32
    %128 = vector.broadcast %cst_63 : f32 to vector<4x32xf32>
    %129 = arith.maximumf %99, %128 : vector<4x32xf32>
    %130 = arith.truncf %129 : vector<4x32xf32> to vector<4x32xbf16>
    %c0_64 = arith.constant 0 : index
    %c0_65 = arith.constant 0 : index
    %131 = vector.load %arg18[%c0_64, %c0_65] : memref<4x32xbf16, #tpu.memory_space<vmem>>, vector<4x32xbf16>
    tpu.vector_store %arg18[%c0_64, %c0_65], %130 {strides = array<i32>} : memref<4x32xbf16, #tpu.memory_space<vmem>>, vector<4x32xbf16>,
    %cst_66 = arith.constant 0.000000e+00 : f32
    %132 = vector.broadcast %cst_66 : f32 to vector<4x32xf32>
    %133 = arith.maximumf %103, %132 : vector<4x32xf32>
    %134 = arith.truncf %133 : vector<4x32xf32> to vector<4x32xbf16>
    %c0_67 = arith.constant 0 : index
    %c0_68 = arith.constant 0 : index
    %135 = vector.load %arg19[%c0_67, %c0_68] : memref<4x32xbf16, #tpu.memory_space<vmem>>, vector<4x32xbf16>
    tpu.vector_store %arg19[%c0_67, %c0_68], %134 {strides = array<i32>} : memref<4x32xbf16, #tpu.memory_space<vmem>>, vector<4x32xbf16>,
    %cst_69 = arith.constant 0.000000e+00 : f32
    %136 = vector.broadcast %cst_69 : f32 to vector<4x32xf32>
    %137 = arith.maximumf %107, %136 : vector<4x32xf32>
    %138 = arith.truncf %137 : vector<4x32xf32> to vector<4x32xbf16>
    %c0_70 = arith.constant 0 : index
    %c0_71 = arith.constant 0 : index
    %139 = vector.load %arg20[%c0_70, %c0_71] : memref<4x32xbf16, #tpu.memory_space<vmem>>, vector<4x32xbf16>
    tpu.vector_store %arg20[%c0_70, %c0_71], %138 {strides = array<i32>} : memref<4x32xbf16, #tpu.memory_space<vmem>>, vector<4x32xbf16>,
    %cst_72 = arith.constant 0.000000e+00 : f32
    %140 = vector.broadcast %cst_72 : f32 to vector<4x32xf32>
    %141 = arith.maximumf %111, %140 : vector<4x32xf32>
    %142 = arith.truncf %141 : vector<4x32xf32> to vector<4x32xbf16>
    %c0_73 = arith.constant 0 : index
    %c0_74 = arith.constant 0 : index
    %143 = vector.load %arg21[%c0_73, %c0_74] : memref<4x32xbf16, #tpu.memory_space<vmem>>, vector<4x32xbf16>
    tpu.vector_store %arg21[%c0_73, %c0_74], %142 {strides = array<i32>} : memref<4x32xbf16, #tpu.memory_space<vmem>>, vector<4x32xbf16>,
    %cst_75 = arith.constant 0.000000e+00 : f32
    %144 = vector.broadcast %cst_75 : f32 to vector<4x64xf32>
    %145 = arith.maximumf %115, %144 : vector<4x64xf32>
    %146 = arith.truncf %145 : vector<4x64xf32> to vector<4x64xbf16>
    %c0_76 = arith.constant 0 : index
    %c0_77 = arith.constant 0 : index
    %147 = vector.load %arg22[%c0_76, %c0_77] : memref<4x64xbf16, #tpu.memory_space<vmem>>, vector<4x64xbf16>
    tpu.vector_store %arg22[%c0_76, %c0_77], %146 {strides = array<i32>} : memref<4x64xbf16, #tpu.memory_space<vmem>>, vector<4x64xbf16>,
    %cst_78 = arith.constant 0.000000e+00 : f32
    %148 = vector.broadcast %cst_78 : f32 to vector<4x64xf32>
    %149 = arith.maximumf %119, %148 : vector<4x64xf32>
    %150 = arith.truncf %149 : vector<4x64xf32> to vector<4x64xbf16>
    %c0_79 = arith.constant 0 : index
    %c0_80 = arith.constant 0 : index
    %151 = vector.load %arg23[%c0_79, %c0_80] : memref<4x64xbf16, #tpu.memory_space<vmem>>, vector<4x64xbf16>
    tpu.vector_store %arg23[%c0_79, %c0_80], %150 {strides = array<i32>} : memref<4x64xbf16, #tpu.memory_space<vmem>>, vector<4x64xbf16>,
    %cst_81 = arith.constant 0.000000e+00 : f32
    %152 = vector.broadcast %cst_81 : f32 to vector<4x64xf32>
    %153 = arith.maximumf %123, %152 : vector<4x64xf32>
    %154 = arith.truncf %153 : vector<4x64xf32> to vector<4x64xbf16>
    %c0_82 = arith.constant 0 : index
    %c0_83 = arith.constant 0 : index
    %155 = vector.load %arg24[%c0_82, %c0_83] : memref<4x64xbf16, #tpu.memory_space<vmem>>, vector<4x64xbf16>
    tpu.vector_store %arg24[%c0_82, %c0_83], %154 {strides = array<i32>} : memref<4x64xbf16, #tpu.memory_space<vmem>>, vector<4x64xbf16>,
    %cst_84 = arith.constant 0.000000e+00 : f32
    %156 = vector.broadcast %cst_84 : f32 to vector<4x64xf32>
    %157 = arith.maximumf %127, %156 : vector<4x64xf32>
    %158 = arith.truncf %157 : vector<4x64xf32> to vector<4x64xbf16>
    %c0_85 = arith.constant 0 : index
    %c0_86 = arith.constant 0 : index
    %159 = vector.load %arg25[%c0_85, %c0_86] : memref<4x64xbf16, #tpu.memory_space<vmem>>, vector<4x64xbf16>
    tpu.vector_store %arg25[%c0_85, %c0_86], %158 {strides = array<i32>} : memref<4x64xbf16, #tpu.memory_space<vmem>>, vector<4x64xbf16>,
    return
  }
}

module attributes {stable_mosaic.version = 11 : i64} {
  func.func @kernel(%arg0: memref<1x48xbf16, #tpu.memory_space<vmem>>, %arg1: memref<1x48xbf16, #tpu.memory_space<vmem>>, %arg2: memref<1x48xbf16, #tpu.memory_space<vmem>>, %arg3: memref<1x48xbf16, #tpu.memory_space<vmem>>, %arg4: memref<1x48xbf16, #tpu.memory_space<vmem>>, %arg5: memref<1x48xbf16, #tpu.memory_space<vmem>>, %arg6: memref<1x48xbf16, #tpu.memory_space<vmem>>, %arg7: memref<1x48xbf16, #tpu.memory_space<vmem>>, %arg8: memref<48x512xbf16, #tpu.memory_space<vmem>>, %arg9: memref<48x512xbf16, #tpu.memory_space<vmem>>, %arg10: memref<48x512xbf16, #tpu.memory_space<vmem>>, %arg11: memref<48x512xbf16, #tpu.memory_space<vmem>>, %arg12: memref<48x512xbf16, #tpu.memory_space<vmem>>, %arg13: memref<48x512xbf16, #tpu.memory_space<vmem>>, %arg14: memref<48x512xbf16, #tpu.memory_space<vmem>>, %arg15: memref<48x512xbf16, #tpu.memory_space<vmem>>, %arg16: memref<1x512xf32, #tpu.memory_space<vmem>>, %arg17: memref<1x512xf32, #tpu.memory_space<vmem>>, %arg18: memref<1x512xf32, #tpu.memory_space<vmem>>, %arg19: memref<1x512xf32, #tpu.memory_space<vmem>>, %arg20: memref<1x512xf32, #tpu.memory_space<vmem>>, %arg21: memref<1x512xf32, #tpu.memory_space<vmem>>, %arg22: memref<1x512xf32, #tpu.memory_space<vmem>>, %arg23: memref<1x512xf32, #tpu.memory_space<vmem>>) attributes {dimension_semantics = [], scalar_prefetch = 0 : i64, scratch_operands = 0 : i64, tpu.core_type = #tpu.core_type<tc>} {
    %c0 = arith.constant 0 : index
    %c0_0 = arith.constant 0 : index
    %0 = vector.load %arg0[%c0, %c0_0] : memref<1x48xbf16, #tpu.memory_space<vmem>>, vector<1x48xbf16>
    %c0_1 = arith.constant 0 : index
    %c0_2 = arith.constant 0 : index
    %1 = vector.load %arg8[%c0_1, %c0_2] : memref<48x512xbf16, #tpu.memory_space<vmem>>, vector<48x512xbf16>
    %cst = arith.constant dense<0.000000e+00> : vector<1x512xf32>
    %2 = tpu.matmul %0, %1, %cst {dimension_numbers = #tpu.dot_dimension_numbers<[1], [0], [0], [1], [0, 0, 1, 1], [], []>} : vector<1x48xbf16>, vector<48x512xbf16>, vector<1x512xf32> -> vector<1x512xf32>
    %c0_3 = arith.constant 0 : index
    %c0_4 = arith.constant 0 : index
    %3 = vector.load %arg1[%c0_3, %c0_4] : memref<1x48xbf16, #tpu.memory_space<vmem>>, vector<1x48xbf16>
    %c0_5 = arith.constant 0 : index
    %c0_6 = arith.constant 0 : index
    %4 = vector.load %arg9[%c0_5, %c0_6] : memref<48x512xbf16, #tpu.memory_space<vmem>>, vector<48x512xbf16>
    %cst_7 = arith.constant dense<0.000000e+00> : vector<1x512xf32>
    %5 = tpu.matmul %3, %4, %cst_7 {dimension_numbers = #tpu.dot_dimension_numbers<[1], [0], [0], [1], [0, 0, 1, 1], [], []>} : vector<1x48xbf16>, vector<48x512xbf16>, vector<1x512xf32> -> vector<1x512xf32>
    %c0_8 = arith.constant 0 : index
    %c0_9 = arith.constant 0 : index
    %6 = vector.load %arg2[%c0_8, %c0_9] : memref<1x48xbf16, #tpu.memory_space<vmem>>, vector<1x48xbf16>
    %c0_10 = arith.constant 0 : index
    %c0_11 = arith.constant 0 : index
    %7 = vector.load %arg10[%c0_10, %c0_11] : memref<48x512xbf16, #tpu.memory_space<vmem>>, vector<48x512xbf16>
    %cst_12 = arith.constant dense<0.000000e+00> : vector<1x512xf32>
    %8 = tpu.matmul %6, %7, %cst_12 {dimension_numbers = #tpu.dot_dimension_numbers<[1], [0], [0], [1], [0, 0, 1, 1], [], []>} : vector<1x48xbf16>, vector<48x512xbf16>, vector<1x512xf32> -> vector<1x512xf32>
    %c0_13 = arith.constant 0 : index
    %c0_14 = arith.constant 0 : index
    %9 = vector.load %arg3[%c0_13, %c0_14] : memref<1x48xbf16, #tpu.memory_space<vmem>>, vector<1x48xbf16>
    %c0_15 = arith.constant 0 : index
    %c0_16 = arith.constant 0 : index
    %10 = vector.load %arg11[%c0_15, %c0_16] : memref<48x512xbf16, #tpu.memory_space<vmem>>, vector<48x512xbf16>
    %cst_17 = arith.constant dense<0.000000e+00> : vector<1x512xf32>
    %11 = tpu.matmul %9, %10, %cst_17 {dimension_numbers = #tpu.dot_dimension_numbers<[1], [0], [0], [1], [0, 0, 1, 1], [], []>} : vector<1x48xbf16>, vector<48x512xbf16>, vector<1x512xf32> -> vector<1x512xf32>
    %c0_18 = arith.constant 0 : index
    %c0_19 = arith.constant 0 : index
    %12 = vector.load %arg4[%c0_18, %c0_19] : memref<1x48xbf16, #tpu.memory_space<vmem>>, vector<1x48xbf16>
    %c0_20 = arith.constant 0 : index
    %c0_21 = arith.constant 0 : index
    %13 = vector.load %arg12[%c0_20, %c0_21] : memref<48x512xbf16, #tpu.memory_space<vmem>>, vector<48x512xbf16>
    %cst_22 = arith.constant dense<0.000000e+00> : vector<1x512xf32>
    %14 = tpu.matmul %12, %13, %cst_22 {dimension_numbers = #tpu.dot_dimension_numbers<[1], [0], [0], [1], [0, 0, 1, 1], [], []>} : vector<1x48xbf16>, vector<48x512xbf16>, vector<1x512xf32> -> vector<1x512xf32>
    %c0_23 = arith.constant 0 : index
    %c0_24 = arith.constant 0 : index
    %15 = vector.load %arg5[%c0_23, %c0_24] : memref<1x48xbf16, #tpu.memory_space<vmem>>, vector<1x48xbf16>
    %c0_25 = arith.constant 0 : index
    %c0_26 = arith.constant 0 : index
    %16 = vector.load %arg13[%c0_25, %c0_26] : memref<48x512xbf16, #tpu.memory_space<vmem>>, vector<48x512xbf16>
    %cst_27 = arith.constant dense<0.000000e+00> : vector<1x512xf32>
    %17 = tpu.matmul %15, %16, %cst_27 {dimension_numbers = #tpu.dot_dimension_numbers<[1], [0], [0], [1], [0, 0, 1, 1], [], []>} : vector<1x48xbf16>, vector<48x512xbf16>, vector<1x512xf32> -> vector<1x512xf32>
    %c0_28 = arith.constant 0 : index
    %c0_29 = arith.constant 0 : index
    %18 = vector.load %arg6[%c0_28, %c0_29] : memref<1x48xbf16, #tpu.memory_space<vmem>>, vector<1x48xbf16>
    %c0_30 = arith.constant 0 : index
    %c0_31 = arith.constant 0 : index
    %19 = vector.load %arg14[%c0_30, %c0_31] : memref<48x512xbf16, #tpu.memory_space<vmem>>, vector<48x512xbf16>
    %cst_32 = arith.constant dense<0.000000e+00> : vector<1x512xf32>
    %20 = tpu.matmul %18, %19, %cst_32 {dimension_numbers = #tpu.dot_dimension_numbers<[1], [0], [0], [1], [0, 0, 1, 1], [], []>} : vector<1x48xbf16>, vector<48x512xbf16>, vector<1x512xf32> -> vector<1x512xf32>
    %c0_33 = arith.constant 0 : index
    %c0_34 = arith.constant 0 : index
    %21 = vector.load %arg7[%c0_33, %c0_34] : memref<1x48xbf16, #tpu.memory_space<vmem>>, vector<1x48xbf16>
    %c0_35 = arith.constant 0 : index
    %c0_36 = arith.constant 0 : index
    %22 = vector.load %arg15[%c0_35, %c0_36] : memref<48x512xbf16, #tpu.memory_space<vmem>>, vector<48x512xbf16>
    %cst_37 = arith.constant dense<0.000000e+00> : vector<1x512xf32>
    %23 = tpu.matmul %21, %22, %cst_37 {dimension_numbers = #tpu.dot_dimension_numbers<[1], [0], [0], [1], [0, 0, 1, 1], [], []>} : vector<1x48xbf16>, vector<48x512xbf16>, vector<1x512xf32> -> vector<1x512xf32>
    %24 = math.tanh %2 : vector<1x512xf32>
    %c0_38 = arith.constant 0 : index
    %c0_39 = arith.constant 0 : index
    %25 = vector.load %arg16[%c0_38, %c0_39] : memref<1x512xf32, #tpu.memory_space<vmem>>, vector<1x512xf32>
    tpu.vector_store %arg16[%c0_38, %c0_39], %24 {strides = array<i32>} : memref<1x512xf32, #tpu.memory_space<vmem>>, vector<1x512xf32>,
    %26 = math.tanh %5 : vector<1x512xf32>
    %c0_40 = arith.constant 0 : index
    %c0_41 = arith.constant 0 : index
    %27 = vector.load %arg17[%c0_40, %c0_41] : memref<1x512xf32, #tpu.memory_space<vmem>>, vector<1x512xf32>
    tpu.vector_store %arg17[%c0_40, %c0_41], %26 {strides = array<i32>} : memref<1x512xf32, #tpu.memory_space<vmem>>, vector<1x512xf32>,
    %28 = math.tanh %8 : vector<1x512xf32>
    %c0_42 = arith.constant 0 : index
    %c0_43 = arith.constant 0 : index
    %29 = vector.load %arg18[%c0_42, %c0_43] : memref<1x512xf32, #tpu.memory_space<vmem>>, vector<1x512xf32>
    tpu.vector_store %arg18[%c0_42, %c0_43], %28 {strides = array<i32>} : memref<1x512xf32, #tpu.memory_space<vmem>>, vector<1x512xf32>,
    %30 = math.tanh %11 : vector<1x512xf32>
    %c0_44 = arith.constant 0 : index
    %c0_45 = arith.constant 0 : index
    %31 = vector.load %arg19[%c0_44, %c0_45] : memref<1x512xf32, #tpu.memory_space<vmem>>, vector<1x512xf32>
    tpu.vector_store %arg19[%c0_44, %c0_45], %30 {strides = array<i32>} : memref<1x512xf32, #tpu.memory_space<vmem>>, vector<1x512xf32>,
    %32 = math.tanh %14 : vector<1x512xf32>
    %c0_46 = arith.constant 0 : index
    %c0_47 = arith.constant 0 : index
    %33 = vector.load %arg20[%c0_46, %c0_47] : memref<1x512xf32, #tpu.memory_space<vmem>>, vector<1x512xf32>
    tpu.vector_store %arg20[%c0_46, %c0_47], %32 {strides = array<i32>} : memref<1x512xf32, #tpu.memory_space<vmem>>, vector<1x512xf32>,
    %34 = math.tanh %17 : vector<1x512xf32>
    %c0_48 = arith.constant 0 : index
    %c0_49 = arith.constant 0 : index
    %35 = vector.load %arg21[%c0_48, %c0_49] : memref<1x512xf32, #tpu.memory_space<vmem>>, vector<1x512xf32>
    tpu.vector_store %arg21[%c0_48, %c0_49], %34 {strides = array<i32>} : memref<1x512xf32, #tpu.memory_space<vmem>>, vector<1x512xf32>,
    %36 = math.tanh %20 : vector<1x512xf32>
    %c0_50 = arith.constant 0 : index
    %c0_51 = arith.constant 0 : index
    %37 = vector.load %arg22[%c0_50, %c0_51] : memref<1x512xf32, #tpu.memory_space<vmem>>, vector<1x512xf32>
    tpu.vector_store %arg22[%c0_50, %c0_51], %36 {strides = array<i32>} : memref<1x512xf32, #tpu.memory_space<vmem>>, vector<1x512xf32>,
    %38 = math.tanh %23 : vector<1x512xf32>
    %c0_52 = arith.constant 0 : index
    %c0_53 = arith.constant 0 : index
    %39 = vector.load %arg23[%c0_52, %c0_53] : memref<1x512xf32, #tpu.memory_space<vmem>>, vector<1x512xf32>
    tpu.vector_store %arg23[%c0_52, %c0_53], %38 {strides = array<i32>} : memref<1x512xf32, #tpu.memory_space<vmem>>, vector<1x512xf32>,
    return
  }
}

module attributes {stable_mosaic.version = 11 : i64} {
  func.func @_gemm_act_kernel(%arg0: memref<8x128xbf16, #tpu.memory_space<vmem>>, %arg1: memref<128x4xbf16, #tpu.memory_space<vmem>>, %arg2: memref<8x4xf32, #tpu.memory_space<vmem>>) attributes {dimension_semantics = [], scalar_prefetch = 0 : i64, scratch_operands = 0 : i64, tpu.core_type = #tpu.core_type<tc>} {
    %c0 = arith.constant 0 : index
    %c0_0 = arith.constant 0 : index
    %0 = vector.load %arg0[%c0, %c0_0] : memref<8x128xbf16, #tpu.memory_space<vmem>>, vector<8x128xbf16>
    %c0_1 = arith.constant 0 : index
    %c0_2 = arith.constant 0 : index
    %1 = vector.load %arg1[%c0_1, %c0_2] : memref<128x4xbf16, #tpu.memory_space<vmem>>, vector<128x4xbf16>
    %cst = arith.constant dense<0.000000e+00> : vector<8x4xf32>
    %2 = tpu.matmul %0, %1, %cst {dimension_numbers = #tpu.dot_dimension_numbers<[1], [0], [0], [1], [0, 0, 1, 1], [], []>} : vector<8x128xbf16>, vector<128x4xbf16>, vector<8x4xf32> -> vector<8x4xf32>
    %c0_3 = arith.constant 0 : index
    %c0_4 = arith.constant 0 : index
    %3 = vector.load %arg2[%c0_3, %c0_4] : memref<8x4xf32, #tpu.memory_space<vmem>>, vector<8x4xf32>
    tpu.vector_store %arg2[%c0_3, %c0_4], %2 {strides = array<i32>} : memref<8x4xf32, #tpu.memory_space<vmem>>, vector<8x4xf32>,
    return
  }
}

</mosaic_0001>

<bundles_post_ra>
// kernel: _lambda_.8
= control target key start
LH: loop header
LB: loop body
LE: loop exit
PB: predicated region body
PF: predicated region fallthrough
CT: control target
= control target key end

     0   :  { %v250_v1 = vmov 0   ;;  %vm85_vm0 = vcmask 392192   ;;  %v251_v14 = vmov 1983009808   ;;  %v196_v16 = vlaneseq  ;;  %s309_s1 = inlined_call_operand.vmem [shape: bf16[48,512], index: 1, kind: input, shape index: {}]   ;;  %s310_s0 = inlined_call_operand.vmem [shape: bf16[4,48], index: 0, kind: input, shape index: {}]   ;;  %s311_s2 = inlined_call_operand.vmem [shape: bf16[4,512], index: 2, kind: output, shape index: {}]  }
   0x1   :  { %v232_v0 = vld [vmem:[%s309_s1 + $0x4] ss:$16 sps:$4 sm:$0xff]   ;;  %121 = vmatprep.mubr.bf16.mxu0 %v250_v1  ;;  %162 = vmatprep.mubr.bf16.mxu1 %v250_v1  ;;  %v234_v2 = vld [vmem:[%s309_s1 + $0xc] ss:$16 sps:$4 sm:$0xff]   ;;  %v236_v3 = vld [vmem:[%s309_s1] ss:$16 sps:$4 sm:$0xff]   ;;  %v194_v15 = vunpack.c.l.s4 %v251_v14 }
   0x2   :  { %89 = vmatprep.subr.bf16.mxu0 %v232_v0  ;;  %v237_v4 = vld [vmem:[%s309_s1 + $0x8] ss:$16 sps:$4 sm:$0xff]   ;;  %130 = vmatprep.subr.bf16.mxu1 %v234_v2  ;;  %v238_v5 = vld [vmem:[%s309_s1 + $0x24] ss:$16 sps:$4 sm:$0xff]   ;;  %v240_v6 = vld [vmem:[%s309_s1 + $0x2c] ss:$16 sps:$4 sm:$0xff]  }
   0x3   :  { %90 = vmatpush1.bf16.msra.mxu0 %v236_v3  ;;  %131 = vmatpush1.bf16.msra.mxu1 %v237_v4  ;;  %v242_v7 = vld [vmem:[%s309_s1 + $0x20] ss:$16 sps:$4 sm:$0xff]   ;;  %v243_v8 = vld [vmem:[%s309_s1 + $0x28] ss:$16 sps:$4 sm:$0xff]   ;;  %v244_v9 = vld [vmem:[%s309_s1 + $0x44] ss:$16 sps:$4 sm:$0xff]   ;;  %v195_v19 = vunpack.c.0.s8 %v194_v15 }
   0x4   :  { %91 = vmatprep.subr.bf16.mxu0 %v238_v5  ;;  %132 = vmatprep.subr.bf16.mxu1 %v240_v6  ;;  %v246_v10 = vld [vmem:[%s309_s1 + $0x4c] ss:$16 sps:$4 sm:$0xff]   ;;  %v248_v11 = vld [vmem:[%s309_s1 + $0x40] ss:$16 sps:$4 sm:$0xff]   ;;  %v249_v12 = vld [vmem:[%s309_s1 + $0x48] ss:$16 sps:$4 sm:$0xff]  }
   0x5   :  { %v12_v13 = vld [vmem:[%s310_s0] sm:$0x3]  ;;  %v197_v20 = vshrl.u32 %v196_v16, 7 }
   0x7   :  { %92 = vmatpush1.bf16.msra.mxu0 %v242_v7  ;;  %133 = vmatpush1.bf16.msra.mxu1 %v243_v8  ;;  %v198_v30 = vsub.s32 %v195_v19, %v197_v20 }
   0x8   :  { %93 = vmatprep.subr.bf16.mxu0 %v244_v9  ;;  %134 = vmatprep.subr.bf16.mxu1 %v246_v10 }
   0xb   :  { %94 = vmatpush1.bf16.msra.mxu0 %v248_v11  ;;  %135 = vmatpush1.bf16.msra.mxu1 %v249_v12 }
   0xe   :  { %226 = vmatmul.mubr.msk.bf16.vlgmr.msra.gmra.mrb[0].mxu0 %vm85_vm0, %v12_v13  ;;  %227 = vmatmul.mubr.msk.bf16.vlgmr.msra.gmra.mrb[0].mxu1 %vm85_vm0, %v12_v13 }
  0xe1   :  { %v123_v17 = vpop.f32.mrb[0].mxu0  ;;  %v164_v18 = vpop.f32.mrb[0].mxu1 }
  0xe2   :  { %vm171_vm1 = vcmp.gt.f32.partialorder %v123_v17, 0.0  ;;  %v175_v21 = vmul.f32 0.2, %v123_v17  ;;  %vm173_vm2 = vcmp.gt.f32.partialorder %v164_v18, 0.0  ;;  %v177_v22 = vmul.f32 0.2, %v164_v18 }
  0xe3   :  { %v125_v23 = vpop.f32.mrb[1].mxu0  ;;  %v166_v24 = vpop.f32.mrb[1].mxu1 }
  0xe4   :  { %v179_v25 = vsel %vm171_vm1, %v123_v17, %v175_v21  ;;  %vm172_vm3 = vcmp.gt.f32.partialorder %v125_v23, 0.0  ;;  %v176_v26 = vmul.f32 0.2, %v125_v23  ;;  %v127_v27 = vpop.f32.mrb[2].mxu0  ;;  %v168_v28 = vpop.f32.mrb[2].mxu1  ;;  %v181_v29 = vsel %vm173_vm2, %v164_v18, %v177_v22 }
  0xe5   :  { %vm174_vm4 = vcmp.gt.f32.partialorder %v166_v24, 0.0  ;;  %v178_v31 = vmul.f32 0.2, %v166_v24  ;;  %v128_v32 = vpop.f32.mrb[3].mxu0  ;;  %v169_v33 = vpop.f32.mrb[3].mxu1 }
  0xe6   :  { %v180_v34 = vsel %vm172_vm3, %v125_v23, %v176_v26 }
  0xe7   :  { %v228_v35 = vpack.c.bf16 %v180_v34, %v179_v25  ;;  %v182_v36 = vsel %vm174_vm4, %v166_v24, %v178_v31 }
  0xe8   :  { %v229_v37 = vpack.c.bf16 %v182_v36, %v181_v29 }
  0xe9   :  { %v199_v38 = vrot.slane %v228_v35, %v198_v30 }
  0xea   :  { %v206_v39 = vrot.slane %v229_v37, %v198_v30 }
  0xec   :  { %v207_v40 = vcombine.low %v199_v38, %v206_v39 }
  0xee   :  { %209 = vst [vmem:[%s311_s2] sm:$0xff] %v207_v40 }

// kernel: _lambda_.9
= control target key start
LH: loop header
LB: loop body
LE: loop exit
PB: predicated region body
PF: predicated region fallthrough
CT: control target
= control target key end

     0   :  { %v237_v0 = vmov 0   ;;  %vm121_vm0 = vcmask 523264   ;;  %vm197_vm2 = vcmask 519168   ;;  %s314_s1 = inlined_call_operand.vmem [shape: bf16[192,64], index: 1, kind: input, shape index: {}]   ;;  %s315_s0 = inlined_call_operand.vmem [shape: bf16[8,192], index: 0, kind: input, shape index: {}]   ;;  %s316_s2 = inlined_call_operand.vmem [shape: f32[8,1], index: 2, kind: input, shape index: {}]   ;;  %s317_s3 = inlined_call_operand.vmem [shape: f32[8,1], index: 3, kind: input, shape index: {}]   ;;  %s318_s4 = inlined_call_operand.vmem [shape: bf16[8,64], index: 4, kind: output, shape index: {}]  }
   0x1   :  { %125 = vmatprep.subr.bf16.mxu0 %v237_v0  ;;  %v221_v1 = vld [vmem:[%s314_s1] sm:$0xff]   ;;  %219 = vset.pattern.permute.xlu1 %v237_v0  ;;  %v222_v2 = vld [vmem:[%s314_s1 + $0x8] sm:$0xff]   ;;  %v223_v3 = vld [vmem:[%s314_s1 + $0x10] sm:$0xff]  }
   0x2   :  { %220 = vset.pattern.permute.xlu0 %v237_v0  ;;  %126 = vmatpush1.bf16.msra.mxu0 %v221_v1  ;;  %v224_v4 = vld [vmem:[%s314_s1 + $0x18] sm:$0xff]   ;;  %v18_v5 = vld [vmem:[%s315_s0] sm:$0xff]  ;;  %v226_v8 = vld [vmem:[%s314_s1 + $0x28] sm:$0xff]  }
   0x3   :  { %127 = vmatprep.subr.bf16.mxu0 %v237_v0  ;;  %v204_v6 = vcombine.high %v18_v5, %v18_v5  ;;  %v225_v7 = vld [vmem:[%s314_s1 + $0x20] sm:$0xff]   ;;  %v227_v9 = vld [vmem:[%s314_s1 + $0x30] sm:$0xff]   ;;  %v228_v10 = vld [vmem:[%s314_s1 + $0x38] sm:$0xff]   ;;  %v203_v15 = vcombine.low %v18_v5, %v18_v5 }
   0x4   :  { %v229_v11 = vld [vmem:[%s314_s1 + $0x40] sm:$0xff]   ;;  %v230_v12 = vld [vmem:[%s314_s1 + $0x48] sm:$0xff]   ;;  %v231_v13 = vld [vmem:[%s314_s1 + $0x50] sm:$0xff]  }
   0x5   :  { %217 = vmatprep.mubr.msk.bf16.mxu0 %vm121_vm0, %v204_v6  ;;  %v232_v14 = vld [vmem:[%s314_s1 + $0x58] sm:$0xff]   ;;  %v176_v29 = vld [vmem:[%s316_s2] sm:$0xff] }
   0x6   :  { %128 = vmatpush1.bf16.msra.mxu0 %v222_v2  ;;  %v186_v32 = vld [vmem:[%s317_s3] sm:$0xff] }
   0x7   :  { %129 = vmatprep.subr.bf16.mxu0 %v237_v0 }
   0xa   :  { %130 = vmatpush1.bf16.msra.mxu0 %v223_v3 }
   0xb   :  { %131 = vmatprep.subr.bf16.mxu0 %v237_v0 }
   0xe   :  { %132 = vmatpush1.bf16.msra.mxu0 %v224_v4 }
   0xf   :  { %133 = vmatprep.subr.bf16.mxu0 %v237_v0 }
  0x12   :  { %134 = vmatpush1.bf16.msra.mxu0 %v225_v7 }
  0x13   :  { %135 = vmatprep.subr.bf16.mxu0 %v237_v0 }
  0x16   :  { %136 = vmatpush1.bf16.msra.mxu0 %v226_v8 }
  0x17   :  { %137 = vmatprep.subr.bf16.mxu0 %v237_v0 }
  0x1a   :  { %138 = vmatpush1.bf16.msra.mxu0 %v227_v9 }
  0x1b   :  { %139 = vmatprep.subr.bf16.mxu0 %v237_v0 }
  0x1e   :  { %140 = vmatpush1.bf16.msra.mxu0 %v228_v10 }
  0x1f   :  { %141 = vmatprep.subr.bf16.mxu0 %v237_v0 }
  0x22   :  { %142 = vmatpush1.bf16.msra.mxu0 %v229_v11 }
  0x23   :  { %143 = vmatprep.subr.bf16.mxu0 %v237_v0 }
  0x26   :  { %144 = vmatpush1.bf16.msra.mxu0 %v230_v12 }
  0x27   :  { %145 = vmatprep.subr.bf16.mxu0 %v237_v0 }
  0x2a   :  { %146 = vmatpush1.bf16.msra.mxu0 %v231_v13 }
  0x2b   :  { %147 = vmatprep.subr.bf16.mxu0 %v237_v0 }
  0x2e   :  { %148 = vmatpush1.bf16.msra.mxu0 %v232_v14 }
  0x31   :  { %158 = vmatmul.mubr.bf16.vlgmr.msra.gmra.mrb[0].mxu0 %v203_v15 }
 0x104   :  { %v159_v16 = vpop.f32.mrb[0].mxu0 }
 0x105   :  { %v161_v17 = vpop.f32.mrb[1].mxu0  ;;  %v165_v18 = vsel %vm121_vm0, %v159_v16, 0.0 }
 0x106   :  { %166 = vadd.xlane.f32.xlu0 %v165_v18  ;;  %v162_v19 = vpop.f32.mrb[2].mxu0 }
 0x107   :  { %v163_v20 = vpop.f32.mrb[3].mxu0 }
 0x193   :  { %v167_v21 = vpop.xlane.xlu0 %166 }
 0x194   :  { %v169_v22 = vmul.f32 0.015625, %v167_v21 }
 0x196   :  { %v170_v23 = vsub.f32 %v159_v16, %v169_v22 }
 0x198   :  { %v171_v24 = vmul.f32 %v170_v23, %v170_v23 }
 0x19a   :  { %v172_v25 = vsel %vm121_vm0, %v171_v24, 0.0 }
 0x19b   :  { %173 = vadd.xlane.f32.xlu0 %v172_v25 }
 0x228   :  { %v174_v26 = vpop.xlane.xlu0 %173 }
 0x229   :  { %v175_v27 = vmul.f32 0.015625, %v174_v26 }
 0x22b   :  { %v177_v28 = vadd.f32 1e-05, %v175_v27 }
 0x22d   :  { %235 = vrsqrt.f32 %v177_v28 }
 0x237   :  { %v236_v30 = vpop.eup %235 }
 0x238   :  { %v179_v31 = vmul.f32 %v236_v30, %v176_v29 }
 0x23a   :  { %182 = vperm.xlu1 %219, %v179_v31  }
 0x23e   :  { %189 = vperm.xlu1 %219, %v186_v32  }
 0x2b9   :  { %v183_v33 = vpop.permute.xlu1 %182 }
 0x2ba   :  { %v185_v34 = vmul.f32 %v183_v33, %v170_v23 }
 0x2bd   :  { %v190_v35 = vpop.permute.xlu1 %189 }
 0x2be   :  { %v192_v36 = vadd.f32 %v190_v35, %v185_v34 }
 0x2c0   :  { %vm193_vm1 = vcmp.gt.f32.partialorder %v192_v36, 0.0  ;;  %v194_v37 = vmul.f32 0.2, %v192_v36 }
 0x2c2   :  { %v195_v38 = vsel %vm193_vm1, %v192_v36, %v194_v37 }
 0x2c3   :  { %v196_v39 = vpack.c.bf16 %v195_v38, %v195_v38 }
 0x2c5   :  { %198 = vst.msk [vmem:[%s318_s4] sm:$0xf] %vm197_vm2, %v196_v39 }

// kernel: _lambda_.10
= control target key start
LH: loop header
LB: loop body
LE: loop exit
PB: predicated region body
PF: predicated region fallthrough
CT: control target
= control target key end

     0   :  { %v1644_v0 = vmov 0.0   ;;  %vm1645_vm0 = vmmov 0   ;;  %vm193_vm1 = vcmask 64512   ;;  %vm134_vm2 = vcmask 31744   ;;  %s2056_s1 = inlined_call_operand.vmem [shape: bf16[128,4], index: 1, kind: input, shape index: {}]   ;;  %s2057_s0 = inlined_call_operand.vmem [shape: bf16[8,128], index: 0, kind: input, shape index: {}]   ;;  %s2058_s2 = inlined_call_operand.vmem [shape: bf16[128,8], index: 2, kind: input, shape index: {}]   ;;  %s2059_s7 = inlined_call_operand.vmem [shape: f32[8,4], index: 7, kind: output, shape index: {0}]   ;;  %s2060_s3 = inlined_call_operand.vmem [shape: f32[8,128], index: 3, kind: input, shape index: {}]   ;;  %s2061_s4 = inlined_call_operand.vmem [shape: f32[128,8], index: 4, kind: input, shape index: {}]   ;;  %s2062_s5 = inlined_call_operand.vmem [shape: f32[8,1], index: 5, kind: input, shape index: {}]   ;;  %s2063_s6 = inlined_call_operand.vmem [shape: f32[8,1], index: 6, kind: input, shape index: {}]   ;;  %s2064_s8 = inlined_call_operand.vmem [shape: bf16[128,4], index: 8, kind: output, shape index: {1}]  }
   0x1   :  { %1409 = vmatprep.subr.bf16.mxu0 %v1644_v0  ;;  %v1626_v1 = vld [vmem:[%s2056_s1] sm:$0xff]   ;;  %1425 = vmatprep.mubr.msk.bf16.mxu0 %vm1645_vm0, %v1644_v0  ;;  %v1627_v2 = vld [vmem:[%s2056_s1 + $0x8] sm:$0xff]   ;;  %v1628_v3 = vld [vmem:[%s2056_s1 + $0x10] sm:$0xff]   ;;  %vm218_vm3 = vcmask 1043456   ;;  %v1646_v63 = vmov 0.0|0.0   ;;  %vm1210_vm4 = vcmask 27648  }
   0x2   :  { %1410 = vmatpush3.bf16.msra.mxu0 %v1626_v1  ;;  %v1629_v4 = vld [vmem:[%s2056_s1 + $0x18] sm:$0xff]   ;;  %v1630_v5 = vld [vmem:[%s2056_s1 + $0x20] sm:$0xff]   ;;  %v1631_v6 = vld [vmem:[%s2056_s1 + $0x28] sm:$0xff]  }
   0x3   :  { %1411 = vmatprep.subr.bf16.mxu0 %v1644_v0  ;;  %v1632_v7 = vld [vmem:[%s2056_s1 + $0x30] sm:$0xff]   ;;  %v1633_v8 = vld [vmem:[%s2056_s1 + $0x38] sm:$0xff]   ;;  %v29_v9 = vld [vmem:[%s2057_s0] sm:$0xf] }
   0x4   :  { %v1634_v10 = vld [vmem:[%s2058_s2] sm:$0xff]   ;;  %v1635_v17 = vld [vmem:[%s2058_s2 + $0x8] sm:$0xff]   ;;  %v1636_v18 = vld [vmem:[%s2058_s2 + $0x10] sm:$0xff]  }
   0x5   :  { %1431 = vmatprep.mubr.msk.bf16.mxu1 %vm193_vm1, %v1634_v10  ;;  %v1637_v19 = vld [vmem:[%s2058_s2 + $0x18] sm:$0xff]   ;;  %v1638_v20 = vld [vmem:[%s2058_s2 + $0x20] sm:$0xff]   ;;  %v1639_v21 = vld [vmem:[%s2058_s2 + $0x28] sm:$0xff]  }
   0x6   :  { %1412 = vmatpush3.bf16.msra.mxu0 %v1627_v2  ;;  %v1640_v22 = vld [vmem:[%s2058_s2 + $0x30] sm:$0xff]   ;;  %v1641_v23 = vld [vmem:[%s2058_s2 + $0x38] sm:$0xff]  }
   0x7   :  { %1413 = vmatprep.subr.bf16.mxu0 %v1644_v0 }
   0xa   :  { %1414 = vmatpush3.bf16.msra.mxu0 %v1628_v3 }
   0xb   :  { %1415 = vmatprep.subr.bf16.mxu0 %v1644_v0 }
   0xe   :  { %1416 = vmatpush3.bf16.msra.mxu0 %v1629_v4 }
   0xf   :  { %1417 = vmatprep.subr.bf16.mxu0 %v1644_v0 }
  0x12   :  { %1418 = vmatpush3.bf16.msra.mxu0 %v1630_v5 }
  0x13   :  { %1419 = vmatprep.subr.bf16.mxu0 %v1644_v0 }
  0x16   :  { %1420 = vmatpush3.bf16.msra.mxu0 %v1631_v6 }
  0x17   :  { %1421 = vmatprep.subr.bf16.mxu0 %v1644_v0 }
  0x1a   :  { %1422 = vmatpush3.bf16.msra.mxu0 %v1632_v7 }
  0x1b   :  { %1423 = vmatprep.subr.bf16.mxu0 %v1644_v0 }
  0x1e   :  { %1424 = vmatpush3.bf16.msra.mxu0 %v1633_v8 }
  0x1f   :  { %1593 = vmatprep.subr.bf16.mxu0 %v1646_v63 }
  0x21   :  { %1426 = vmatmul.mubr.bf16.vlgmr.msra.gmra.mrb[0].mxu0 %v29_v9 }
  0x22   :  { %1514 = vmatprep.mubr.msk.f32.mxu0 %vm1645_vm0, %v1644_v0 }
  0xf4   :  { %v128_v11 = vpop.f32.mrb[0].mxu0 }
  0xf5   :  { %135 = vst.msk [vmem:[%s2059_s7] sm:$0xff] %vm134_vm2, %v128_v11  ;;  %v1427_v12 = vpop.f32.mrb[1].mxu0  ;;  %v152_v13 = vpack.c.bf16 %v128_v11, %v128_v11 }
  0xf6   :  { %v131_v14 = vpop.f32.mrb[2].mxu0 }
  0xf7   :  { %v1428_v15 = vpop.f32.mrb[3].mxu0  ;;  %1619 = vmatprep.subr.msk.bf16.mxu1 %vm218_vm3, %v152_v13  ;;  %v220_v16 = vsel %vm218_vm3, %v152_v13, 0 }
  0xf8   :  { %1430 = vmatpush3.bf16.msra.mxu1 %v220_v16 }
  0xf9   :  { %1569 = vmatprep.subr.bf16.mxu1 %v1646_v63 }
  0xfb   :  { %1432 = vmatmul.mubr.msk.bf16.vlgmr.msra.gmra.mrb[0].mxu1 %vm193_vm1, %v1635_v17 }
  0xfc   :  { %1435 = vmatprep.mubr.msk.bf16.mxu1 %vm193_vm1, %v1636_v18 }
 0x103   :  { %1436 = vmatmul.mubr.msk.bf16.gmra.mrb[4].mxu1 %vm193_vm1, %v1637_v19 }
 0x104   :  { %1439 = vmatprep.mubr.msk.bf16.mxu1 %vm193_vm1, %v1638_v20 }
 0x10b   :  { %1440 = vmatmul.mubr.msk.bf16.gmra.mrb[8].mxu1 %vm193_vm1, %v1639_v21 }
 0x10c   :  { %1443 = vmatprep.mubr.msk.bf16.mxu1 %vm193_vm1, %v1640_v22 }
 0x113   :  { %1444 = vmatmul.mubr.msk.bf16.gmra.mrb[12].mxu1 %vm193_vm1, %v1641_v23 }
 0x114   :  { %1479 = vmatprep.mubr.msk.f32.mxu1 %vm1645_vm0, %v1644_v0 }
 0x1ce   :  { %v1759_v24 = vpop.f32.mrb[0].mxu1 }
 0x1cf   :  { %v1761_v25 = vpop.f32.mrb[1].mxu1  ;;  %v325_v26 = vsel %vm134_vm2, %v1759_v24, 0.0  ;;  %v369_v32 = vmul.f32 %v1759_v24, %v1759_v24 }
 0x1d0   :  { %326 = vadd.xlane.f32.xlu0 %v325_v26  ;;  %v1765_v27 = vpop.f32.mrb[2].mxu1  ;;  %v367_v30 = vmul.f32 %v1761_v25, %v1761_v25  ;;  %v319_v31 = vsel %vm134_vm2, %v1761_v25, 0.0 }
 0x1d1   :  { %v1767_v28 = vpop.f32.mrb[3].mxu1  ;;  %v328_v29 = vsel %vm134_vm2, %v1765_v27, 0.0  ;;  %v370_v34 = vmul.f32 %v1765_v27, %v1765_v27  ;;  %v389_v36 = vsel %vm134_vm2, %v369_v32, 0.0 }
 0x1d2   :  { %329 = vadd.xlane.f32.xlu1 %v328_v29  ;;  %v383_v33 = vsel %vm134_vm2, %v367_v30, 0.0  ;;  %v368_v40 = vmul.f32 %v1767_v28, %v1767_v28  ;;  %v322_v42 = vsel %vm134_vm2, %v1767_v28, 0.0 }
 0x1d3   :  { %v392_v39 = vsel %vm134_vm2, %v370_v34, 0.0 }
 0x1d4   :  { %320 = vadd.xlane.f32.xlu0 %v319_v31  ;;  %v386_v43 = vsel %vm134_vm2, %v368_v40, 0.0 }
 0x1d6   :  { %384 = vadd.xlane.f32.xlu1 %v383_v33  ;;  %v1780_v35 = vpop.f32.mrb[4].mxu1 }
 0x1d7   :  { %v1783_v37 = vpop.f32.mrb[5].mxu1  ;;  %v337_v44 = vsel %vm134_vm2, %v1780_v35, 0.0  ;;  %v373_v51 = vmul.f32 %v1780_v35, %v1780_v35 }
 0x1d8   :  { %390 = vadd.xlane.f32.xlu0 %v389_v36  ;;  %v1785_v38 = vpop.f32.mrb[6].mxu1  ;;  %v331_v50 = vsel %vm134_vm2, %v1783_v37, 0.0  ;;  %v371_v56 = vmul.f32 %v1783_v37, %v1783_v37 }
 0x1d9   :  { %v1790_v41 = vpop.f32.mrb[7].mxu1  ;;  %v340_v48 = vsel %vm134_vm2, %v1785_v38, 0.0  ;;  %v374_v53 = vmul.f32 %v1785_v38, %v1785_v38  ;;  %v401_v55 = vsel %vm134_vm2, %v373_v51, 0.0 }
 0x1da   :  { %393 = vadd.xlane.f32.xlu1 %v392_v39  ;;  %v334_v52 = vsel %vm134_vm2, %v1790_v41, 0.0  ;;  %v372_v60 = vmul.f32 %v1790_v41, %v1790_v41  ;;  %v395_v62 = vsel %vm134_vm2, %v371_v56, 0.0 }
 0x1db   :  { %v404_v59 = vsel %vm134_vm2, %v374_v53, 0.0 }
 0x1dc   :  { %323 = vadd.xlane.f32.xlu0 %v322_v42  ;;  %v398_v0 = vsel %vm134_vm2, %v372_v60, 0.0 }
 0x1de   :  { %387 = vadd.xlane.f32.xlu1 %v386_v43  ;;  %v1797_v45 = vpop.f32.mrb[8].mxu1 }
 0x1df   :  { %v1799_v46 = vpop.f32.mrb[9].mxu1  ;;  %v349_v1 = vsel %vm134_vm2, %v1797_v45, 0.0  ;;  %v377_v4 = vmul.f32 %v1797_v45, %v1797_v45 }
 0x1e0   :  { %338 = vadd.xlane.f32.xlu0 %v337_v44  ;;  %v1801_v47 = vpop.f32.mrb[10].mxu1  ;;  %v343_v3 = vsel %vm134_vm2, %v1799_v46, 0.0  ;;  %v375_v8 = vmul.f32 %v1799_v46, %v1799_v46 }
 0x1e1   :  { %v1805_v49 = vpop.f32.mrb[11].mxu1  ;;  %v352_v2 = vsel %vm134_vm2, %v1801_v47, 0.0  ;;  %v378_v6 = vmul.f32 %v1801_v47, %v1801_v47  ;;  %v413_v7 = vsel %vm134_vm2, %v377_v4, 0.0 }
 0x1e2   :  { %341 = vadd.xlane.f32.xlu1 %v340_v48  ;;  %v346_v5 = vsel %vm134_vm2, %v1805_v49, 0.0  ;;  %v376_v10 = vmul.f32 %v1805_v49, %v1805_v49  ;;  %v407_v11 = vsel %vm134_vm2, %v375_v8, 0.0 }
 0x1e3   :  { %v416_v9 = vsel %vm134_vm2, %v378_v6, 0.0 }
 0x1e4   :  { %332 = vadd.xlane.f32.xlu0 %v331_v50  ;;  %v410_v12 = vsel %vm134_vm2, %v376_v10, 0.0 }
 0x1e6   :  { %335 = vadd.xlane.f32.xlu1 %v334_v52  ;;  %v1815_v54 = vpop.f32.mrb[12].mxu1 }
 0x1e7   :  { %v1820_v57 = vpop.f32.mrb[13].mxu1  ;;  %v361_v13 = vsel %vm134_vm2, %v1815_v54, 0.0  ;;  %v381_v20 = vmul.f32 %v1815_v54, %v1815_v54 }
 0x1e8   :  { %402 = vadd.xlane.f32.xlu0 %v401_v55  ;;  %v1822_v58 = vpop.f32.mrb[14].mxu1  ;;  %v355_v15 = vsel %vm134_vm2, %v1820_v57, 0.0  ;;  %v379_v16 = vmul.f32 %v1820_v57, %v1820_v57 }
 0x1e9   :  { %v1827_v61 = vpop.f32.mrb[15].mxu1  ;;  %v364_v14 = vsel %vm134_vm2, %v1822_v58, 0.0  ;;  %v382_v22 = vmul.f32 %v1822_v58, %v1822_v58  ;;  %v425_v23 = vsel %vm134_vm2, %v381_v20, 0.0 }
 0x1ea   :  { %405 = vadd.xlane.f32.xlu1 %v404_v59  ;;  %v358_v17 = vsel %vm134_vm2, %v1827_v61, 0.0  ;;  %v380_v18 = vmul.f32 %v1827_v61, %v1827_v61  ;;  %v419_v19 = vsel %vm134_vm2, %v379_v16, 0.0 }
 0x1eb   :  { %v428_v26 = vsel %vm134_vm2, %v382_v22, 0.0 }
 0x1ec   :  { %396 = vadd.xlane.f32.xlu0 %v395_v62  ;;  %v422_v21 = vsel %vm134_vm2, %v380_v18, 0.0 }
 0x1ee   :  { %399 = vadd.xlane.f32.xlu1 %v398_v0 }
 0x1f0   :  { %350 = vadd.xlane.f32.xlu0 %v349_v1 }
 0x1f2   :  { %353 = vadd.xlane.f32.xlu1 %v352_v2 }
 0x1f4   :  { %344 = vadd.xlane.f32.xlu0 %v343_v3 }
 0x1f6   :  { %347 = vadd.xlane.f32.xlu1 %v346_v5 }
 0x1f8   :  { %414 = vadd.xlane.f32.xlu0 %v413_v7 }
 0x1fa   :  { %417 = vadd.xlane.f32.xlu1 %v416_v9 }
 0x1fc   :  { %408 = vadd.xlane.f32.xlu0 %v407_v11 }
 0x1fe   :  { %411 = vadd.xlane.f32.xlu1 %v410_v12 }
 0x200   :  { %362 = vadd.xlane.f32.xlu0 %v361_v13 }
 0x202   :  { %365 = vadd.xlane.f32.xlu1 %v364_v14 }
 0x204   :  { %356 = vadd.xlane.f32.xlu0 %v355_v15 }
 0x206   :  { %359 = vadd.xlane.f32.xlu1 %v358_v17 }
 0x208   :  { %420 = vadd.xlane.f32.xlu0 %v419_v19 }
 0x20a   :  { %423 = vadd.xlane.f32.xlu1 %v422_v21 }
 0x20c   :  { %426 = vadd.xlane.f32.xlu0 %v425_v23  ;;  %v431_v23 = vld [vmem:[%s2060_s3] sm:$0xff] }
 0x20e   :  { %429 = vadd.xlane.f32.xlu1 %v428_v26 }
 0x25d   :  { %v327_v29 = vpop.xlane.xlu0 %326 }
 0x25f   :  { %v330_v30 = vpop.xlane.xlu1 %329 }
 0x260   :  { %v1573_v44 = vpack.c.bf16 %v330_v30, %v327_v29 }
 0x261   :  { %v321_v31 = vpop.xlane.xlu0 %320 }
 0x263   :  { %v385_v32 = vpop.xlane.xlu1 %384 }
 0x265   :  { %v391_v33 = vpop.xlane.xlu0 %390 }
 0x267   :  { %v394_v34 = vpop.xlane.xlu1 %393 }
 0x268   :  { %v1597_v50 = vpack.c.bf16 %v394_v34, %v391_v33 }
 0x269   :  { %v324_v36 = vpop.xlane.xlu0 %323 }
 0x26a   :  { %v1570_v39 = vpack.c.bf16 %v324_v36, %v321_v31  ;;  %v584_v31 = vld [vmem:[%s2061_s4] sm:$0xff] }
 0x26b   :  { %v388_v40 = vpop.xlane.xlu1 %387 }
 0x26c   :  { %v1594_v42 = vpack.c.bf16 %v388_v40, %v385_v32  ;;  %1571 = vmatpush3.bf16.msra.mxu1 %v1570_v39  ;;  %v1647_v32 = vmov 0  }
 0x26d   :  { %v339_v43 = vpop.xlane.xlu0 %338  ;;  %1572 = vmatprep.subr.bf16.mxu1 %v1646_v63  ;;  %1624 = vset.pattern.permute.xlu1 %v1647_v32 }
 0x26e   :  { %1595 = vmatpush3.bf16.msra.mxu0 %v1594_v42  ;;  %1625 = vset.pattern.permute.xlu0 %v1647_v32 }
 0x26f   :  { %v342_v48 = vpop.xlane.xlu1 %341  ;;  %1596 = vmatprep.subr.bf16.mxu0 %v1646_v63 }
 0x270   :  { %1574 = vmatpush3.bf16.msra.mxu1 %v1573_v44  ;;  %v1579_v59 = vpack.c.bf16 %v342_v48, %v339_v43  ;;  %v577_v48 = vld [vmem:[%s2062_s5] sm:$0xff] }
 0x271   :  { %v333_v51 = vpop.xlane.xlu0 %332  ;;  %1575 = vmatprep.subr.bf16.mxu1 %v1646_v63 }
 0x272   :  { %1598 = vmatpush3.bf16.msra.mxu0 %v1597_v50 }
 0x273   :  { %v336_v52 = vpop.xlane.xlu1 %335  ;;  %1599 = vmatprep.subr.bf16.mxu0 %v1646_v63 }
 0x274   :  { %v1576_v53 = vpack.c.bf16 %v336_v52, %v333_v51  ;;  %v585_v52 = vld [vmem:[%s2061_s4 + $0x8] sm:$0xff] }
 0x275   :  { %v403_v55 = vpop.xlane.xlu0 %402 }
 0x276   :  { %1577 = vmatpush3.bf16.msra.mxu1 %v1576_v53  ;;  %v581_v53 = vld [vmem:[%s2063_s6] sm:$0xff] }
 0x277   :  { %v406_v56 = vpop.xlane.xlu1 %405  ;;  %1578 = vmatprep.subr.bf16.mxu1 %v1646_v63 }
 0x278   :  { %v1603_v3 = vpack.c.bf16 %v406_v56, %v403_v55  ;;  %v586_v56 = vld [vmem:[%s2061_s4 + $0x10] sm:$0xff] }
 0x279   :  { %v397_v60 = vpop.xlane.xlu0 %396 }
 0x27a   :  { %1580 = vmatpush3.bf16.msra.mxu1 %v1579_v59 }
 0x27b   :  { %v400_v62 = vpop.xlane.xlu1 %399  ;;  %1581 = vmatprep.subr.bf16.mxu1 %v1646_v63 }
 0x27c   :  { %v1600_v0 = vpack.c.bf16 %v400_v62, %v397_v60  ;;  %v587_v60 = vld [vmem:[%s2061_s4 + $0x18] sm:$0xff]  ;;  %v588_v62 = vld [vmem:[%s2061_s4 + $0x20] sm:$0xff] }
 0x27d   :  { %v351_v1 = vpop.xlane.xlu0 %350 }
 0x27e   :  { %1601 = vmatpush3.bf16.msra.mxu0 %v1600_v0  ;;  %v589_v0 = vld [vmem:[%s2061_s4 + $0x28] sm:$0xff] }
 0x27f   :  { %v354_v2 = vpop.xlane.xlu1 %353  ;;  %1602 = vmatprep.subr.bf16.mxu0 %v1646_v63 }
 0x280   :  { %v1585_v9 = vpack.c.bf16 %v354_v2, %v351_v1  ;;  %v590_v1 = vld [vmem:[%s2061_s4 + $0x30] sm:$0xff]  ;;  %v591_v2 = vld [vmem:[%s2061_s4 + $0x38] sm:$0xff] }
 0x281   :  { %v345_v4 = vpop.xlane.xlu0 %344 }
 0x282   :  { %1604 = vmatpush3.bf16.msra.mxu0 %v1603_v3  ;;  %v592_v3 = vld [vmem:[%s2061_s4 + $0x40] sm:$0xff] }
 0x283   :  { %v348_v5 = vpop.xlane.xlu1 %347  ;;  %1605 = vmatprep.subr.bf16.mxu0 %v1646_v63 }
 0x284   :  { %v1582_v6 = vpack.c.bf16 %v348_v5, %v345_v4  ;;  %v593_v4 = vld [vmem:[%s2061_s4 + $0x48] sm:$0xff]  ;;  %v594_v5 = vld [vmem:[%s2061_s4 + $0x50] sm:$0xff] }
 0x285   :  { %v415_v7 = vpop.xlane.xlu0 %414 }
 0x286   :  { %1583 = vmatpush3.bf16.msra.mxu1 %v1582_v6  ;;  %v595_v6 = vld [vmem:[%s2061_s4 + $0x58] sm:$0xff] }
 0x287   :  { %v418_v8 = vpop.xlane.xlu1 %417  ;;  %1584 = vmatprep.subr.bf16.mxu1 %v1646_v63 }
 0x288   :  { %v1609_v15 = vpack.c.bf16 %v418_v8, %v415_v7  ;;  %v596_v7 = vld [vmem:[%s2061_s4 + $0x60] sm:$0xff]  ;;  %v597_v8 = vld [vmem:[%s2061_s4 + $0x68] sm:$0xff] }
 0x289   :  { %v409_v10 = vpop.xlane.xlu0 %408 }
 0x28a   :  { %1586 = vmatpush3.bf16.msra.mxu1 %v1585_v9  ;;  %v598_v9 = vld [vmem:[%s2061_s4 + $0x70] sm:$0xff] }
 0x28b   :  { %v412_v11 = vpop.xlane.xlu1 %411  ;;  %1587 = vmatprep.subr.bf16.mxu1 %v1646_v63 }
 0x28c   :  { %v1606_v12 = vpack.c.bf16 %v412_v11, %v409_v10  ;;  %v599_v10 = vld [vmem:[%s2061_s4 + $0x78] sm:$0xff] }
 0x28d   :  { %v363_v13 = vpop.xlane.xlu0 %362 }
 0x28e   :  { %1607 = vmatpush3.bf16.msra.mxu0 %v1606_v12 }
 0x28f   :  { %v366_v14 = vpop.xlane.xlu1 %365  ;;  %1608 = vmatprep.subr.bf16.mxu0 %v1646_v63 }
 0x290   :  { %v1591_v21 = vpack.c.bf16 %v366_v14, %v363_v13 }
 0x291   :  { %v357_v16 = vpop.xlane.xlu0 %356 }
 0x292   :  { %1610 = vmatpush3.bf16.msra.mxu0 %v1609_v15 }
 0x293   :  { %v360_v17 = vpop.xlane.xlu1 %359  ;;  %1611 = vmatprep.subr.bf16.mxu0 %v1646_v63 }
 0x294   :  { %v1588_v18 = vpack.c.bf16 %v360_v17, %v357_v16 }
 0x295   :  { %v421_v19 = vpop.xlane.xlu0 %420 }
 0x296   :  { %1589 = vmatpush3.bf16.msra.mxu1 %v1588_v18 }
 0x297   :  { %v424_v20 = vpop.xlane.xlu1 %423  ;;  %1590 = vmatprep.subr.bf16.mxu1 %v1646_v63 }
 0x298   :  { %v1612_v22 = vpack.c.bf16 %v424_v20, %v421_v19 }
 0x299   :  { %v427_v26 = vpop.xlane.xlu0 %426 }
 0x29a   :  { %1592 = vmatpush3.bf16.msra.mxu1 %v1591_v21  ;;  %1613 = vmatpush3.bf16.msra.mxu0 %v1612_v22 }
 0x29b   :  { %v430_v29 = vpop.xlane.xlu1 %429  ;;  %1614 = vmatprep.subr.bf16.mxu0 %v1646_v63 }
 0x29c   :  { %v1615_v30 = vpack.c.bf16 %v430_v29, %v427_v26 }
 0x29d   :  { %1480 = vmatmul.mubr.f32.vlgmr.msra.gmra.mrb[16].mxu1 %v431_v23 }
 0x29e   :  { %1616 = vmatpush3.bf16.msra.mxu0 %v1615_v30  ;;  %1519 = vmatprep.mubr.msk.f32.mxu1 %vm193_vm1, %v584_v31 }
 0x2a1   :  { %1515 = vmatmul.mubr.f32.vlgmr.msra.gmra.mrb[4].mxu0 %v431_v23 }
 0x2a2   :  { %1545 = vmatprep.mubr.msk.f32.mxu0 %vm193_vm1, %v584_v31 }
 0x370   :  { %v498_v33 = vpop.f32.mrb[16].mxu1 }
 0x371   :  { %v573_v34 = vmul.f32 0.015625, %v498_v33  ;;  %v1481_v36 = vpop.f32.mrb[17].mxu1 }
 0x373   :  { %v575_v39 = vmul.f32 %v573_v34, %v573_v34 }
 0x374   :  { %v568_v63 = vpop.f32.mrb[4].mxu0 }
 0x375   :  { %v574_v40 = vmul.f32 0.015625, %v568_v63  ;;  %v1516_v42 = vpop.f32.mrb[5].mxu0 }
 0x377   :  { %v576_v43 = vsub.f32 %v574_v40, %v575_v39 }
 0x379   :  { %v578_v44 = vadd.f32 1e-05, %v576_v43 }
 0x37b   :  { %1642 = vrsqrt.f32 %v578_v44 }
 0x385   :  { %v1643_v50 = vpop.eup %1642 }
 0x386   :  { %v580_v51 = vmul.f32 %v1643_v50, %v577_v48 }
 0x388   :  { %v582_v55 = vmul.f32 %v580_v51, %v573_v34  ;;  %1517 = vmatprep.subr.mxu1 %v580_v51 }
 0x389   :  { %1518 = vmatpush3.msra.mxu1 %v580_v51 }
 0x38a   :  { %1520 = vmatmul.mubr.msk.f32.vlgmr.msra.gmra.mrb[18].mxu1 %vm193_vm1, %v585_v52  ;;  %v583_v59 = vsub.f32 %v581_v53, %v582_v55 }
 0x38b   :  { %1522 = vmatprep.mubr.msk.f32.mxu1 %vm193_vm1, %v586_v56 }
 0x38c   :  { %1543 = vmatprep.subr.mxu0 %v583_v59  ;;  %1617 = vmatprep.subr.mxu1 %v583_v59 }
 0x38d   :  { %1544 = vmatpush3.msra.mxu0 %v583_v59  ;;  %1618 = vmatpush3.msra.mxu1 %v583_v59 }
 0x38e   :  { %1523 = vmatmul.mubr.msk.f32.gmra.mrb[20].mxu1 %vm193_vm1, %v587_v60  ;;  %1546 = vmatmul.mubr.msk.f32.vlgmr.msra.gmra.mrb[6].mxu0 %vm193_vm1, %v585_v52 }
 0x38f   :  { %1525 = vmatprep.mubr.msk.f32.mxu1 %vm193_vm1, %v588_v62  ;;  %1548 = vmatprep.mubr.msk.f32.mxu0 %vm193_vm1, %v586_v56 }
 0x392   :  { %1526 = vmatmul.mubr.msk.f32.gmra.mrb[22].mxu1 %vm193_vm1, %v589_v0  ;;  %1549 = vmatmul.mubr.msk.f32.gmra.mrb[8].mxu0 %vm193_vm1, %v587_v60 }
 0x393   :  { %1528 = vmatprep.mubr.msk.f32.mxu1 %vm193_vm1, %v590_v1  ;;  %1551 = vmatprep.mubr.msk.f32.mxu0 %vm193_vm1, %v588_v62 }
 0x396   :  { %1529 = vmatmul.mubr.msk.f32.gmra.mrb[24].mxu1 %vm193_vm1, %v591_v2  ;;  %1552 = vmatmul.mubr.msk.f32.gmra.mrb[10].mxu0 %vm193_vm1, %v589_v0 }
 0x397   :  { %1531 = vmatprep.mubr.msk.f32.mxu1 %vm193_vm1, %v592_v3  ;;  %1554 = vmatprep.mubr.msk.f32.mxu0 %vm193_vm1, %v590_v1 }
 0x39a   :  { %1532 = vmatmul.mubr.msk.f32.gmra.mrb[26].mxu1 %vm193_vm1, %v593_v4  ;;  %1555 = vmatmul.mubr.msk.f32.gmra.mrb[12].mxu0 %vm193_vm1, %v591_v2 }
 0x39b   :  { %1534 = vmatprep.mubr.msk.f32.mxu1 %vm193_vm1, %v594_v5  ;;  %1557 = vmatprep.mubr.msk.f32.mxu0 %vm193_vm1, %v592_v3 }
 0x39e   :  { %1535 = vmatmul.mubr.msk.f32.gmra.mrb[28].mxu1 %vm193_vm1, %v595_v6  ;;  %1558 = vmatmul.mubr.msk.f32.gmra.mrb[14].mxu0 %vm193_vm1, %v593_v4 }
 0x39f   :  { %1537 = vmatprep.mubr.msk.f32.mxu1 %vm193_vm1, %v596_v7 }
 0x3a2   :  { %1538 = vmatmul.mubr.msk.f32.gmra.mrb[30].mxu1 %vm193_vm1, %v597_v8 }
 0x3a3   :  { %1540 = vmatprep.mubr.msk.f32.mxu1 %vm193_vm1, %v598_v9 }
 0x3a6   :  { %1541 = vmatmul.mubr.msk.f32.gmra.mrb[32].mxu1 %vm193_vm1, %v599_v10 }
 0x3a7   :  { %1560 = vmatprep.mubr.msk.f32.mxu1 %vm193_vm1, %v594_v5 }
 0x3aa   :  { %1561 = vmatmul.mubr.msk.f32.vlgmr.msra.gmra.mrb[34].mxu1 %vm193_vm1, %v595_v6 }
 0x3ab   :  { %1563 = vmatprep.mubr.msk.f32.mxu1 %vm193_vm1, %v596_v7 }
 0x3ae   :  { %1564 = vmatmul.mubr.msk.f32.gmra.mrb[36].mxu1 %vm193_vm1, %v597_v8 }
 0x3af   :  { %1566 = vmatprep.mubr.msk.f32.mxu1 %vm193_vm1, %v598_v9 }
 0x3b2   :  { %1567 = vmatmul.mubr.msk.f32.gmra.mrb[38].mxu1 %vm193_vm1, %v599_v10 }
 0x45d   :  { %v1521_v11 = vpop.f32.mrb[18].mxu1 }
 0x45e   :  { %945 = vperm.xlu1 %1624, %v1521_v11   ;;  %v714_v12 = vpop.f32.mrb[19].mxu1 }
 0x45f   :  { %940 = vperm.xlu0 %1625, %v714_v12  }
 0x461   :  { %v1524_v13 = vpop.f32.mrb[20].mxu1  ;;  %v1547_v14 = vpop.f32.mrb[6].mxu0 }
 0x462   :  { %955 = vperm.xlu1 %1624, %v1524_v13   ;;  %v724_v15 = vpop.f32.mrb[21].mxu1  ;;  %v859_v16 = vpop.f32.mrb[7].mxu0 }
 0x463   :  { %1041 = vperm.xlu0 %1625, %v1547_v14  }
 0x465   :  { %v1550_v17 = vpop.f32.mrb[8].mxu0  ;;  %v1527_v18 = vpop.f32.mrb[22].mxu1 }
 0x466   :  { %950 = vperm.xlu1 %1624, %v724_v15   ;;  %v869_v19 = vpop.f32.mrb[9].mxu0  ;;  %v734_v20 = vpop.f32.mrb[23].mxu1 }
 0x467   :  { %1051 = vperm.xlu0 %1625, %v1550_v17  }
 0x469   :  { %v1553_v21 = vpop.f32.mrb[10].mxu0  ;;  %v1530_v22 = vpop.f32.mrb[24].mxu1 }
 0x46a   :  { %1036 = vperm.xlu1 %1624, %v859_v16   ;;  %v744_v23 = vpop.f32.mrb[25].mxu1  ;;  %v879_v26 = vpop.f32.mrb[11].mxu0 }
 0x46b   :  { %1061 = vperm.xlu0 %1625, %v1553_v21  }
 0x46d   :  { %v1533_v29 = vpop.f32.mrb[26].mxu1  ;;  %v1556_v30 = vpop.f32.mrb[12].mxu0 }
 0x46e   :  { %965 = vperm.xlu1 %1624, %v1527_v18   ;;  %v754_v31 = vpop.f32.mrb[27].mxu1  ;;  %v889_v32 = vpop.f32.mrb[13].mxu0 }
 0x46f   :  { %985 = vperm.xlu0 %1625, %v1533_v29  }
 0x471   :  { %v1536_v33 = vpop.f32.mrb[28].mxu1  ;;  %v1559_v34 = vpop.f32.mrb[14].mxu0 }
 0x472   :  { %960 = vperm.xlu1 %1624, %v734_v20   ;;  %v764_v36 = vpop.f32.mrb[29].mxu1  ;;  %v899_v39 = vpop.f32.mrb[15].mxu0 }
 0x473   :  { %1071 = vperm.xlu0 %1625, %v1556_v30  }
 0x475   :  { %v1539_v63 = vpop.f32.mrb[30].mxu1 }
 0x476   :  { %1046 = vperm.xlu1 %1624, %v869_v19   ;;  %v774_v40 = vpop.f32.mrb[31].mxu1 }
 0x477   :  { %995 = vperm.xlu0 %1625, %v1536_v33  }
 0x479   :  { %v1542_v42 = vpop.f32.mrb[32].mxu1 }
 0x47a   :  { %975 = vperm.xlu1 %1624, %v1530_v22   ;;  %v784_v43 = vpop.f32.mrb[33].mxu1 }
 0x47b   :  { %1081 = vperm.xlu0 %1625, %v1559_v34  }
 0x47d   :  { %v1562_v44 = vpop.f32.mrb[34].mxu1 }
 0x47e   :  { %970 = vperm.xlu1 %1624, %v744_v23   ;;  %v909_v48 = vpop.f32.mrb[35].mxu1 }
 0x47f   :  { %1005 = vperm.xlu0 %1625, %v1539_v63  }
 0x481   :  { %v1565_v50 = vpop.f32.mrb[36].mxu1 }
 0x482   :  { %1056 = vperm.xlu1 %1624, %v879_v26   ;;  %v919_v51 = vpop.f32.mrb[37].mxu1 }
 0x483   :  { %1015 = vperm.xlu0 %1625, %v1542_v42  }
 0x485   :  { %v1568_v52 = vpop.f32.mrb[38].mxu1 }
 0x486   :  { %980 = vperm.xlu1 %1624, %v754_v31   ;;  %v929_v53 = vpop.f32.mrb[39].mxu1 }
 0x487   :  { %1091 = vperm.xlu0 %1625, %v1562_v44  }
 0x48a   :  { %1066 = vperm.xlu1 %1624, %v889_v32  }
 0x48b   :  { %1101 = vperm.xlu0 %1625, %v1565_v50  }
 0x48e   :  { %990 = vperm.xlu1 %1624, %v764_v36  }
 0x48f   :  { %1111 = vperm.xlu0 %1625, %v1568_v52  }
 0x492   :  { %1076 = vperm.xlu1 %1624, %v899_v39  }
 0x496   :  { %1000 = vperm.xlu1 %1624, %v774_v40  }
 0x49a   :  { %1010 = vperm.xlu1 %1624, %v784_v43  }
 0x49e   :  { %1086 = vperm.xlu1 %1624, %v909_v48  }
 0x4a2   :  { %1096 = vperm.xlu1 %1624, %v919_v51  }
 0x4a6   :  { %1106 = vperm.xlu1 %1624, %v929_v53  }
 0x4dd   :  { %v946_v55 = vpop.permute.xlu1 %945 }
 0x4de   :  { %v941_v56 = vpop.permute.xlu0 %940  ;;  %v1019_v59 = vmul.f32 %v946_v55, %v1767_v28 }
 0x4df   :  { %v1018_v7 = vmul.f32 %v941_v56, %v1761_v25 }
 0x4e1   :  { %v956_v60 = vpop.permute.xlu1 %955 }
 0x4e2   :  { %v1042_v62 = vpop.permute.xlu0 %1041  ;;  %v1021_v1 = vmul.f32 %v1765_v27, %v956_v60 }
 0x4e3   :  { %v1115_v0 = vadd.f32 %v1042_v62, %v1019_v59 }
 0x4e5   :  { %v1131_v2 = vmax.f32 %v1115_v0, 0.0  ;;  %v951_v3 = vpop.permute.xlu1 %950 }
 0x4e6   :  { %v1052_v4 = vpop.permute.xlu0 %1051  ;;  %v1020_v19 = vmul.f32 %v1759_v24, %v951_v3 }
 0x4e7   :  { %v1308_v5 = vpack.c.bf16 %v1131_v2, %v1131_v2  ;;  %v1117_v6 = vadd.f32 %v1052_v4, %v1021_v1 }
 0x4e9   :  { %1212 = vst.msk [vmem:[%s2064_s8 + $0x4] sm:$0xf] %vm1210_vm4, %v1308_v5  ;;  %v1133_v8 = vmax.f32 %v1117_v6, 0.0  ;;  %v1037_v28 = vpop.permute.xlu1 %1036 }
 0x4ea   :  { %v1114_v9 = vadd.f32 %v1037_v28, %v1018_v7  ;;  %v1062_v10 = vpop.permute.xlu0 %1061 }
 0x4eb   :  { %v1310_v11 = vpack.c.bf16 %v1133_v8, %v1133_v8 }
 0x4ec   :  { %v1130_v12 = vmax.f32 %v1114_v9, 0.0 }
 0x4ed   :  { %1214 = vst.msk [vmem:[%s2064_s8 + $0xc] sm:$0xf] %vm1210_vm4, %v1310_v11  ;;  %v966_v27 = vpop.permute.xlu1 %965 }
 0x4ee   :  { %v1307_v13 = vpack.c.bf16 %v1130_v12, %v1130_v12  ;;  %v1023_v25 = vmul.f32 %v966_v27, %v1790_v41  ;;  %v986_v14 = vpop.permute.xlu0 %985 }
 0x4ef   :  { %v1027_v26 = vmul.f32 %v986_v14, %v1805_v49 }
 0x4f0   :  { %1211 = vst.msk [vmem:[%s2064_s8] sm:$0xf] %vm1210_vm4, %v1307_v13  ;;  %v1119_v15 = vadd.f32 %v1062_v10, %v1023_v25 }
 0x4f1   :  { %v961_v16 = vpop.permute.xlu1 %960 }
 0x4f2   :  { %v1135_v17 = vmax.f32 %v1119_v15, 0.0  ;;  %v1072_v18 = vpop.permute.xlu0 %1071  ;;  %v1022_v42 = vmul.f32 %v961_v16, %v1783_v37 }
 0x4f4   :  { %v1312_v20 = vpack.c.bf16 %v1135_v17, %v1135_v17 }
 0x4f5   :  { %v1047_v21 = vpop.permute.xlu1 %1046 }
 0x4f6   :  { %1216 = vst.msk [vmem:[%s2064_s8 + $0x14] sm:$0xf] %vm1210_vm4, %v1312_v20  ;;  %v1116_v41 = vadd.f32 %v1047_v21, %v1020_v19  ;;  %v996_v22 = vpop.permute.xlu0 %995 }
 0x4f7   :  { %v1029_v50 = vmul.f32 %v1801_v47, %v996_v22 }
 0x4f8   :  { %v1132_v23 = vmax.f32 %v1116_v41, 0.0 }
 0x4f9   :  { %v976_v29 = vpop.permute.xlu1 %975 }
 0x4fa   :  { %v1309_v30 = vpack.c.bf16 %v1132_v23, %v1132_v23  ;;  %v1025_v31 = vmul.f32 %v1785_v38, %v976_v29  ;;  %v1082_v32 = vpop.permute.xlu0 %1081 }
 0x4fb   :  { %v1123_v33 = vadd.f32 %v1082_v32, %v1027_v26 }
 0x4fc   :  { %1213 = vst.msk [vmem:[%s2064_s8 + $0x8] sm:$0xf] %vm1210_vm4, %v1309_v30  ;;  %v1121_v24 = vadd.f32 %v1072_v18, %v1025_v31 }
 0x4fd   :  { %v1139_v34 = vmax.f32 %v1123_v33, 0.0  ;;  %v971_v36 = vpop.permute.xlu1 %970 }
 0x4fe   :  { %v1137_v39 = vmax.f32 %v1121_v24, 0.0  ;;  %v1006_v63 = vpop.permute.xlu0 %1005  ;;  %v1024_v55 = vmul.f32 %v1780_v35, %v971_v36 }
 0x4ff   :  { %v1316_v40 = vpack.c.bf16 %v1139_v34, %v1139_v34  ;;  %v1031_v56 = vmul.f32 %v1006_v63, %v1827_v61 }
 0x500   :  { %v1314_v49 = vpack.c.bf16 %v1137_v39, %v1137_v39 }
 0x501   :  { %1220 = vst.msk [vmem:[%s2064_s8 + $0x24] sm:$0xf] %vm1210_vm4, %v1316_v40  ;;  %v1057_v38 = vpop.permute.xlu1 %1056 }
 0x502   :  { %1218 = vst.msk [vmem:[%s2064_s8 + $0x1c] sm:$0xf] %vm1210_vm4, %v1314_v49  ;;  %v1118_v43 = vadd.f32 %v1057_v38, %v1022_v42  ;;  %v1016_v44 = vpop.permute.xlu0 %1015 }
 0x503   :  { %v1033_v3 = vmul.f32 %v1822_v58, %v1016_v44 }
 0x504   :  { %v1134_v48 = vmax.f32 %v1118_v43, 0.0 }
 0x505   :  { %v981_v51 = vpop.permute.xlu1 %980 }
 0x506   :  { %v1311_v52 = vpack.c.bf16 %v1134_v48, %v1134_v48  ;;  %v1092_v37 = vpop.permute.xlu0 %1091  ;;  %v1026_v8 = vmul.f32 %v981_v51, %v1799_v46 }
 0x507   :  { %v1125_v53 = vadd.f32 %v1092_v37, %v1029_v50 }
 0x508   :  { %1215 = vst.msk [vmem:[%s2064_s8 + $0x10] sm:$0xf] %vm1210_vm4, %v1311_v52 }
 0x509   :  { %v1141_v59 = vmax.f32 %v1125_v53, 0.0  ;;  %v1067_v60 = vpop.permute.xlu1 %1066 }
 0x50a   :  { %v1120_v62 = vadd.f32 %v1067_v60, %v1024_v55  ;;  %v1102_v0 = vpop.permute.xlu0 %1101 }
 0x50b   :  { %v1318_v1 = vpack.c.bf16 %v1141_v59, %v1141_v59  ;;  %v1127_v2 = vadd.f32 %v1102_v0, %v1031_v56 }
 0x50c   :  { %v1136_v47 = vmax.f32 %v1120_v62, 0.0 }
 0x50d   :  { %1222 = vst.msk [vmem:[%s2064_s8 + $0x2c] sm:$0xf] %vm1210_vm4, %v1318_v1  ;;  %v1143_v35 = vmax.f32 %v1127_v2, 0.0  ;;  %v991_v4 = vpop.permute.xlu1 %990 }
 0x50e   :  { %v1313_v5 = vpack.c.bf16 %v1136_v47, %v1136_v47  ;;  %v1112_v6 = vpop.permute.xlu0 %1111  ;;  %v1028_v13 = vmul.f32 %v1797_v45, %v991_v4 }
 0x50f   :  { %v1320_v7 = vpack.c.bf16 %v1143_v35, %v1143_v35  ;;  %v1129_v61 = vadd.f32 %v1112_v6, %v1033_v3 }
 0x510   :  { %1217 = vst.msk [vmem:[%s2064_s8 + $0x18] sm:$0xf] %vm1210_vm4, %v1313_v5 }
 0x511   :  { %1224 = vst.msk [vmem:[%s2064_s8 + $0x34] sm:$0xf] %vm1210_vm4, %v1320_v7  ;;  %v1145_v58 = vmax.f32 %v1129_v61, 0.0  ;;  %v1077_v28 = vpop.permute.xlu1 %1076 }
 0x512   :  { %v1122_v9 = vadd.f32 %v1077_v28, %v1026_v8 }
 0x513   :  { %v1322_v10 = vpack.c.bf16 %v1145_v58, %v1145_v58 }
 0x514   :  { %v1138_v11 = vmax.f32 %v1122_v9, 0.0 }
 0x515   :  { %1226 = vst.msk [vmem:[%s2064_s8 + $0x3c] sm:$0xf] %vm1210_vm4, %v1322_v10  ;;  %v1001_v46 = vpop.permute.xlu1 %1000 }
 0x516   :  { %v1315_v12 = vpack.c.bf16 %v1138_v11, %v1138_v11  ;;  %v1030_v15 = vmul.f32 %v1001_v46, %v1820_v57 }
 0x518   :  { %1219 = vst.msk [vmem:[%s2064_s8 + $0x20] sm:$0xf] %vm1210_vm4, %v1315_v12 }
 0x519   :  { %v1011_v27 = vpop.permute.xlu1 %1010 }
 0x51a   :  { %v1032_v20 = vmul.f32 %v1815_v54, %v1011_v27 }
 0x51d   :  { %v1087_v25 = vpop.permute.xlu1 %1086 }
 0x51e   :  { %v1124_v14 = vadd.f32 %v1087_v25, %v1028_v13 }
 0x520   :  { %v1140_v16 = vmax.f32 %v1124_v14, 0.0 }
 0x521   :  { %v1097_v17 = vpop.permute.xlu1 %1096 }
 0x522   :  { %v1317_v18 = vpack.c.bf16 %v1140_v16, %v1140_v16  ;;  %v1126_v19 = vadd.f32 %v1097_v17, %v1030_v15 }
 0x524   :  { %1221 = vst.msk [vmem:[%s2064_s8 + $0x28] sm:$0xf] %vm1210_vm4, %v1317_v18  ;;  %v1142_v21 = vmax.f32 %v1126_v19, 0.0 }
 0x525   :  { %v1107_v41 = vpop.permute.xlu1 %1106 }
 0x526   :  { %v1319_v22 = vpack.c.bf16 %v1142_v21, %v1142_v21  ;;  %v1128_v23 = vadd.f32 %v1107_v41, %v1032_v20 }
 0x528   :  { %1223 = vst.msk [vmem:[%s2064_s8 + $0x30] sm:$0xf] %vm1210_vm4, %v1319_v22  ;;  %v1144_v45 = vmax.f32 %v1128_v23, 0.0 }
 0x52a   :  { %v1321_v57 = vpack.c.bf16 %v1144_v45, %v1144_v45 }
 0x52c   :  { %1225 = vst.msk [vmem:[%s2064_s8 + $0x38] sm:$0xf] %vm1210_vm4, %v1321_v57 }

// kernel: _lambda_.11
= control target key start
LH: loop header
LB: loop body
LE: loop exit
PB: predicated region body
PF: predicated region fallthrough
CT: control target
= control target key end

     0   :  { %v959_v0 = vmov 0.0   ;;  %vm960_vm0 = vmmov 0   ;;  %vm101_vm1 = vcmask 523264   ;;  %vm390_vm2 = vcmask 261120   ;;  %s1338_s8 = inlined_call_operand.vmem [shape: bf16[64,32], index: 8, kind: input, shape index: {}]   ;;  %s1339_s9 = inlined_call_operand.vmem [shape: bf16[64,32], index: 9, kind: input, shape index: {}]   ;;  %s1340_s10 = inlined_call_operand.vmem [shape: bf16[64,32], index: 10, kind: input, shape index: {}]   ;;  %s1341_s11 = inlined_call_operand.vmem [shape: bf16[64,32], index: 11, kind: input, shape index: {}]   ;;  %s1342_s0 = inlined_call_operand.vmem [shape: bf16[4,64], index: 0, kind: input, shape index: {}]   ;;  %s1343_s1 = inlined_call_operand.vmem [shape: bf16[4,64], index: 1, kind: input, shape index: {}]   ;;  %s1344_s12 = inlined_call_operand.vmem [shape: bf16[32,64], index: 12, kind: input, shape index: {}]   ;;  %s1345_s13 = inlined_call_operand.vmem [shape: bf16[32,64], index: 13, kind: input, shape index: {}]   ;;  %s1346_s14 = inlined_call_operand.vmem [shape: bf16[32,64], index: 14, kind: input, shape index: {}]   ;;  %s1347_s15 = inlined_call_operand.vmem [shape: bf16[32,64], index: 15, kind: input, shape index: {}]   ;;  %s1348_s2 = inlined_call_operand.vmem [shape: bf16[4,64], index: 2, kind: input, shape index: {}]   ;;  %s1349_s3 = inlined_call_operand.vmem [shape: bf16[4,64], index: 3, kind: input, shape index: {}]   ;;  %s1350_s4 = inlined_call_operand.vmem [shape: bf16[4,32], index: 4, kind: input, shape index: {}]   ;;  %s1351_s5 = inlined_call_operand.vmem [shape: bf16[4,32], index: 5, kind: input, shape index: {}]   ;;  %s1352_s6 = inlined_call_operand.vmem [shape: bf16[4,32], index: 6, kind: input, shape index: {}]   ;;  %s1353_s7 = inlined_call_operand.vmem [shape: bf16[4,32], index: 7, kind: input, shape index: {}]   ;;  %s1354_s16 = inlined_call_operand.vmem [shape: f32[4,1], index: 16, kind: input, shape index: {}]   ;;  %s1355_s17 = inlined_call_operand.vmem [shape: f32[4,1], index: 17, kind: input, shape index: {}]   ;;  %s1356_s18 = inlined_call_operand.vmem [shape: bf16[4,32], index: 18, kind: output, shape index: {0}]   ;;  %s1357_s19 = inlined_call_operand.vmem [shape: bf16[4,32], index: 19, kind: output, shape index: {1}]   ;;  %s1358_s20 = inlined_call_operand.vmem [shape: bf16[4,32], index: 20, kind: output, shape index: {2}]   ;;  %s1359_s21 = inlined_call_operand.vmem [shape: bf16[4,32], index: 21, kind: output, shape index: {3}]   ;;  %s1360_s22 = inlined_call_operand.vmem [shape: bf16[4,64], index: 22, kind: output, shape index: {4}]   ;;  %s1361_s23 = inlined_call_operand.vmem [shape: bf16[4,64], index: 23, kind: output, shape index: {5}]   ;;  %s1362_s24 = inlined_call_operand.vmem [shape: bf16[4,64], index: 24, kind: output, shape index: {6}]   ;;  %s1363_s25 = inlined_call_operand.vmem [shape: bf16[4,64], index: 25, kind: output, shape index: {7}]  }
   0x1   :  { %1372 = sst [smem:[#allocation2_spill]] %s1338_s8  ;;  %848 = vmatprep.subr.bf16.mxu0 %v959_v0  ;;  %860 = vmatprep.subr.bf16.mxu1 %v959_v0  ;;  %v221_v19 = vld [vmem:[%s1348_s2] sm:$0x3]  ;;  %vm614_vm3 = vcmask 257024   ;;  %vm631_vm4 = vcmask 519168   ;;  %vm728_vm5 = vcmask 254976  }
   0x2   :  { %1373 = sst [smem:[#allocation3_spill]] %s1339_s9  ;;  %856 = vmatprep.mubr.msk.bf16.mxu0 %vm960_vm0, %v959_v0  ;;  %868 = vmatprep.mubr.msk.bf16.mxu1 %vm960_vm0, %v959_v0  ;;  %v297_v21 = vld [vmem:[%s1349_s3] sm:$0x3]  ;;  %vm741_vm6 = vcmask 517120  }
   0x3   :  { %1374 = sst [smem:[#allocation4_spill]] %s1340_s10  ;;  %v373_v25 = vld [vmem:[%s1350_s4] sm:$0x3] }
   0x4   :  { %1375 = sst [smem:[#allocation5_spill]] %s1341_s11  ;;  %s1383_s11 = sld [smem:[#allocation3_spill]]  ;;  %v434_v27 = vld [vmem:[%s1351_s5] sm:$0x3] }
   0x5   :  { %1376 = sst [smem:[#allocation6_spill]] %s1342_s0  ;;  %s1385_s9 = sld [smem:[#allocation4_spill]]  ;;  %v494_v31 = vld [vmem:[%s1352_s6] sm:$0x3] }
   0x6   :  { %1377 = sst [smem:[#allocation7_spill]] %s1343_s1  ;;  %s1384_s0 = sld [smem:[#allocation6_spill]]  ;;  %v554_v32 = vld [vmem:[%s1353_s7] sm:$0x3] }
   0x7   :  { %1378 = sst [smem:[#allocation8_spill]] %s1344_s12  ;;  %s1382_s12 = sld [smem:[#allocation2_spill]] }
   0x8   :  { %1379 = sst [smem:[#allocation9_spill]] %s1345_s13  ;;  %s1387_s8 = sld [smem:[#allocation5_spill]] }
   0x9   :  { %1380 = sst [smem:[#allocation10_spill]] %s1346_s14  ;;  %s1388_s13 = sld [smem:[#allocation8_spill]] }
   0xa   :  { %1381 = sst [smem:[#allocation11_spill]] %s1347_s15  ;;  %v934_v2 = vld [vmem:[%s1383_s11] sm:$0xff]   ;;  %v936_v4 = vld [vmem:[%s1383_s11 + $0x8] sm:$0xff]   ;;  %v938_v6 = vld [vmem:[%s1383_s11 + $0x10] sm:$0xff]   ;;  %s1386_s15 = sld [smem:[#allocation7_spill]] }
   0xb   :  { %861 = vmatpush3.bf16.msra.mxu1 %v934_v2  ;;  %v940_v8 = vld [vmem:[%s1383_s11 + $0x18] sm:$0xff]   ;;  %v941_v10 = vld [vmem:[%s1385_s9] sm:$0xff]   ;;  %v943_v13 = vld [vmem:[%s1385_s9 + $0x8] sm:$0xff]   ;;  %s1389_s14 = sld [smem:[#allocation9_spill]]  ;;  %s1390_s29 = sld [smem:[#allocation10_spill]] }
   0xc   :  { %862 = vmatprep.subr.bf16.mxu1 %v959_v0  ;;  %v68_v9 = vld [vmem:[%s1384_s0] sm:$0x3]  ;;  %v945_v15 = vld [vmem:[%s1385_s9 + $0x10] sm:$0xff]   ;;  %v947_v17 = vld [vmem:[%s1385_s9 + $0x18] sm:$0xff]   ;;  %s1391_s26 = sld [smem:[#allocation11_spill]] }
   0xd   :  { %v933_v1 = vld [vmem:[%s1382_s12] sm:$0xff]   ;;  %v935_v3 = vld [vmem:[%s1382_s12 + $0x8] sm:$0xff]   ;;  %v937_v5 = vld [vmem:[%s1382_s12 + $0x10] sm:$0xff]  }
   0xe   :  { %849 = vmatpush3.bf16.msra.mxu0 %v933_v1  ;;  %v939_v7 = vld [vmem:[%s1382_s12 + $0x18] sm:$0xff]   ;;  %v942_v12 = vld [vmem:[%s1387_s8] sm:$0xff]   ;;  %v944_v14 = vld [vmem:[%s1387_s8 + $0x8] sm:$0xff]  }
   0xf   :  { %850 = vmatprep.subr.bf16.mxu0 %v959_v0  ;;  %863 = vmatpush3.bf16.msra.mxu1 %v936_v4  ;;  %v946_v16 = vld [vmem:[%s1387_s8 + $0x10] sm:$0xff]   ;;  %v948_v18 = vld [vmem:[%s1387_s8 + $0x18] sm:$0xff]   ;;  %v949_v20 = vld [vmem:[%s1388_s13] sm:$0xff]  }
  0x10   :  { %864 = vmatprep.subr.bf16.mxu1 %v959_v0  ;;  %v145_v11 = vld [vmem:[%s1386_s15] sm:$0x3]  ;;  %v951_v23 = vld [vmem:[%s1388_s13 + $0x8] sm:$0xff]  }
  0x11   :  { %v950_v22 = vld [vmem:[%s1389_s14] sm:$0xff]   ;;  %v952_v24 = vld [vmem:[%s1389_s14 + $0x8] sm:$0xff]  }
  0x12   :  { %851 = vmatpush3.bf16.msra.mxu0 %v935_v3  ;;  %v953_v26 = vld [vmem:[%s1390_s29] sm:$0xff]   ;;  %v955_v29 = vld [vmem:[%s1390_s29 + $0x8] sm:$0xff]  }
  0x13   :  { %852 = vmatprep.subr.bf16.mxu0 %v959_v0  ;;  %865 = vmatpush3.bf16.msra.mxu1 %v938_v6  ;;  %v954_v28 = vld [vmem:[%s1391_s26] sm:$0xff]   ;;  %v956_v30 = vld [vmem:[%s1391_s26 + $0x8] sm:$0xff]  }
  0x14   :  { %866 = vmatprep.subr.bf16.mxu1 %v959_v0 }
  0x16   :  { %853 = vmatpush3.bf16.msra.mxu0 %v937_v5 }
  0x17   :  { %854 = vmatprep.subr.bf16.mxu0 %v959_v0  ;;  %867 = vmatpush3.bf16.msra.mxu1 %v940_v8 }
  0x18   :  { %884 = vmatprep.subr.bf16.mxu1 %v959_v0 }
  0x1a   :  { %855 = vmatpush3.bf16.msra.mxu0 %v939_v7  ;;  %869 = vmatmul.mubr.msk.bf16.vlgmr.msra.gmra.mrb[0].mxu1 %vm101_vm1, %v145_v11 }
  0x1b   :  { %872 = vmatprep.subr.bf16.mxu0 %v959_v0  ;;  %885 = vmatpush3.bf16.msra.mxu1 %v942_v12 }
  0x1c   :  { %886 = vmatprep.subr.bf16.mxu1 %v959_v0  ;;  %892 = vmatprep.mubr.msk.bf16.mxu1 %vm960_vm0, %v959_v0 }
  0x1d   :  { %857 = vmatmul.mubr.msk.bf16.vlgmr.msra.gmra.mrb[0].mxu0 %vm101_vm1, %v68_v9 }
  0x1e   :  { %873 = vmatpush3.bf16.msra.mxu0 %v941_v10  ;;  %880 = vmatprep.mubr.msk.bf16.mxu0 %vm960_vm0, %v959_v0 }
  0x1f   :  { %874 = vmatprep.subr.bf16.mxu0 %v959_v0  ;;  %887 = vmatpush3.bf16.msra.mxu1 %v944_v14 }
  0x20   :  { %888 = vmatprep.subr.bf16.mxu1 %v959_v0 }
  0x22   :  { %875 = vmatpush3.bf16.msra.mxu0 %v943_v13 }
  0x23   :  { %876 = vmatprep.subr.bf16.mxu0 %v959_v0  ;;  %889 = vmatpush3.bf16.msra.mxu1 %v946_v16 }
  0x24   :  { %890 = vmatprep.subr.bf16.mxu1 %v959_v0 }
  0x26   :  { %877 = vmatpush3.bf16.msra.mxu0 %v945_v15 }
  0x27   :  { %878 = vmatprep.subr.bf16.mxu0 %v959_v0  ;;  %891 = vmatpush3.bf16.msra.mxu1 %v948_v18 }
  0x28   :  { %904 = vmatprep.subr.bf16.mxu1 %v959_v0 }
  0x2a   :  { %879 = vmatpush3.bf16.msra.mxu0 %v947_v17  ;;  %893 = vmatmul.mubr.msk.bf16.vlgmr.msra.gmra.mrb[4].mxu1 %vm101_vm1, %v297_v21 }
  0x2b   :  { %896 = vmatprep.subr.bf16.mxu0 %v959_v0  ;;  %905 = vmatpush3.bf16.msra.mxu1 %v950_v22 }
  0x2c   :  { %906 = vmatprep.subr.bf16.mxu1 %v959_v0  ;;  %908 = vmatprep.mubr.msk.bf16.mxu1 %vm960_vm0, %v959_v0 }
  0x2d   :  { %881 = vmatmul.mubr.msk.bf16.vlgmr.msra.gmra.mrb[4].mxu0 %vm101_vm1, %v221_v19 }
  0x2e   :  { %897 = vmatpush3.bf16.msra.mxu0 %v949_v20  ;;  %900 = vmatprep.mubr.msk.bf16.mxu0 %vm960_vm0, %v959_v0 }
  0x2f   :  { %898 = vmatprep.subr.bf16.mxu0 %v959_v0  ;;  %907 = vmatpush3.bf16.msra.mxu1 %v952_v24 }
  0x30   :  { %920 = vmatprep.subr.bf16.mxu1 %v959_v0 }
  0x32   :  { %899 = vmatpush3.bf16.msra.mxu0 %v951_v23  ;;  %909 = vmatmul.mubr.msk.bf16.vlgmr.msra.gmra.mrb[8].mxu1 %vm390_vm2, %v434_v27 }
  0x33   :  { %912 = vmatprep.subr.bf16.mxu0 %v959_v0  ;;  %921 = vmatpush3.bf16.msra.mxu1 %v954_v28 }
  0x34   :  { %922 = vmatprep.subr.bf16.mxu1 %v959_v0  ;;  %924 = vmatprep.mubr.msk.bf16.mxu1 %vm960_vm0, %v959_v0 }
  0x35   :  { %901 = vmatmul.mubr.msk.bf16.vlgmr.msra.gmra.mrb[8].mxu0 %vm390_vm2, %v373_v25  ;;  %v961_v25 = vmov 0  }
  0x36   :  { %913 = vmatpush3.bf16.msra.mxu0 %v953_v26  ;;  %916 = vmatprep.mubr.msk.bf16.mxu0 %vm960_vm0, %v959_v0 }
  0x37   :  { %914 = vmatprep.subr.bf16.mxu0 %v959_v0  ;;  %923 = vmatpush3.bf16.msra.mxu1 %v956_v30 }
  0x38   :  { %931 = vset.pattern.permute.xlu0 %v961_v25  ;;  %932 = vset.pattern.permute.xlu1 %v961_v25 }
  0x3a   :  { %915 = vmatpush3.bf16.msra.mxu0 %v955_v29  ;;  %925 = vmatmul.mubr.msk.bf16.vlgmr.msra.gmra.mrb[12].mxu1 %vm390_vm2, %v554_v32 }
  0x3d   :  { %917 = vmatmul.mubr.msk.bf16.vlgmr.msra.gmra.mrb[12].mxu0 %vm390_vm2, %v494_v31 }
  0xed   :  { %v1238_v35 = vpop.f32.mrb[0].mxu1 }
  0xee   :  { %v870_v39 = vpop.f32.mrb[1].mxu1  ;;  %v619_v43 = vsel %vm614_vm3, %v1238_v35, 0.0  ;;  %v653_v44 = vmul.f32 %v1238_v35, %v1238_v35 }
  0xef   :  { %v218_v41 = vpop.f32.mrb[2].mxu1 }
  0xf0   :  { %v1236_v33 = vpop.f32.mrb[0].mxu0  ;;  %v871_v45 = vpop.f32.mrb[3].mxu1  ;;  %v654_v46 = vsel %vm614_vm3, %v653_v44, 0.0 }
  0xf1   :  { %v858_v34 = vpop.f32.mrb[1].mxu0  ;;  %v615_v36 = vsel %vm614_vm3, %v1236_v33, 0.0  ;;  %v648_v37 = vmul.f32 %v1236_v33, %v1236_v33 }
  0xf2   :  { %616 = vadd.xlane.f32.xlu0 %v615_v36  ;;  %v142_v38 = vpop.f32.mrb[2].mxu0 }
  0xf3   :  { %v859_v40 = vpop.f32.mrb[3].mxu0  ;;  %v649_v42 = vsel %vm614_vm3, %v648_v37, 0.0 }
  0xf4   :  { %650 = vadd.xlane.f32.xlu1 %v649_v42 }
  0xf6   :  { %620 = vadd.xlane.f32.xlu0 %v619_v43 }
  0xfa   :  { %655 = vadd.xlane.f32.xlu0 %v654_v46 }
  0xfd   :  { %v1252_v49 = vpop.f32.mrb[4].mxu1 }
  0xfe   :  { %v894_v53 = vpop.f32.mrb[5].mxu1  ;;  %v663_v54 = vmul.f32 %v1252_v49, %v1252_v49  ;;  %v627_v58 = vsel %vm614_vm3, %v1252_v49, 0.0 }
  0xff   :  { %v370_v56 = vpop.f32.mrb[6].mxu1 }
 0x100   :  { %v1250_v47 = vpop.f32.mrb[4].mxu0  ;;  %v895_v59 = vpop.f32.mrb[7].mxu1  ;;  %v664_v60 = vsel %vm614_vm3, %v663_v54, 0.0 }
 0x101   :  { %v882_v48 = vpop.f32.mrb[5].mxu0  ;;  %v623_v50 = vsel %vm614_vm3, %v1250_v47, 0.0  ;;  %v658_v51 = vmul.f32 %v1250_v47, %v1250_v47 }
 0x102   :  { %624 = vadd.xlane.f32.xlu1 %v623_v50  ;;  %v294_v52 = vpop.f32.mrb[6].mxu0 }
 0x103   :  { %v883_v55 = vpop.f32.mrb[7].mxu0  ;;  %v659_v57 = vsel %vm614_vm3, %v658_v51, 0.0 }
 0x104   :  { %660 = vadd.xlane.f32.xlu0 %v659_v57 }
 0x105   :  { %v1266_v63 = vpop.f32.mrb[8].mxu1 }
 0x106   :  { %628 = vadd.xlane.f32.xlu1 %v627_v58  ;;  %v910_v3 = vpop.f32.mrb[9].mxu1  ;;  %v673_v4 = vmul.f32 %v1266_v63, %v1266_v63  ;;  %v636_v8 = vsel %vm631_vm4, %v1266_v63, 0.0 }
 0x107   :  { %v491_v6 = vpop.f32.mrb[10].mxu1  ;;  %v693_v3 = vld [vmem:[%s1354_s16] sm:$0xf] }
 0x108   :  { %665 = vadd.xlane.f32.xlu0 %v664_v60  ;;  %v1264_v61 = vpop.f32.mrb[8].mxu0  ;;  %v911_v9 = vpop.f32.mrb[11].mxu1  ;;  %v674_v10 = vsel %vm631_vm4, %v673_v4, 0.0  ;;  %v697_v6 = vld [vmem:[%s1355_s17] sm:$0xf] }
 0x109   :  { %v902_v62 = vpop.f32.mrb[9].mxu0  ;;  %v632_v0 = vsel %vm631_vm4, %v1264_v61, 0.0  ;;  %v668_v1 = vmul.f32 %v1264_v61, %v1264_v61 }
 0x10a   :  { %633 = vadd.xlane.f32.xlu1 %v632_v0  ;;  %v431_v2 = vpop.f32.mrb[10].mxu0 }
 0x10b   :  { %v903_v5 = vpop.f32.mrb[11].mxu0  ;;  %v669_v7 = vsel %vm631_vm4, %v668_v1, 0.0 }
 0x10c   :  { %670 = vadd.xlane.f32.xlu0 %v669_v7 }
 0x10d   :  { %v1280_v13 = vpop.f32.mrb[12].mxu1 }
 0x10e   :  { %637 = vadd.xlane.f32.xlu1 %v636_v8  ;;  %v926_v17 = vpop.f32.mrb[13].mxu1  ;;  %v644_v21 = vsel %vm631_vm4, %v1280_v13, 0.0  ;;  %v683_v23 = vmul.f32 %v1280_v13, %v1280_v13 }
 0x10f   :  { %v611_v19 = vpop.f32.mrb[14].mxu1 }
 0x110   :  { %675 = vadd.xlane.f32.xlu0 %v674_v10  ;;  %v1278_v11 = vpop.f32.mrb[12].mxu0  ;;  %v927_v22 = vpop.f32.mrb[15].mxu1  ;;  %v684_v24 = vsel %vm631_vm4, %v683_v23, 0.0 }
 0x111   :  { %v918_v12 = vpop.f32.mrb[13].mxu0  ;;  %v640_v14 = vsel %vm631_vm4, %v1278_v11, 0.0  ;;  %v678_v15 = vmul.f32 %v1278_v11, %v1278_v11 }
 0x112   :  { %641 = vadd.xlane.f32.xlu1 %v640_v14  ;;  %v551_v16 = vpop.f32.mrb[14].mxu0 }
 0x113   :  { %v919_v18 = vpop.f32.mrb[15].mxu0  ;;  %v679_v20 = vsel %vm631_vm4, %v678_v15, 0.0 }
 0x114   :  { %680 = vadd.xlane.f32.xlu0 %v679_v20 }
 0x116   :  { %645 = vadd.xlane.f32.xlu1 %v644_v21 }
 0x11a   :  { %685 = vadd.xlane.f32.xlu1 %v684_v24 }
 0x17f   :  { %v617_v26 = vpop.xlane.xlu0 %616 }
 0x181   :  { %v651_v28 = vpop.xlane.xlu1 %650 }
 0x183   :  { %v621_v27 = vpop.xlane.xlu0 %620 }
 0x184   :  { %v622_v37 = vadd.f32 %v621_v27, %v617_v26 }
 0x187   :  { %v656_v29 = vpop.xlane.xlu0 %655 }
 0x188   :  { %v657_v41 = vadd.f32 %v656_v29, %v651_v28 }
 0x18f   :  { %v625_v30 = vpop.xlane.xlu1 %624 }
 0x190   :  { %v626_v39 = vadd.f32 %v625_v30, %v622_v37 }
 0x191   :  { %v661_v31 = vpop.xlane.xlu0 %660 }
 0x192   :  { %v662_v44 = vadd.f32 %v661_v31, %v657_v41 }
 0x193   :  { %v629_v32 = vpop.xlane.xlu1 %628 }
 0x194   :  { %v630_v42 = vadd.f32 %v629_v32, %v626_v39 }
 0x195   :  { %v666_v34 = vpop.xlane.xlu0 %665 }
 0x196   :  { %v667_v48 = vadd.f32 %v666_v34, %v662_v44 }
 0x197   :  { %v634_v36 = vpop.xlane.xlu1 %633 }
 0x198   :  { %v635_v45 = vadd.f32 %v634_v36, %v630_v42 }
 0x199   :  { %v671_v38 = vpop.xlane.xlu0 %670 }
 0x19a   :  { %v672_v51 = vadd.f32 %v671_v38, %v667_v48 }
 0x19b   :  { %v638_v40 = vpop.xlane.xlu1 %637 }
 0x19c   :  { %v639_v50 = vadd.f32 %v638_v40, %v635_v45 }
 0x19d   :  { %v676_v43 = vpop.xlane.xlu0 %675 }
 0x19e   :  { %v677_v55 = vadd.f32 %v676_v43, %v672_v51 }
 0x19f   :  { %v642_v46 = vpop.xlane.xlu1 %641 }
 0x1a0   :  { %v643_v52 = vadd.f32 %v642_v46, %v639_v50 }
 0x1a1   :  { %v681_v53 = vpop.xlane.xlu0 %680 }
 0x1a2   :  { %v682_v57 = vadd.f32 %v681_v53, %v677_v55 }
 0x1a3   :  { %v646_v54 = vpop.xlane.xlu1 %645 }
 0x1a4   :  { %v647_v56 = vadd.f32 %v646_v54, %v643_v52 }
 0x1a6   :  { %v689_v58 = vmul.f32 0.0026041667, %v647_v56 }
 0x1a7   :  { %v686_v59 = vpop.xlane.xlu1 %685 }
 0x1a8   :  { %v687_v60 = vadd.f32 %v686_v59, %v682_v57  ;;  %v691_v62 = vmul.f32 %v689_v58, %v689_v58 }
 0x1aa   :  { %v690_v0 = vmul.f32 0.0026041667, %v687_v60 }
 0x1ac   :  { %v692_v1 = vsub.f32 %v690_v0, %v691_v62 }
 0x1ae   :  { %v694_v2 = vadd.f32 1e-05, %v692_v1 }
 0x1b0   :  { %957 = vrsqrt.f32 %v694_v2 }
 0x1ba   :  { %v958_v4 = vpop.eup %957 }
 0x1bb   :  { %v696_v5 = vmul.f32 %v958_v4, %v693_v3 }
 0x1bd   :  { %702 = vperm.xlu0 %931, %v696_v5   ;;  %v698_v7 = vmul.f32 %v696_v5, %v689_v58 }
 0x1bf   :  { %v699_v8 = vsub.f32 %v697_v6, %v698_v7 }
 0x1c1   :  { %708 = vperm.xlu1 %932, %v699_v8  }
 0x23c   :  { %v703_v9 = vpop.permute.xlu0 %702 }
 0x23d   :  { %v705_v10 = vmul.f32 %v703_v9, %v1236_v33  ;;  %v712_v12 = vmul.f32 %v703_v9, %v1238_v35  ;;  %v714_v14 = vmul.f32 %v703_v9, %v1250_v47  ;;  %v716_v15 = vmul.f32 %v703_v9, %v1252_v49 }
 0x23e   :  { %v718_v16 = vmul.f32 %v703_v9, %v1264_v61  ;;  %v720_v17 = vmul.f32 %v703_v9, %v1266_v63  ;;  %v722_v18 = vmul.f32 %v703_v9, %v1278_v11  ;;  %v724_v19 = vmul.f32 %v703_v9, %v1280_v13 }
 0x240   :  { %v709_v20 = vpop.permute.xlu1 %708 }
 0x241   :  { %v711_v21 = vadd.f32 %v709_v20, %v705_v10  ;;  %v713_v22 = vadd.f32 %v712_v12, %v709_v20  ;;  %v715_v23 = vadd.f32 %v714_v14, %v709_v20  ;;  %v717_v24 = vadd.f32 %v716_v15, %v709_v20 }
 0x242   :  { %v719_v33 = vadd.f32 %v718_v16, %v709_v20  ;;  %v721_v25 = vadd.f32 %v720_v17, %v709_v20  ;;  %v723_v35 = vadd.f32 %v722_v18, %v709_v20  ;;  %v725_v26 = vadd.f32 %v724_v19, %v709_v20 }
 0x243   :  { %v726_v47 = vmax.f32 %v711_v21, 0.0  ;;  %v730_v27 = vmax.f32 %v713_v22, 0.0  ;;  %v733_v49 = vmax.f32 %v715_v23, 0.0  ;;  %v736_v28 = vmax.f32 %v717_v24, 0.0 }
 0x244   :  { %v739_v61 = vmax.f32 %v719_v33, 0.0  ;;  %v743_v29 = vmax.f32 %v721_v25, 0.0  ;;  %v746_v63 = vmax.f32 %v723_v35, 0.0  ;;  %v749_v30 = vmax.f32 %v725_v26, 0.0 }
 0x245   :  { %v727_v11 = vpack.c.bf16 %v726_v47, %v726_v47  ;;  %v731_v31 = vpack.c.bf16 %v730_v27, %v730_v27  ;;  %v734_v13 = vpack.c.bf16 %v733_v49, %v733_v49  ;;  %v737_v32 = vpack.c.bf16 %v736_v28, %v736_v28 }
 0x246   :  { %v740_v34 = vpack.c.bf16 %v739_v61, %v739_v61  ;;  %v744_v36 = vpack.c.bf16 %v743_v29, %v743_v29  ;;  %v747_v37 = vpack.c.bf16 %v746_v63, %v746_v63  ;;  %v750_v38 = vpack.c.bf16 %v749_v30, %v749_v30 }
 0x247   :  { %729 = vst.msk [vmem:[%s1356_s18] sm:$0x3] %vm728_vm5, %v727_v11  ;;  %732 = vst.msk [vmem:[%s1357_s19] sm:$0x3] %vm728_vm5, %v731_v31 }
 0x248   :  { %735 = vst.msk [vmem:[%s1358_s20] sm:$0x3] %vm728_vm5, %v734_v13  ;;  %738 = vst.msk [vmem:[%s1359_s21] sm:$0x3] %vm728_vm5, %v737_v32 }
 0x249   :  { %742 = vst.msk [vmem:[%s1360_s22] sm:$0x3] %vm741_vm6, %v740_v34  ;;  %745 = vst.msk [vmem:[%s1361_s23] sm:$0x3] %vm741_vm6, %v744_v36 }
 0x24a   :  { %748 = vst.msk [vmem:[%s1362_s24] sm:$0x3] %vm741_vm6, %v747_v37  ;;  %751 = vst.msk [vmem:[%s1363_s25] sm:$0x3] %vm741_vm6, %v750_v38 }

// kernel: _lambda_.12
= control target key start
LH: loop header
LB: loop body
LE: loop exit
PB: predicated region body
PF: predicated region fallthrough
CT: control target
= control target key end

     0   :  { %v1957_v1 = vmov 0   ;;  %vm135_vm0 = vcmask 392192   ;;  %s2493_s8 = inlined_call_operand.vmem [shape: bf16[48,512], index: 8, kind: input, shape index: {}]   ;;  %s2494_s9 = inlined_call_operand.vmem [shape: bf16[48,512], index: 9, kind: input, shape index: {}]   ;;  %s2495_s0 = inlined_call_operand.vmem [shape: bf16[1,48], index: 0, kind: input, shape index: {}]   ;;  %s2496_s10 = inlined_call_operand.vmem [shape: bf16[48,512], index: 10, kind: input, shape index: {}]   ;;  %s2497_s1 = inlined_call_operand.vmem [shape: bf16[1,48], index: 1, kind: input, shape index: {}]   ;;  %s2498_s11 = inlined_call_operand.vmem [shape: bf16[48,512], index: 11, kind: input, shape index: {}]   ;;  %s2499_s2 = inlined_call_operand.vmem [shape: bf16[1,48], index: 2, kind: input, shape index: {}]   ;;  %s2500_s12 = inlined_call_operand.vmem [shape: bf16[48,512], index: 12, kind: input, shape index: {}]   ;;  %s2501_s13 = inlined_call_operand.vmem [shape: bf16[48,512], index: 13, kind: input, shape index: {}]   ;;  %s2502_s3 = inlined_call_operand.vmem [shape: bf16[1,48], index: 3, kind: input, shape index: {}]   ;;  %s2503_s14 = inlined_call_operand.vmem [shape: bf16[48,512], index: 14, kind: input, shape index: {}]   ;;  %s2504_s4 = inlined_call_operand.vmem [shape: bf16[1,48], index: 4, kind: input, shape index: {}]   ;;  %s2505_s15 = inlined_call_operand.vmem [shape: bf16[48,512], index: 15, kind: input, shape index: {}]   ;;  %s2506_s5 = inlined_call_operand.vmem [shape: bf16[1,48], index: 5, kind: input, shape index: {}]   ;;  %s2507_s6 = inlined_call_operand.vmem [shape: bf16[1,48], index: 6, kind: input, shape index: {}]   ;;  %s2508_s7 = inlined_call_operand.vmem [shape: bf16[1,48], index: 7, kind: input, shape index: {}]   ;;  %s2509_s16 = inlined_call_operand.vmem [shape: f32[1,512], index: 16, kind: output, shape index: {0}]   ;;  %s2510_s17 = inlined_call_operand.vmem [shape: f32[1,512], index: 17, kind: output, shape index: {1}]   ;;  %s2511_s18 = inlined_call_operand.vmem [shape: f32[1,512], index: 18, kind: output, shape index: {2}]   ;;  %s2512_s19 = inlined_call_operand.vmem [shape: f32[1,512], index: 19, kind: output, shape index: {3}]   ;;  %s2513_s20 = inlined_call_operand.vmem [shape: f32[1,512], index: 20, kind: output, shape index: {4}]   ;;  %s2514_s21 = inlined_call_operand.vmem [shape: f32[1,512], index: 21, kind: output, shape index: {5}]   ;;  %s2515_s22 = inlined_call_operand.vmem [shape: f32[1,512], index: 22, kind: output, shape index: {6}]   ;;  %s2516_s23 = inlined_call_operand.vmem [shape: f32[1,512], index: 23, kind: output, shape index: {7}]  }
   0x1   :  { %2522 = sst [smem:[#allocation2_spill]] %s2493_s8  ;;  %171 = vmatprep.mubr.bf16.mxu0 %v1957_v1  ;;  %212 = vmatprep.mubr.bf16.mxu1 %v1957_v1  ;;  %v537_v54 = vld [vmem:[%s2502_s3] sm:$0x1] }
   0x2   :  { %2523 = sst [smem:[#allocation3_spill]] %s2494_s9  ;;  %s2530_s24 = sld [smem:[#allocation2_spill]] }
   0x3   :  { %2524 = sst [smem:[#allocation4_spill]] %s2495_s0 }
   0x4   :  { %2525 = sst [smem:[#allocation5_spill]] %s2496_s10  ;;  %s2531_s10 = sld [smem:[#allocation3_spill]] }
   0x5   :  { %2526 = sst [smem:[#allocation6_spill]] %s2497_s1  ;;  %s2532_s30 = sld [smem:[#allocation4_spill]] }
   0x6   :  { %2527 = sst [smem:[#allocation7_spill]] %s2498_s11  ;;  %s2533_s29 = sld [smem:[#allocation5_spill]] }
   0x7   :  { %2528 = sst [smem:[#allocation8_spill]] %s2499_s2  ;;  %s2534_s11 = sld [smem:[#allocation6_spill]] }
   0x8   :  { %2529 = sst [smem:[#allocation9_spill]] %s2500_s12  ;;  %v1749_v0 = vld [vmem:[%s2530_s24 + $0x4] ss:$16 sps:$4 sm:$0xff]   ;;  %v1751_v2 = vld [vmem:[%s2530_s24 + $0xc] ss:$16 sps:$4 sm:$0xff]   ;;  %s2535_s28 = sld [smem:[#allocation7_spill]] }
   0x9   :  { %139 = vmatprep.subr.bf16.mxu0 %v1749_v0  ;;  %v1753_v3 = vld [vmem:[%s2530_s24] ss:$16 sps:$4 sm:$0xff]   ;;  %v1754_v4 = vld [vmem:[%s2530_s24 + $0x8] ss:$16 sps:$4 sm:$0xff]   ;;  %180 = vmatprep.subr.bf16.mxu1 %v1751_v2  ;;  %v1755_v5 = vld [vmem:[%s2530_s24 + $0x24] ss:$16 sps:$4 sm:$0xff]  }
   0xa   :  { %140 = vmatpush1.bf16.msra.mxu0 %v1753_v3  ;;  %181 = vmatpush1.bf16.msra.mxu1 %v1754_v4  ;;  %v1757_v6 = vld [vmem:[%s2530_s24 + $0x2c] ss:$16 sps:$4 sm:$0xff]   ;;  %v1759_v7 = vld [vmem:[%s2530_s24 + $0x20] ss:$16 sps:$4 sm:$0xff]   ;;  %v1760_v8 = vld [vmem:[%s2530_s24 + $0x28] ss:$16 sps:$4 sm:$0xff]  }
   0xb   :  { %141 = vmatprep.subr.bf16.mxu0 %v1755_v5  ;;  %182 = vmatprep.subr.bf16.mxu1 %v1757_v6  ;;  %v1761_v9 = vld [vmem:[%s2530_s24 + $0x44] ss:$16 sps:$4 sm:$0xff]   ;;  %v1763_v10 = vld [vmem:[%s2530_s24 + $0x4c] ss:$16 sps:$4 sm:$0xff]   ;;  %v1765_v11 = vld [vmem:[%s2530_s24 + $0x40] ss:$16 sps:$4 sm:$0xff]  }
   0xc   :  { %v1766_v12 = vld [vmem:[%s2530_s24 + $0x48] ss:$16 sps:$4 sm:$0xff]   ;;  %v1769_v13 = vld [vmem:[%s2531_s10 + $0x4] ss:$16 sps:$4 sm:$0xff]   ;;  %v62_v14 = vld [vmem:[%s2532_s30] sm:$0x1] }
   0xd   :  { %v1772_v15 = vld [vmem:[%s2531_s10 + $0xc] ss:$16 sps:$4 sm:$0xff]   ;;  %v1767_v16 = vld [vmem:[%s2531_s10] ss:$16 sps:$4 sm:$0xff]   ;;  %v1770_v17 = vld [vmem:[%s2531_s10 + $0x8] ss:$16 sps:$4 sm:$0xff]  }
   0xe   :  { %142 = vmatpush1.bf16.msra.mxu0 %v1759_v7  ;;  %183 = vmatpush1.bf16.msra.mxu1 %v1760_v8  ;;  %v1775_v18 = vld [vmem:[%s2531_s10 + $0x24] ss:$16 sps:$4 sm:$0xff]   ;;  %v1778_v19 = vld [vmem:[%s2531_s10 + $0x2c] ss:$16 sps:$4 sm:$0xff]   ;;  %v1773_v20 = vld [vmem:[%s2531_s10 + $0x20] ss:$16 sps:$4 sm:$0xff]  }
   0xf   :  { %143 = vmatprep.subr.bf16.mxu0 %v1761_v9  ;;  %184 = vmatprep.subr.bf16.mxu1 %v1763_v10  ;;  %v1776_v21 = vld [vmem:[%s2531_s10 + $0x28] ss:$16 sps:$4 sm:$0xff]   ;;  %v1781_v22 = vld [vmem:[%s2531_s10 + $0x44] ss:$16 sps:$4 sm:$0xff]   ;;  %v1784_v23 = vld [vmem:[%s2531_s10 + $0x4c] ss:$16 sps:$4 sm:$0xff]  }
  0x10   :  { %v1779_v24 = vld [vmem:[%s2531_s10 + $0x40] ss:$16 sps:$4 sm:$0xff]   ;;  %v1782_v25 = vld [vmem:[%s2531_s10 + $0x48] ss:$16 sps:$4 sm:$0xff]   ;;  %v1787_v26 = vld [vmem:[%s2533_s29 + $0x4] ss:$16 sps:$4 sm:$0xff]  }
  0x11   :  { %v1790_v27 = vld [vmem:[%s2533_s29 + $0xc] ss:$16 sps:$4 sm:$0xff]   ;;  %v221_v28 = vld [vmem:[%s2534_s11] sm:$0x1]  ;;  %v1788_v30 = vld [vmem:[%s2533_s29 + $0x8] ss:$16 sps:$4 sm:$0xff]  }
  0x12   :  { %144 = vmatpush1.bf16.msra.mxu0 %v1765_v11  ;;  %185 = vmatpush1.bf16.msra.mxu1 %v1766_v12  ;;  %v1785_v29 = vld [vmem:[%s2533_s29] ss:$16 sps:$4 sm:$0xff]   ;;  %v1793_v31 = vld [vmem:[%s2533_s29 + $0x24] ss:$16 sps:$4 sm:$0xff]   ;;  %v1796_v32 = vld [vmem:[%s2533_s29 + $0x2c] ss:$16 sps:$4 sm:$0xff]  }
  0x13   :  { %297 = vmatprep.subr.bf16.mxu0 %v1769_v13  ;;  %338 = vmatprep.subr.bf16.mxu1 %v1772_v15  ;;  %v1791_v33 = vld [vmem:[%s2533_s29 + $0x20] ss:$16 sps:$4 sm:$0xff]   ;;  %v1794_v34 = vld [vmem:[%s2533_s29 + $0x28] ss:$16 sps:$4 sm:$0xff]   ;;  %v1799_v35 = vld [vmem:[%s2533_s29 + $0x44] ss:$16 sps:$4 sm:$0xff]  }
  0x14   :  { %v1802_v36 = vld [vmem:[%s2533_s29 + $0x4c] ss:$16 sps:$4 sm:$0xff]   ;;  %v1797_v37 = vld [vmem:[%s2533_s29 + $0x40] ss:$16 sps:$4 sm:$0xff]   ;;  %v1800_v38 = vld [vmem:[%s2533_s29 + $0x48] ss:$16 sps:$4 sm:$0xff]  }
  0x15   :  { %1647 = vmatmul.mubr.msk.bf16.vlgmr.msra.gmra.mrb[0].mxu0 %vm135_vm0, %v62_v14  ;;  %1648 = vmatmul.mubr.msk.bf16.vlgmr.msra.gmra.mrb[0].mxu1 %vm135_vm0, %v62_v14  ;;  %v1805_v39 = vld [vmem:[%s2535_s28 + $0x4] ss:$16 sps:$4 sm:$0xff]   ;;  %v1808_v40 = vld [vmem:[%s2535_s28 + $0xc] ss:$16 sps:$4 sm:$0xff]   ;;  %s2536_s11 = sld [smem:[#allocation8_spill]]  ;;  %s2537_s12 = sld [smem:[#allocation9_spill]] }
  0x16   :  { %298 = vmatpush1.bf16.msra.mxu0 %v1767_v16  ;;  %339 = vmatpush1.bf16.msra.mxu1 %v1770_v17  ;;  %v1803_v42 = vld [vmem:[%s2535_s28] ss:$16 sps:$4 sm:$0xff]   ;;  %v1806_v43 = vld [vmem:[%s2535_s28 + $0x8] ss:$16 sps:$4 sm:$0xff]   ;;  %v1811_v44 = vld [vmem:[%s2535_s28 + $0x24] ss:$16 sps:$4 sm:$0xff]  }
  0x17   :  { %299 = vmatprep.subr.bf16.mxu0 %v1775_v18  ;;  %340 = vmatprep.subr.bf16.mxu1 %v1778_v19  ;;  %v1814_v45 = vld [vmem:[%s2535_s28 + $0x2c] ss:$16 sps:$4 sm:$0xff]   ;;  %v1809_v46 = vld [vmem:[%s2535_s28 + $0x20] ss:$16 sps:$4 sm:$0xff]   ;;  %v1812_v47 = vld [vmem:[%s2535_s28 + $0x28] ss:$16 sps:$4 sm:$0xff]  }
  0x18   :  { %329 = vmatprep.mubr.bf16.mxu0 %v1957_v1  ;;  %370 = vmatprep.mubr.bf16.mxu1 %v1957_v1  ;;  %v1817_v48 = vld [vmem:[%s2535_s28 + $0x44] ss:$16 sps:$4 sm:$0xff]   ;;  %v1820_v49 = vld [vmem:[%s2535_s28 + $0x4c] ss:$16 sps:$4 sm:$0xff]   ;;  %v1815_v50 = vld [vmem:[%s2535_s28 + $0x40] ss:$16 sps:$4 sm:$0xff]  }
  0x19   :  { %v1818_v51 = vld [vmem:[%s2535_s28 + $0x48] ss:$16 sps:$4 sm:$0xff]   ;;  %v1841_v2 = vld [vmem:[%s2501_s13 + $0x4] ss:$16 sps:$4 sm:$0xff]   ;;  %v1844_v3 = vld [vmem:[%s2501_s13 + $0xc] ss:$16 sps:$4 sm:$0xff]  }
  0x1a   :  { %300 = vmatpush1.bf16.msra.mxu0 %v1773_v20  ;;  %341 = vmatpush1.bf16.msra.mxu1 %v1776_v21  ;;  %v695_v4 = vld [vmem:[%s2504_s4] sm:$0x1]  ;;  %v1842_v6 = vld [vmem:[%s2501_s13 + $0x8] ss:$16 sps:$4 sm:$0xff]   ;;  %v1847_v7 = vld [vmem:[%s2501_s13 + $0x24] ss:$16 sps:$4 sm:$0xff]  }
  0x1b   :  { %301 = vmatprep.subr.bf16.mxu0 %v1781_v22  ;;  %342 = vmatprep.subr.bf16.mxu1 %v1784_v23  ;;  %v379_v41 = vld [vmem:[%s2536_s11] sm:$0x1]  ;;  %v1823_v52 = vld [vmem:[%s2537_s12 + $0x4] ss:$16 sps:$4 sm:$0xff]   ;;  %v1826_v53 = vld [vmem:[%s2537_s12 + $0xc] ss:$16 sps:$4 sm:$0xff]  }
  0x1c   :  { %v1821_v55 = vld [vmem:[%s2537_s12] ss:$16 sps:$4 sm:$0xff]   ;;  %v1824_v56 = vld [vmem:[%s2537_s12 + $0x8] ss:$16 sps:$4 sm:$0xff]   ;;  %v1829_v57 = vld [vmem:[%s2537_s12 + $0x24] ss:$16 sps:$4 sm:$0xff]  }
  0x1d   :  { %v1832_v58 = vld [vmem:[%s2537_s12 + $0x2c] ss:$16 sps:$4 sm:$0xff]   ;;  %v1827_v59 = vld [vmem:[%s2537_s12 + $0x20] ss:$16 sps:$4 sm:$0xff]   ;;  %v1830_v60 = vld [vmem:[%s2537_s12 + $0x28] ss:$16 sps:$4 sm:$0xff]  }
  0x1e   :  { %302 = vmatpush1.bf16.msra.mxu0 %v1779_v24  ;;  %343 = vmatpush1.bf16.msra.mxu1 %v1782_v25  ;;  %v1835_v61 = vld [vmem:[%s2537_s12 + $0x44] ss:$16 sps:$4 sm:$0xff]   ;;  %v1838_v62 = vld [vmem:[%s2537_s12 + $0x4c] ss:$16 sps:$4 sm:$0xff]   ;;  %v1833_v63 = vld [vmem:[%s2537_s12 + $0x40] ss:$16 sps:$4 sm:$0xff]  }
  0x1f   :  { %455 = vmatprep.subr.bf16.mxu0 %v1787_v26  ;;  %496 = vmatprep.subr.bf16.mxu1 %v1790_v27  ;;  %v1836_v0 = vld [vmem:[%s2537_s12 + $0x48] ss:$16 sps:$4 sm:$0xff]   ;;  %v1839_v5 = vld [vmem:[%s2501_s13] ss:$16 sps:$4 sm:$0xff]   ;;  %v1850_v8 = vld [vmem:[%s2501_s13 + $0x2c] ss:$16 sps:$4 sm:$0xff]  }
  0x20   :  { %v1845_v9 = vld [vmem:[%s2501_s13 + $0x20] ss:$16 sps:$4 sm:$0xff]   ;;  %v1848_v10 = vld [vmem:[%s2501_s13 + $0x28] ss:$16 sps:$4 sm:$0xff]   ;;  %v1853_v11 = vld [vmem:[%s2501_s13 + $0x44] ss:$16 sps:$4 sm:$0xff]  }
  0x21   :  { %1661 = vmatmul.mubr.msk.bf16.vlgmr.msra.gmra.mrb[4].mxu0 %vm135_vm0, %v221_v28  ;;  %1662 = vmatmul.mubr.msk.bf16.vlgmr.msra.gmra.mrb[4].mxu1 %vm135_vm0, %v221_v28  ;;  %v1856_v12 = vld [vmem:[%s2501_s13 + $0x4c] ss:$16 sps:$4 sm:$0xff]   ;;  %v1851_v13 = vld [vmem:[%s2501_s13 + $0x40] ss:$16 sps:$4 sm:$0xff]   ;;  %v1854_v14 = vld [vmem:[%s2501_s13 + $0x48] ss:$16 sps:$4 sm:$0xff]  }
  0x22   :  { %456 = vmatpush1.bf16.msra.mxu0 %v1785_v29  ;;  %497 = vmatpush1.bf16.msra.mxu1 %v1788_v30  ;;  %v1859_v15 = vld [vmem:[%s2503_s14 + $0x4] ss:$16 sps:$4 sm:$0xff]   ;;  %v1862_v16 = vld [vmem:[%s2503_s14 + $0xc] ss:$16 sps:$4 sm:$0xff]   ;;  %v853_v17 = vld [vmem:[%s2506_s5] sm:$0x1] }
  0x23   :  { %457 = vmatprep.subr.bf16.mxu0 %v1793_v31  ;;  %498 = vmatprep.subr.bf16.mxu1 %v1796_v32  ;;  %v1857_v18 = vld [vmem:[%s2503_s14] ss:$16 sps:$4 sm:$0xff]   ;;  %v1860_v19 = vld [vmem:[%s2503_s14 + $0x8] ss:$16 sps:$4 sm:$0xff]   ;;  %v1865_v20 = vld [vmem:[%s2503_s14 + $0x24] ss:$16 sps:$4 sm:$0xff]  }
  0x24   :  { %487 = vmatprep.mubr.bf16.mxu0 %v1957_v1  ;;  %528 = vmatprep.mubr.bf16.mxu1 %v1957_v1  ;;  %v1868_v21 = vld [vmem:[%s2503_s14 + $0x2c] ss:$16 sps:$4 sm:$0xff]   ;;  %v1863_v22 = vld [vmem:[%s2503_s14 + $0x20] ss:$16 sps:$4 sm:$0xff]   ;;  %v1866_v23 = vld [vmem:[%s2503_s14 + $0x28] ss:$16 sps:$4 sm:$0xff]  }
  0x25   :  { %v1871_v24 = vld [vmem:[%s2503_s14 + $0x44] ss:$16 sps:$4 sm:$0xff]   ;;  %v1874_v25 = vld [vmem:[%s2503_s14 + $0x4c] ss:$16 sps:$4 sm:$0xff]   ;;  %v1869_v26 = vld [vmem:[%s2503_s14 + $0x40] ss:$16 sps:$4 sm:$0xff]  }
  0x26   :  { %458 = vmatpush1.bf16.msra.mxu0 %v1791_v33  ;;  %499 = vmatpush1.bf16.msra.mxu1 %v1794_v34  ;;  %v1872_v27 = vld [vmem:[%s2503_s14 + $0x48] ss:$16 sps:$4 sm:$0xff]   ;;  %v1877_v28 = vld [vmem:[%s2505_s15 + $0x4] ss:$16 sps:$4 sm:$0xff]   ;;  %v1880_v29 = vld [vmem:[%s2505_s15 + $0xc] ss:$16 sps:$4 sm:$0xff]  }
  0x27   :  { %459 = vmatprep.subr.bf16.mxu0 %v1799_v35  ;;  %500 = vmatprep.subr.bf16.mxu1 %v1802_v36  ;;  %v1011_v30 = vld [vmem:[%s2507_s6] sm:$0x1]  ;;  %v1878_v32 = vld [vmem:[%s2505_s15 + $0x8] ss:$16 sps:$4 sm:$0xff]   ;;  %v1883_v33 = vld [vmem:[%s2505_s15 + $0x24] ss:$16 sps:$4 sm:$0xff]  }
  0x28   :  { %v1875_v31 = vld [vmem:[%s2505_s15] ss:$16 sps:$4 sm:$0xff]   ;;  %v1886_v34 = vld [vmem:[%s2505_s15 + $0x2c] ss:$16 sps:$4 sm:$0xff]   ;;  %v1884_v36 = vld [vmem:[%s2505_s15 + $0x28] ss:$16 sps:$4 sm:$0xff]  }
  0x29   :  { %v1881_v35 = vld [vmem:[%s2505_s15 + $0x20] ss:$16 sps:$4 sm:$0xff]  }
  0x2a   :  { %460 = vmatpush1.bf16.msra.mxu0 %v1797_v37  ;;  %501 = vmatpush1.bf16.msra.mxu1 %v1800_v38  ;;  %v1889_v37 = vld [vmem:[%s2505_s15 + $0x44] ss:$16 sps:$4 sm:$0xff]   ;;  %v1892_v38 = vld [vmem:[%s2505_s15 + $0x4c] ss:$16 sps:$4 sm:$0xff]  }
  0x2b   :  { %613 = vmatprep.subr.bf16.mxu0 %v1805_v39  ;;  %654 = vmatprep.subr.bf16.mxu1 %v1808_v40  ;;  %v1887_v39 = vld [vmem:[%s2505_s15 + $0x40] ss:$16 sps:$4 sm:$0xff]   ;;  %v1890_v40 = vld [vmem:[%s2505_s15 + $0x48] ss:$16 sps:$4 sm:$0xff]  }
  0x2d   :  { %1675 = vmatmul.mubr.msk.bf16.vlgmr.msra.gmra.mrb[8].mxu0 %vm135_vm0, %v379_v41  ;;  %1676 = vmatmul.mubr.msk.bf16.vlgmr.msra.gmra.mrb[8].mxu1 %vm135_vm0, %v379_v41  ;;  %v1169_v41 = vld [vmem:[%s2508_s7] sm:$0x1] }
  0x2e   :  { %614 = vmatpush1.bf16.msra.mxu0 %v1803_v42  ;;  %655 = vmatpush1.bf16.msra.mxu1 %v1806_v43 }
  0x2f   :  { %615 = vmatprep.subr.bf16.mxu0 %v1811_v44  ;;  %656 = vmatprep.subr.bf16.mxu1 %v1814_v45 }
  0x30   :  { %645 = vmatprep.mubr.bf16.mxu0 %v1957_v1  ;;  %686 = vmatprep.mubr.bf16.mxu1 %v1957_v1 }
  0x32   :  { %616 = vmatpush1.bf16.msra.mxu0 %v1809_v46  ;;  %657 = vmatpush1.bf16.msra.mxu1 %v1812_v47 }
  0x33   :  { %617 = vmatprep.subr.bf16.mxu0 %v1817_v48  ;;  %658 = vmatprep.subr.bf16.mxu1 %v1820_v49  ;;  %v1958_v49 = vmov 1966171168  }
  0x36   :  { %618 = vmatpush1.bf16.msra.mxu0 %v1815_v50  ;;  %659 = vmatpush1.bf16.msra.mxu1 %v1818_v51  ;;  %v1338_v50 = vunpack.c.l.s4 %v1958_v49  ;;  %v1340_v51 = vlaneseq }
  0x37   :  { %771 = vmatprep.subr.bf16.mxu0 %v1823_v52  ;;  %812 = vmatprep.subr.bf16.mxu1 %v1826_v53 }
  0x38   :  { %v1339_v52 = vunpack.c.0.s8 %v1338_v50  ;;  %v1341_v53 = vshrl.u32 %v1340_v51, 7  ;;  %vm2427_vm1 = vcmp.lt.s32.totalorder %v1340_v51, 512 }
  0x39   :  { %1689 = vmatmul.mubr.msk.bf16.vlgmr.msra.gmra.mrb[12].mxu0 %vm135_vm0, %v537_v54  ;;  %1690 = vmatmul.mubr.msk.bf16.vlgmr.msra.gmra.mrb[12].mxu1 %vm135_vm0, %v537_v54 }
  0x3a   :  { %772 = vmatpush1.bf16.msra.mxu0 %v1821_v55  ;;  %813 = vmatpush1.bf16.msra.mxu1 %v1824_v56  ;;  %v2423_v56 = vsub.s32 %v1339_v52, %v1341_v53 }
  0x3b   :  { %773 = vmatprep.subr.bf16.mxu0 %v1829_v57  ;;  %814 = vmatprep.subr.bf16.mxu1 %v1832_v58 }
  0x3c   :  { %803 = vmatprep.mubr.bf16.mxu0 %v1957_v1  ;;  %844 = vmatprep.mubr.bf16.mxu1 %v1957_v1 }
  0x3e   :  { %774 = vmatpush1.bf16.msra.mxu0 %v1827_v59  ;;  %815 = vmatpush1.bf16.msra.mxu1 %v1830_v60 }
  0x3f   :  { %775 = vmatprep.subr.bf16.mxu0 %v1835_v61  ;;  %816 = vmatprep.subr.bf16.mxu1 %v1838_v62 }
  0x42   :  { %776 = vmatpush1.bf16.msra.mxu0 %v1833_v63  ;;  %817 = vmatpush1.bf16.msra.mxu1 %v1836_v0 }
  0x43   :  { %929 = vmatprep.subr.bf16.mxu0 %v1841_v2  ;;  %970 = vmatprep.subr.bf16.mxu1 %v1844_v3 }
  0x45   :  { %1703 = vmatmul.mubr.msk.bf16.vlgmr.msra.gmra.mrb[16].mxu0 %vm135_vm0, %v695_v4  ;;  %1704 = vmatmul.mubr.msk.bf16.vlgmr.msra.gmra.mrb[16].mxu1 %vm135_vm0, %v695_v4 }
  0x46   :  { %930 = vmatpush1.bf16.msra.mxu0 %v1839_v5  ;;  %971 = vmatpush1.bf16.msra.mxu1 %v1842_v6 }
  0x47   :  { %931 = vmatprep.subr.bf16.mxu0 %v1847_v7  ;;  %972 = vmatprep.subr.bf16.mxu1 %v1850_v8 }
  0x48   :  { %961 = vmatprep.mubr.bf16.mxu0 %v1957_v1  ;;  %1002 = vmatprep.mubr.bf16.mxu1 %v1957_v1 }
  0x4a   :  { %932 = vmatpush1.bf16.msra.mxu0 %v1845_v9  ;;  %973 = vmatpush1.bf16.msra.mxu1 %v1848_v10 }
  0x4b   :  { %933 = vmatprep.subr.bf16.mxu0 %v1853_v11  ;;  %974 = vmatprep.subr.bf16.mxu1 %v1856_v12 }
  0x4e   :  { %934 = vmatpush1.bf16.msra.mxu0 %v1851_v13  ;;  %975 = vmatpush1.bf16.msra.mxu1 %v1854_v14 }
  0x4f   :  { %1087 = vmatprep.subr.bf16.mxu0 %v1859_v15  ;;  %1128 = vmatprep.subr.bf16.mxu1 %v1862_v16 }
  0x51   :  { %1717 = vmatmul.mubr.msk.bf16.vlgmr.msra.gmra.mrb[20].mxu0 %vm135_vm0, %v853_v17  ;;  %1718 = vmatmul.mubr.msk.bf16.vlgmr.msra.gmra.mrb[20].mxu1 %vm135_vm0, %v853_v17 }
  0x52   :  { %1088 = vmatpush1.bf16.msra.mxu0 %v1857_v18  ;;  %1129 = vmatpush1.bf16.msra.mxu1 %v1860_v19 }
  0x53   :  { %1089 = vmatprep.subr.bf16.mxu0 %v1865_v20  ;;  %1130 = vmatprep.subr.bf16.mxu1 %v1868_v21 }
  0x54   :  { %1119 = vmatprep.mubr.bf16.mxu0 %v1957_v1  ;;  %1160 = vmatprep.mubr.bf16.mxu1 %v1957_v1 }
  0x56   :  { %1090 = vmatpush1.bf16.msra.mxu0 %v1863_v22  ;;  %1131 = vmatpush1.bf16.msra.mxu1 %v1866_v23 }
  0x57   :  { %1091 = vmatprep.subr.bf16.mxu0 %v1871_v24  ;;  %1132 = vmatprep.subr.bf16.mxu1 %v1874_v25 }
  0x5a   :  { %1092 = vmatpush1.bf16.msra.mxu0 %v1869_v26  ;;  %1133 = vmatpush1.bf16.msra.mxu1 %v1872_v27 }
  0x5b   :  { %1245 = vmatprep.subr.bf16.mxu0 %v1877_v28  ;;  %1286 = vmatprep.subr.bf16.mxu1 %v1880_v29 }
  0x5d   :  { %1731 = vmatmul.mubr.msk.bf16.vlgmr.msra.gmra.mrb[24].mxu0 %vm135_vm0, %v1011_v30  ;;  %1732 = vmatmul.mubr.msk.bf16.vlgmr.msra.gmra.mrb[24].mxu1 %vm135_vm0, %v1011_v30 }
  0x5e   :  { %1246 = vmatpush1.bf16.msra.mxu0 %v1875_v31  ;;  %1287 = vmatpush1.bf16.msra.mxu1 %v1878_v32 }
  0x5f   :  { %1247 = vmatprep.subr.bf16.mxu0 %v1883_v33  ;;  %1288 = vmatprep.subr.bf16.mxu1 %v1886_v34 }
  0x60   :  { %1277 = vmatprep.mubr.bf16.mxu0 %v1957_v1  ;;  %1318 = vmatprep.mubr.bf16.mxu1 %v1957_v1 }
  0x62   :  { %1248 = vmatpush1.bf16.msra.mxu0 %v1881_v35  ;;  %1289 = vmatpush1.bf16.msra.mxu1 %v1884_v36 }
  0x63   :  { %1249 = vmatprep.subr.bf16.mxu0 %v1889_v37  ;;  %1290 = vmatprep.subr.bf16.mxu1 %v1892_v38 }
  0x66   :  { %1250 = vmatpush1.bf16.msra.mxu0 %v1887_v39  ;;  %1291 = vmatpush1.bf16.msra.mxu1 %v1890_v40 }
  0x69   :  { %1745 = vmatmul.mubr.msk.bf16.vlgmr.msra.gmra.mrb[28].mxu0 %vm135_vm0, %v1169_v41  ;;  %1746 = vmatmul.mubr.msk.bf16.vlgmr.msra.gmra.mrb[28].mxu1 %vm135_vm0, %v1169_v41 }
  0xe8   :  { %v173_v1 = vpop.f32.mrb[0].mxu0  ;;  %v214_v42 = vpop.f32.mrb[0].mxu1 }
  0xe9   :  { %1893 = vtanh.f32 %v173_v1  ;;  %v175_v43 = vpop.f32.mrb[1].mxu0  ;;  %v216_v44 = vpop.f32.mrb[1].mxu1 }
  0xea   :  { %1895 = vtanh.f32 %v214_v42  ;;  %v177_v45 = vpop.f32.mrb[2].mxu0  ;;  %v218_v46 = vpop.f32.mrb[2].mxu1 }
  0xeb   :  { %1897 = vtanh.f32 %v175_v43  ;;  %v178_v47 = vpop.f32.mrb[3].mxu0  ;;  %v219_v48 = vpop.f32.mrb[3].mxu1 }
  0xec   :  { %1899 = vtanh.f32 %v216_v44 }
  0xf3   :  { %v1894_v54 = vpop.eup %1893 }
  0xf4   :  { %v1896_v55 = vpop.eup %1895  ;;  %v331_v57 = vpop.f32.mrb[4].mxu0 }
  0xf5   :  { %v372_v58 = vpop.f32.mrb[4].mxu1  ;;  %v1898_v59 = vpop.eup %1897  ;;  %1901 = vtanh.f32 %v331_v57 }
  0xf6   :  { %v333_v60 = vpop.f32.mrb[5].mxu0  ;;  %v374_v61 = vpop.f32.mrb[5].mxu1  ;;  %v1335_v63 = vcombine.low %v1894_v54, %v1898_v59  ;;  %1903 = vtanh.f32 %v372_v58 }
  0xf7   :  { %v1900_v62 = vpop.eup %1899  ;;  %v335_v0 = vpop.f32.mrb[6].mxu0  ;;  %1905 = vtanh.f32 %v333_v60 }
  0xf8   :  { %v376_v2 = vpop.f32.mrb[6].mxu1  ;;  %v1336_v3 = vcombine.low %v1896_v55, %v1900_v62  ;;  %v336_v4 = vpop.f32.mrb[7].mxu0  ;;  %v1343_v6 = vrot.slane %v1335_v63, %v2423_v56  ;;  %1907 = vtanh.f32 %v374_v61 }
  0xf9   :  { %v377_v5 = vpop.f32.mrb[7].mxu1 }
  0xfa   :  { %v1350_v7 = vrot.slane %v1336_v3, %v2423_v56 }
  0xfc   :  { %v1351_v8 = vcombine.low %v1343_v6, %v1350_v7 }
  0xfe   :  { %v1358_v10 = vrot.slane %v1351_v8, %v2423_v56 }
  0xff   :  { %v1902_v11 = vpop.eup %1901 }
 0x100   :  { %1364 = vst.msk [vmem:[%s2509_s16] sm:$0xf] %vm2427_vm1, %v1358_v10  ;;  %v1904_v12 = vpop.eup %1903  ;;  %v489_v13 = vpop.f32.mrb[8].mxu0 }
 0x101   :  { %v530_v14 = vpop.f32.mrb[8].mxu1  ;;  %v1906_v15 = vpop.eup %1905  ;;  %1909 = vtanh.f32 %v489_v13 }
 0x102   :  { %v491_v16 = vpop.f32.mrb[9].mxu0  ;;  %v532_v17 = vpop.f32.mrb[9].mxu1  ;;  %v1373_v19 = vcombine.low %v1902_v11, %v1906_v15  ;;  %1911 = vtanh.f32 %v530_v14 }
 0x103   :  { %v1908_v18 = vpop.eup %1907  ;;  %v493_v20 = vpop.f32.mrb[10].mxu0  ;;  %1913 = vtanh.f32 %v491_v16 }
 0x104   :  { %v534_v21 = vpop.f32.mrb[10].mxu1  ;;  %v1374_v22 = vcombine.low %v1904_v12, %v1908_v18  ;;  %v494_v23 = vpop.f32.mrb[11].mxu0  ;;  %v1381_v25 = vrot.slane %v1373_v19, %v2423_v56  ;;  %1915 = vtanh.f32 %v532_v17 }
 0x105   :  { %v535_v24 = vpop.f32.mrb[11].mxu1 }
 0x106   :  { %v1388_v26 = vrot.slane %v1374_v22, %v2423_v56 }
 0x108   :  { %v1389_v27 = vcombine.low %v1381_v25, %v1388_v26 }
 0x10a   :  { %v1396_v28 = vrot.slane %v1389_v27, %v2423_v56 }
 0x10b   :  { %v1910_v29 = vpop.eup %1909 }
 0x10c   :  { %1398 = vst.msk [vmem:[%s2510_s17] sm:$0xf] %vm2427_vm1, %v1396_v28  ;;  %v1912_v30 = vpop.eup %1911  ;;  %v647_v31 = vpop.f32.mrb[12].mxu0 }
 0x10d   :  { %v688_v32 = vpop.f32.mrb[12].mxu1  ;;  %v1914_v33 = vpop.eup %1913  ;;  %1917 = vtanh.f32 %v647_v31 }
 0x10e   :  { %v649_v34 = vpop.f32.mrb[13].mxu0  ;;  %v690_v35 = vpop.f32.mrb[13].mxu1  ;;  %v1407_v37 = vcombine.low %v1910_v29, %v1914_v33  ;;  %1919 = vtanh.f32 %v688_v32 }
 0x10f   :  { %v1916_v36 = vpop.eup %1915  ;;  %v651_v38 = vpop.f32.mrb[14].mxu0  ;;  %1921 = vtanh.f32 %v649_v34 }
 0x110   :  { %v692_v39 = vpop.f32.mrb[14].mxu1  ;;  %v1408_v40 = vcombine.low %v1912_v30, %v1916_v36  ;;  %v652_v41 = vpop.f32.mrb[15].mxu0  ;;  %v1415_v42 = vrot.slane %v1407_v37, %v2423_v56  ;;  %1923 = vtanh.f32 %v690_v35 }
 0x111   :  { %v693_v1 = vpop.f32.mrb[15].mxu1 }
 0x112   :  { %v1422_v43 = vrot.slane %v1408_v40, %v2423_v56 }
 0x114   :  { %v1423_v44 = vcombine.low %v1415_v42, %v1422_v43 }
 0x116   :  { %v1430_v45 = vrot.slane %v1423_v44, %v2423_v56 }
 0x117   :  { %v1918_v46 = vpop.eup %1917 }
 0x118   :  { %1432 = vst.msk [vmem:[%s2511_s18] sm:$0xf] %vm2427_vm1, %v1430_v45  ;;  %v1920_v47 = vpop.eup %1919  ;;  %v805_v48 = vpop.f32.mrb[16].mxu0 }
 0x119   :  { %v846_v49 = vpop.f32.mrb[16].mxu1  ;;  %v1922_v50 = vpop.eup %1921  ;;  %1925 = vtanh.f32 %v805_v48 }
 0x11a   :  { %v807_v51 = vpop.f32.mrb[17].mxu0  ;;  %v848_v52 = vpop.f32.mrb[17].mxu1  ;;  %v1441_v54 = vcombine.low %v1918_v46, %v1922_v50  ;;  %1927 = vtanh.f32 %v846_v49 }
 0x11b   :  { %v1924_v53 = vpop.eup %1923  ;;  %v809_v55 = vpop.f32.mrb[18].mxu0  ;;  %1929 = vtanh.f32 %v807_v51 }
 0x11c   :  { %v850_v57 = vpop.f32.mrb[18].mxu1  ;;  %v1442_v58 = vcombine.low %v1920_v47, %v1924_v53  ;;  %v810_v59 = vpop.f32.mrb[19].mxu0  ;;  %v1449_v61 = vrot.slane %v1441_v54, %v2423_v56  ;;  %1931 = vtanh.f32 %v848_v52 }
 0x11d   :  { %v851_v60 = vpop.f32.mrb[19].mxu1 }
 0x11e   :  { %v1456_v62 = vrot.slane %v1442_v58, %v2423_v56 }
 0x120   :  { %v1457_v63 = vcombine.low %v1449_v61, %v1456_v62 }
 0x122   :  { %v1464_v0 = vrot.slane %v1457_v63, %v2423_v56 }
 0x123   :  { %v1926_v2 = vpop.eup %1925 }
 0x124   :  { %1466 = vst.msk [vmem:[%s2512_s19] sm:$0xf] %vm2427_vm1, %v1464_v0  ;;  %v1928_v3 = vpop.eup %1927  ;;  %v963_v4 = vpop.f32.mrb[20].mxu0 }
 0x125   :  { %v1004_v5 = vpop.f32.mrb[20].mxu1  ;;  %v1930_v6 = vpop.eup %1929  ;;  %1933 = vtanh.f32 %v963_v4 }
 0x126   :  { %v965_v7 = vpop.f32.mrb[21].mxu0  ;;  %v1006_v8 = vpop.f32.mrb[21].mxu1  ;;  %v1475_v11 = vcombine.low %v1926_v2, %v1930_v6  ;;  %1935 = vtanh.f32 %v1004_v5 }
 0x127   :  { %v1932_v10 = vpop.eup %1931  ;;  %v967_v12 = vpop.f32.mrb[22].mxu0  ;;  %1937 = vtanh.f32 %v965_v7 }
 0x128   :  { %v1008_v13 = vpop.f32.mrb[22].mxu1  ;;  %v1476_v14 = vcombine.low %v1928_v3, %v1932_v10  ;;  %v968_v15 = vpop.f32.mrb[23].mxu0  ;;  %v1483_v17 = vrot.slane %v1475_v11, %v2423_v56  ;;  %1939 = vtanh.f32 %v1006_v8 }
 0x129   :  { %v1009_v16 = vpop.f32.mrb[23].mxu1 }
 0x12a   :  { %v1490_v18 = vrot.slane %v1476_v14, %v2423_v56 }
 0x12c   :  { %v1491_v19 = vcombine.low %v1483_v17, %v1490_v18 }
 0x12e   :  { %v1498_v20 = vrot.slane %v1491_v19, %v2423_v56 }
 0x12f   :  { %v1934_v21 = vpop.eup %1933 }
 0x130   :  { %1500 = vst.msk [vmem:[%s2513_s20] sm:$0xf] %vm2427_vm1, %v1498_v20  ;;  %v1936_v22 = vpop.eup %1935  ;;  %v1121_v23 = vpop.f32.mrb[24].mxu0 }
 0x131   :  { %v1162_v24 = vpop.f32.mrb[24].mxu1  ;;  %v1938_v25 = vpop.eup %1937  ;;  %1941 = vtanh.f32 %v1121_v23 }
 0x132   :  { %v1123_v26 = vpop.f32.mrb[25].mxu0  ;;  %v1164_v27 = vpop.f32.mrb[25].mxu1  ;;  %v1509_v29 = vcombine.low %v1934_v21, %v1938_v25  ;;  %1943 = vtanh.f32 %v1162_v24 }
 0x133   :  { %v1940_v28 = vpop.eup %1939  ;;  %v1125_v30 = vpop.f32.mrb[26].mxu0  ;;  %1945 = vtanh.f32 %v1123_v26 }
 0x134   :  { %v1166_v31 = vpop.f32.mrb[26].mxu1  ;;  %v1510_v32 = vcombine.low %v1936_v22, %v1940_v28  ;;  %v1126_v33 = vpop.f32.mrb[27].mxu0  ;;  %v1517_v35 = vrot.slane %v1509_v29, %v2423_v56  ;;  %1947 = vtanh.f32 %v1164_v27 }
 0x135   :  { %v1167_v34 = vpop.f32.mrb[27].mxu1 }
 0x136   :  { %v1524_v36 = vrot.slane %v1510_v32, %v2423_v56 }
 0x138   :  { %v1525_v37 = vcombine.low %v1517_v35, %v1524_v36 }
 0x13a   :  { %v1532_v38 = vrot.slane %v1525_v37, %v2423_v56 }
 0x13b   :  { %v1942_v39 = vpop.eup %1941 }
 0x13c   :  { %1534 = vst.msk [vmem:[%s2514_s21] sm:$0xf] %vm2427_vm1, %v1532_v38  ;;  %v1944_v40 = vpop.eup %1943  ;;  %v1279_v41 = vpop.f32.mrb[28].mxu0 }
 0x13d   :  { %v1320_v1 = vpop.f32.mrb[28].mxu1  ;;  %v1946_v42 = vpop.eup %1945  ;;  %1949 = vtanh.f32 %v1279_v41 }
 0x13e   :  { %v1281_v43 = vpop.f32.mrb[29].mxu0  ;;  %v1322_v44 = vpop.f32.mrb[29].mxu1  ;;  %v1543_v46 = vcombine.low %v1942_v39, %v1946_v42  ;;  %1951 = vtanh.f32 %v1320_v1 }
 0x13f   :  { %v1948_v45 = vpop.eup %1947  ;;  %v1283_v47 = vpop.f32.mrb[30].mxu0  ;;  %1953 = vtanh.f32 %v1281_v43 }
 0x140   :  { %v1324_v48 = vpop.f32.mrb[30].mxu1  ;;  %v1544_v49 = vcombine.low %v1944_v40, %v1948_v45  ;;  %v1284_v50 = vpop.f32.mrb[31].mxu0  ;;  %v1551_v52 = vrot.slane %v1543_v46, %v2423_v56  ;;  %1955 = vtanh.f32 %v1322_v44 }
 0x141   :  { %v1325_v51 = vpop.f32.mrb[31].mxu1 }
 0x142   :  { %v1558_v53 = vrot.slane %v1544_v49, %v2423_v56 }
 0x144   :  { %v1559_v54 = vcombine.low %v1551_v52, %v1558_v53 }
 0x146   :  { %v1566_v55 = vrot.slane %v1559_v54, %v2423_v56 }
 0x147   :  { %v1950_v57 = vpop.eup %1949 }
 0x148   :  { %1568 = vst.msk [vmem:[%s2515_s22] sm:$0xf] %vm2427_vm1, %v1566_v55  ;;  %v1952_v58 = vpop.eup %1951 }
 0x149   :  { %v1954_v59 = vpop.eup %1953 }
 0x14a   :  { %v1956_v60 = vpop.eup %1955  ;;  %v1577_v61 = vcombine.low %v1950_v57, %v1954_v59 }
 0x14b   :  { %v1578_v62 = vcombine.low %v1952_v58, %v1956_v60 }
 0x14c   :  { %v1585_v63 = vrot.slane %v1577_v61, %v2423_v56 }
 0x14d   :  { %v1592_v0 = vrot.slane %v1578_v62, %v2423_v56 }
 0x14f   :  { %v1593_v2 = vcombine.low %v1585_v63, %v1592_v0 }
 0x151   :  { %v1600_v3 = vrot.slane %v1593_v2, %v2423_v56 }
 0x153   :  { %1602 = vst.msk [vmem:[%s2516_s23] sm:$0xf] %vm2427_vm1, %v1600_v3 }

// kernel: _lambda_.15
= control target key start
LH: loop header
LB: loop body
LE: loop exit
PB: predicated region body
PF: predicated region fallthrough
CT: control target
= control target key end

     0   :  { %v170_v0 = vmov 0.0   ;;  %vm171_vm0 = vmmov 0   ;;  %vm117_vm1 = vcmask 31744   ;;  %s217_s1 = inlined_call_operand.vmem [shape: bf16[128,4], index: 1, kind: input, shape index: {}]   ;;  %s218_s0 = inlined_call_operand.vmem [shape: bf16[8,128], index: 0, kind: input, shape index: {}]   ;;  %s219_s2 = inlined_call_operand.vmem [shape: f32[8,4], index: 2, kind: output, shape index: {}]  }
   0x1   :  { %140 = vmatprep.subr.bf16.mxu0 %v170_v0  ;;  %v162_v1 = vld [vmem:[%s217_s1] sm:$0xff]   ;;  %156 = vmatprep.mubr.msk.bf16.mxu0 %vm171_vm0, %v170_v0  ;;  %v163_v2 = vld [vmem:[%s217_s1 + $0x8] sm:$0xff]   ;;  %v164_v3 = vld [vmem:[%s217_s1 + $0x10] sm:$0xff]  }
   0x2   :  { %141 = vmatpush3.bf16.msra.mxu0 %v162_v1  ;;  %v165_v4 = vld [vmem:[%s217_s1 + $0x18] sm:$0xff]   ;;  %v166_v5 = vld [vmem:[%s217_s1 + $0x20] sm:$0xff]   ;;  %v167_v6 = vld [vmem:[%s217_s1 + $0x28] sm:$0xff]  }
   0x3   :  { %142 = vmatprep.subr.bf16.mxu0 %v170_v0  ;;  %v168_v7 = vld [vmem:[%s217_s1 + $0x30] sm:$0xff]   ;;  %v169_v8 = vld [vmem:[%s217_s1 + $0x38] sm:$0xff]   ;;  %v12_v9 = vld [vmem:[%s218_s0] sm:$0xf] }
   0x6   :  { %143 = vmatpush3.bf16.msra.mxu0 %v163_v2 }
   0x7   :  { %144 = vmatprep.subr.bf16.mxu0 %v170_v0 }
   0xa   :  { %145 = vmatpush3.bf16.msra.mxu0 %v164_v3 }
   0xb   :  { %146 = vmatprep.subr.bf16.mxu0 %v170_v0 }
   0xe   :  { %147 = vmatpush3.bf16.msra.mxu0 %v165_v4 }
   0xf   :  { %148 = vmatprep.subr.bf16.mxu0 %v170_v0 }
  0x12   :  { %149 = vmatpush3.bf16.msra.mxu0 %v166_v5 }
  0x13   :  { %150 = vmatprep.subr.bf16.mxu0 %v170_v0 }
  0x16   :  { %151 = vmatpush3.bf16.msra.mxu0 %v167_v6 }
  0x17   :  { %152 = vmatprep.subr.bf16.mxu0 %v170_v0 }
  0x1a   :  { %153 = vmatpush3.bf16.msra.mxu0 %v168_v7 }
  0x1b   :  { %154 = vmatprep.subr.bf16.mxu0 %v170_v0 }
  0x1e   :  { %155 = vmatpush3.bf16.msra.mxu0 %v169_v8 }
  0x21   :  { %157 = vmatmul.mubr.bf16.vlgmr.msra.gmra.mrb[0].mxu0 %v12_v9 }
  0xf4   :  { %v111_v10 = vpop.f32.mrb[0].mxu0 }
  0xf5   :  { %118 = vst.msk [vmem:[%s219_s2] sm:$0xff] %vm117_vm1, %v111_v10  ;;  %v158_v11 = vpop.f32.mrb[1].mxu0 }
  0xf6   :  { %v114_v12 = vpop.f32.mrb[2].mxu0 }
  0xf7   :  { %v159_v13 = vpop.f32.mrb[3].mxu0 }

</bundles_post_ra>
